<compile_context>
chip_gen: v5e
topology: v5e:2x2
jax: 0.10.0
libtpu: 0.0.40
codegen_flags: <defaults>
</compile_context>

<pallas_src>
import functools

import jax
import jax.numpy as jnp
import numpy as np
from jax import lax
from jax.experimental import pallas as pl
from jax.experimental.pallas import tpu as pltpu

C_IN = 514            # in_channel == out_channel == 514 (fixed by the module)
C_PAD = 640           # 514 padded to 5 * 128 lanes
HIDDEN = 256
NUM_CLASSES = 10
FC_PAD = 128          # fc output padded to one lane tile
BN_EPS = 1e-5
PAD_OFF = 8           # sublane-aligned offset of the data inside the halo scratch


# ----------------------------- Pallas kernels ------------------------------

def conv_stack_kernel(x_ref, wd_ref, bd_ref, wp_ref, bp_ref, o_ref, pad_ref):
    """Three fused conv blocks (depthwise k=5 + pointwise 1x1 with folded
    eval-BN + ReLU) for one batch element.  The intermediate activation never
    leaves VMEM.  x_ref: (1, T, Cp); o_ref: (T, Cp) written into the batch-b
    lane block of a (T, B*Cp) output (i.e. time-major rows downstream)."""
    T = x_ref.shape[1]
    cur = x_ref[0]                                   # (T, Cp) f32
    pad_ref[...] = jnp.zeros_like(pad_ref)           # zero time halo once
    for l in range(3):
        pad_ref[PAD_OFF:PAD_OFF + T, :] = cur        # aligned store of the data
        xpad = pad_ref[...]                          # (T + 2*PAD_OFF, Cp)
        wd = wd_ref[l]                               # (5, Cp)
        dw = xpad[PAD_OFF - 2:PAD_OFF - 2 + T, :] * wd[0:1, :]
        for k in range(1, 5):                        # depthwise conv over time
            s = PAD_OFF - 2 + k
            dw = dw + xpad[s:s + T, :] * wd[k:k + 1, :]
        dw = dw + bd_ref[l]
        # pointwise 1x1 conv (BN folded in) == channel matmul on the MXU, bf16
        y = jnp.dot(dw.astype(jnp.bfloat16), wp_ref[l],
                    preferred_element_type=jnp.float32) + bp_ref[l]
        cur = jnp.maximum(y, 0.0)                    # ReLU
    o_ref[...] = cur


def proj_kernel(*refs, num_parts):
    """o = sum_p x_p @ w_p + b over an M-tile.  bf16 MXU operands, f32 acc.
    Used for the (combined fwd+bwd) GRU input projections and the fc."""
    x_refs = refs[:num_parts]
    w_refs = refs[num_parts:2 * num_parts]
    b_ref = refs[2 * num_parts]
    o_ref = refs[2 * num_parts + 1]
    acc = jnp.dot(x_refs[0][...].astype(jnp.bfloat16), w_refs[0][...],
                  preferred_element_type=jnp.float32)
    for p in range(1, num_parts):
        acc = acc + jnp.dot(x_refs[p][...].astype(jnp.bfloat16), w_refs[p][...],
                            preferred_element_type=jnp.float32)
    o_ref[...] = acc + b_ref[...]


def gru_bidir_kernel(xp_ref, whh_f_ref, whh_b_ref, bhh_f_ref, bhh_b_ref,
                     o_f_ref, o_b_ref, h_f, h_b, *, unroll):
    """Bidirectional GRU recurrence, both directions interleaved per time step
    (PyTorch gate order r, z, n).  xp_ref: (T, B, 6H) time-major precomputed
    x @ [W_ih_f | W_ih_b]^T + b_ih.  Backward direction is handled in-kernel
    (reads xp[T-1-t], writes o_b[T-1-t]) — no XLA reverse copies."""
    T = xp_ref.shape[0]
    H = whh_f_ref.shape[0]
    h_f[...] = jnp.zeros_like(h_f)
    h_b[...] = jnp.zeros_like(h_b)

    def gate(xi, hh, h):
        r = jax.nn.sigmoid(xi[:, :H] + hh[:, :H])
        z = jax.nn.sigmoid(xi[:, H:2 * H] + hh[:, H:2 * H])
        n = jnp.tanh(xi[:, 2 * H:] + r * hh[:, 2 * H:])
        return (1.0 - z) * n + z * h

    def step(t, carry):
        tb = T - 1 - t
        hf = h_f[...]                                # (B, H)
        hb = h_b[...]
        hhf = jnp.dot(hf.astype(jnp.bfloat16), whh_f_ref[...],
                      preferred_element_type=jnp.float32) + bhh_f_ref[...]
        hhb = jnp.dot(hb.astype(jnp.bfloat16), whh_b_ref[...],
                      preferred_element_type=jnp.float32) + bhh_b_ref[...]
        xf = xp_ref[t]                               # (B, 6H)
        xb = xp_ref[tb]
        hf_new = gate(xf[:, :3 * H], hhf, hf)
        hb_new = gate(xb[:, 3 * H:], hhb, hb)
        h_f[...] = hf_new
        h_b[...] = hb_new
        o_f_ref[t] = hf_new
        o_b_ref[tb] = hb_new
        return carry

    lax.fori_loop(0, T, step, 0, unroll=unroll)


# ----------------------------- wrappers -------------------------------------

def conv_stack(x, wd, bd, wp, bp):
    """x: (B, T, Cp) -> (T, B*Cp); reshaped to (T*B, Cp) it is time-major."""
    B, T, Cp = x.shape
    return pl.pallas_call(
        conv_stack_kernel,
        out_shape=jax.ShapeDtypeStruct((T, B * Cp), jnp.float32),
        grid=(B,),
        in_specs=[
            pl.BlockSpec((1, T, Cp), lambda b: (b, 0, 0)),
            pl.BlockSpec((3, 5, Cp), lambda b: (0, 0, 0)),
            pl.BlockSpec((3, 1, Cp), lambda b: (0, 0, 0)),
            pl.BlockSpec((3, Cp, Cp), lambda b: (0, 0, 0)),
            pl.BlockSpec((3, 1, Cp), lambda b: (0, 0, 0)),
        ],
        out_specs=pl.BlockSpec((T, Cp), lambda b: (0, b)),
        scratch_shapes=[pltpu.VMEM((T + 2 * PAD_OFF, Cp), jnp.float32)],
        compiler_params=pltpu.CompilerParams(dimension_semantics=("parallel",)),
    )(x, wd, bd, wp, bp)


def proj(x_parts, w_parts, b):
    """sum_p x_p @ w_p + b, tiled over M rows (double-buffered, parallel)."""
    P = len(x_parts)
    M = x_parts[0].shape[0]
    N = w_parts[0].shape[1]
    tm = M if M <= 512 else 256
    in_specs = []
    for xp_ in x_parts:
        K = xp_.shape[1]
        in_specs.append(pl.BlockSpec((tm, K), lambda i: (i, 0)))
    for wp_ in w_parts:
        K = wp_.shape[0]
        in_specs.append(pl.BlockSpec((K, N), lambda i: (0, 0)))
    in_specs.append(pl.BlockSpec((1, N), lambda i: (0, 0)))
    return pl.pallas_call(
        functools.partial(proj_kernel, num_parts=P),
        out_shape=jax.ShapeDtypeStruct((M, N), jnp.float32),
        grid=(pl.cdiv(M, tm),),
        in_specs=in_specs,
        out_specs=pl.BlockSpec((tm, N), lambda i: (i, 0)),
        compiler_params=pltpu.CompilerParams(dimension_semantics=("parallel",)),
    )(*x_parts, *w_parts, b)


def gru_layer(x_parts, p, T, B):
    """One bidirectional GRU layer on time-major row parts; returns the fwd and
    bwd output streams as (T*B, H) arrays (kept split — no concat copy)."""
    xp = proj(x_parts, p["wih"], p["bih"])               # (T*B, 6H)
    xp = xp.reshape(T, B, 6 * HIDDEN)
    o_f, o_b = pl.pallas_call(
        functools.partial(gru_bidir_kernel, unroll=(T <= 16)),
        out_shape=(jax.ShapeDtypeStruct((T, B, HIDDEN), jnp.float32),
                   jax.ShapeDtypeStruct((T, B, HIDDEN), jnp.float32)),
        scratch_shapes=[pltpu.VMEM((B, HIDDEN), jnp.float32),
                        pltpu.VMEM((B, HIDDEN), jnp.float32)],
    )(xp, p["whh_f"], p["whh_b"], p["bhh_f"], p["bhh_b"])
    return [o_f.reshape(T * B, HIDDEN), o_b.reshape(T * B, HIDDEN)]


def jungmin2_forward(x, kp):
    """x: (B, M, T, F) with M*F == 514. Returns (B, T, 10)."""
    B, M, T, Fm = x.shape
    C = M * Fm
    # Same channel ordering as PyTorch permute(0,1,3,2).reshape(B,-1,T).transpose(1,2)
    x = jnp.transpose(x, (0, 2, 1, 3)).reshape(B, T, C)
    x = jnp.pad(x, ((0, 0), (0, 0), (0, C_PAD - C)))     # lane-dense 640 channels
    conv_out = conv_stack(x, kp["conv_wd"], kp["conv_bd"],
                          kp["conv_wp"], kp["conv_bp"])  # (T, B*Cp)
    parts = [conv_out.reshape(T * B, C_PAD)]             # time-major rows (t*B + b)
    for lp in kp["gru"]:                                 # eval: GRU dropout is a no-op
        parts = gru_layer(parts, lp, T, B)
    y = proj(parts, kp["fc_w"], kp["fc_b"])              # (T*B, FC_PAD)
    y = y.reshape(T, B, FC_PAD)
    return jnp.transpose(y, (1, 0, 2))[:, :, :NUM_CLASSES]


# ----------------------------- parameters -----------------------------------
# init_gru / init_layer are external in the original repo; parameters are
# initialized deterministically in-script (PyTorch-style shapes), then folded /
# padded / bf16-cast into the kernel layout by prepare_params.

def init_params(key):
    ks = iter(jax.random.split(key, 64))

    def nrm(shape, scale):
        return (scale * jax.random.normal(next(ks), shape)).astype(jnp.float32)

    def conv_block_params():
        wd = nrm((5, C_IN), 0.2)            # PyTorch depthwise (C,1,5) -> (5,C)
        bd = nrm((1, C_IN), 0.1)
        wp = nrm((C_IN, C_IN), 0.04)        # PyTorch pointwise (Co,Ci,1) -> (Ci,Co)
        bp = nrm((1, C_IN), 0.1)
        gamma = 1.0 + nrm((1, C_IN), 0.1)
        beta = nrm((1, C_IN), 0.1)
        mean = nrm((1, C_IN), 0.1)
        var = 1.0 + jnp.abs(nrm((1, C_IN), 0.1))
        return (wd, bd, wp, bp, gamma, beta, mean, var)

    def gru_dir(din):
        s = 1.0 / np.sqrt(HIDDEN)
        return (nrm((din, 3 * HIDDEN), s),   # W_ih^T
                nrm((1, 3 * HIDDEN), s),     # b_ih
                nrm((HIDDEN, 3 * HIDDEN), s),  # W_hh^T
                nrm((1, 3 * HIDDEN), s))     # b_hh

    return {
        "layer1": conv_block_params(),
        "layer2": conv_block_params(),
        "layer3": conv_block_params(),
        "gru": [[gru_dir(C_IN), gru_dir(C_IN)],
                [gru_dir(2 * HIDDEN), gru_dir(2 * HIDDEN)]],
        "fc_w": nrm((2 * HIDDEN, NUM_CLASSES), 1.0 / np.sqrt(2 * HIDDEN)),
        "fc_b": nrm((1, NUM_CLASSES), 0.05),
    }


def prepare_params(raw):
    """Fold eval-BN into the pointwise conv, pad channels to 640, concatenate
    the two GRU directions' input projections, pad fc to 128, cast all matmul
    weights to bf16 (f32 accumulate on the MXU)."""
    def pad_last(a, n):
        return jnp.pad(a, [(0, 0)] * (a.ndim - 1) + [(0, n - a.shape[-1])])

    conv_wd, conv_bd, conv_wp, conv_bp = [], [], [], []
    for name in ("layer1", "layer2", "layer3"):
        wd, bd, wp, bp, gamma, beta, mean, var = raw[name]
        scale = gamma / jnp.sqrt(var + BN_EPS)
        shift = beta - mean * scale
        wp_f = jnp.pad(wp * scale, ((0, C_PAD - C_IN), (0, C_PAD - C_IN)))
        bp_f = pad_last(bp * scale + shift, C_PAD)
        conv_wd.append(pad_last(wd, C_PAD))
        conv_bd.append(pad_last(bd, C_PAD))
        conv_wp.append(wp_f.astype(jnp.bfloat16))
        conv_bp.append(bp_f)

    gru_layers = []
    for li, layer in enumerate(raw["gru"]):
        (wih_f, bih_f, whh_f, bhh_f), (wih_b, bih_b, whh_b, bhh_b) = layer
        wih = jnp.concatenate([wih_f, wih_b], axis=1)       # (Din, 6H)
        bih = jnp.concatenate([bih_f, bih_b], axis=1)       # (1, 6H)
        if li == 0:
            wih = jnp.pad(wih, ((0, C_PAD - wih.shape[0]), (0, 0)))
            w_parts = [wih.astype(jnp.bfloat16)]
        else:   # layer-2 input = [fwd H | bwd H]; split by input part
            w_parts = [wih[:HIDDEN].astype(jnp.bfloat16),
                       wih[HIDDEN:].astype(jnp.bfloat16)]
        gru_layers.append({
            "wih": w_parts, "bih": bih,
            "whh_f": whh_f.astype(jnp.bfloat16), "whh_b": whh_b.astype(jnp.bfloat16),
            "bhh_f": bhh_f, "bhh_b": bhh_b,
        })

    fc_w = jnp.pad(raw["fc_w"], ((0, 0), (0, FC_PAD - NUM_CLASSES)))
    fc_b = jnp.pad(raw["fc_b"], ((0, 0), (0, FC_PAD - NUM_CLASSES)))
    return {
        "conv_wd": jnp.stack(conv_wd), "conv_bd": jnp.stack(conv_bd),
        "conv_wp": jnp.stack(conv_wp), "conv_bp": jnp.stack(conv_bp),
        "gru": gru_layers,
        "fc_w": [fc_w[:HIDDEN].astype(jnp.bfloat16), fc_w[HIDDEN:].astype(jnp.bfloat16)],
        "fc_b": fc_b,
    }


# ----------------------------- pure-JAX reference ----------------------------
# Mirrors the exact same (BN-folded, channel-padded, bf16-matmul) math so the
# check validates the Pallas lowering; the folding/padding itself is exact.

def reference_forward(x, kp):
    B, M, T, Fm = x.shape
    C = M * Fm
    H = HIDDEN
    x = jnp.transpose(x, (0, 2, 1, 3)).reshape(B, T, C)
    x = jnp.pad(x, ((0, 0), (0, 0), (0, C_PAD - C)))

    for l in range(3):
        xpad = jnp.pad(x, ((0, 0), (2, 2), (0, 0)))
        dw = xpad[:, 0:T, :] * kp["conv_wd"][l, 0]
        for k in range(1, 5):
            dw = dw + xpad[:, k:k + T, :] * kp["conv_wd"][l, k]
        dw = dw + kp["conv_bd"][l]
        y = jnp.dot(dw.reshape(B * T, C_PAD).astype(jnp.bfloat16), kp["conv_wp"][l],
                    preferred_element_type=jnp.float32).reshape(B, T, C_PAD)
        x = jnp.maximum(y + kp["conv_bp"][l], 0.0)

    parts = [jnp.transpose(x, (1, 0, 2)).reshape(T * B, C_PAD)]   # time-major rows
    for p in kp["gru"]:
        xp = sum(jnp.dot(xx.astype(jnp.bfloat16), ww, preferred_element_type=jnp.float32)
                 for xx, ww in zip(parts, p["wih"])) + p["bih"]
        xp = xp.reshape(T, B, 6 * H)
        outs = []
        for d, (whh, bhh) in enumerate([(p["whh_f"], p["bhh_f"]),
                                        (p["whh_b"], p["bhh_b"])]):
            xpd = xp[:, :, d * 3 * H:(d + 1) * 3 * H]
            if d == 1:
                xpd = xpd[::-1]

            def step(h, xi, whh=whh, bhh=bhh):
                hh = jnp.dot(h.astype(jnp.bfloat16), whh,
                             preferred_element_type=jnp.float32) + bhh
                r = jax.nn.sigmoid(xi[:, :H] + hh[:, :H])
                z = jax.nn.sigmoid(xi[:, H:2 * H] + hh[:, H:2 * H])
                n = jnp.tanh(xi[:, 2 * H:] + r * hh[:, 2 * H:])
                hn = (1.0 - z) * n + z * h
                return hn, hn

            _, hs = lax.scan(step, jnp.zeros((B, H), jnp.float32), xpd)
            if d == 1:
                hs = hs[::-1]
            outs.append(hs.reshape(T * B, H))
        parts = outs

    y = sum(jnp.dot(xx.astype(jnp.bfloat16), ww, preferred_element_type=jnp.float32)
            for xx, ww in zip(parts, kp["fc_w"])) + kp["fc_b"]
    y = y.reshape(T, B, FC_PAD)
    return jnp.transpose(y, (1, 0, 2))[:, :, :NUM_CLASSES]


# ----------------------------- main ------------------------------------------

if __name__ == "__main__":
    key = jax.random.PRNGKey(0)
    pkey, xkey = jax.random.split(key)
    raw = init_params(pkey)
    kp = prepare_params(raw)

    # Module requires mic_channels * mel_bins == 514.
    B, M, T, Fm = 2, 2, 8, 257
    x = jax.random.normal(xkey, (B, M, T, Fm), dtype=jnp.float32)

    out = jax.block_until_ready(jungmin2_forward(x, kp))
    assert out.shape == (B, T, NUM_CLASSES) and out.dtype == jnp.float32

    ref = jax.block_until_ready(reference_forward(x, kp))
    np.testing.assert_allclose(np.asarray(out), np.asarray(ref),
                               rtol=5e-3, atol=5e-3)

    print("KERNEL_OK")
</pallas_src>

<mosaic_0001>
module attributes {stable_mosaic.version = 11 : i64} {
  func.func @conv_stack_kernel(%arg0: i32, %arg1: memref<1x8x640xf32, #tpu.memory_space<vmem>>, %arg2: memref<3x5x640xf32, #tpu.memory_space<vmem>>, %arg3: memref<3x1x640xf32, #tpu.memory_space<vmem>>, %arg4: memref<3x640x640xbf16, #tpu.memory_space<vmem>>, %arg5: memref<3x1x640xf32, #tpu.memory_space<vmem>>, %arg6: memref<8x640xf32, #tpu.memory_space<vmem>>, %arg7: memref<24x640xf32, #tpu.memory_space<vmem>>) attributes {dimension_semantics = [#tpu.dimension_semantics<parallel>], iteration_bounds = array<i64: 2>, scalar_prefetch = 0 : i64, scratch_operands = 1 : i64, tpu.core_type = #tpu.core_type<tc>, window_params = [{transform_indices = @transform_0, window_bounds = array<i64: 1, 8, 640>}, {pipeline_mode = #tpu.pipeline_mode<synchronous>, transform_indices = @transform_1, window_bounds = array<i64: 3, 5, 640>}, {pipeline_mode = #tpu.pipeline_mode<synchronous>, transform_indices = @transform_2, window_bounds = array<i64: 3, 1, 640>}, {pipeline_mode = #tpu.pipeline_mode<synchronous>, transform_indices = @transform_3, window_bounds = array<i64: 3, 640, 640>}, {pipeline_mode = #tpu.pipeline_mode<synchronous>, transform_indices = @transform_4, window_bounds = array<i64: 3, 1, 640>}, {transform_indices = @transform_5, window_bounds = array<i64: 8, 640>}]} {
    %c0 = arith.constant 0 : index
    %c0_0 = arith.constant 0 : index
    %c0_1 = arith.constant 0 : index
    %0 = vector.load %arg1[%c0, %c0_0, %c0_1] : memref<1x8x640xf32, #tpu.memory_space<vmem>>, vector<1x8x640xf32>
    %1 = vector.shape_cast %0 : vector<1x8x640xf32> to vector<8x640xf32>
    %cst = arith.constant 0.000000e+00 : f32
    %2 = vector.broadcast %cst : f32 to vector<24x640xf32>
    %c0_2 = arith.constant 0 : index
    %c0_3 = arith.constant 0 : index
    %3 = vector.load %arg7[%c0_2, %c0_3] : memref<24x640xf32, #tpu.memory_space<vmem>>, vector<24x640xf32>
    tpu.vector_store %arg7[%c0_2, %c0_3], %2 {strides = array<i32>} : memref<24x640xf32, #tpu.memory_space<vmem>>, vector<24x640xf32>,
    %c8 = arith.constant 8 : index
    %c0_4 = arith.constant 0 : index
    %4 = vector.load %arg7[%c8, %c0_4] : memref<24x640xf32, #tpu.memory_space<vmem>>, vector<8x640xf32>
    tpu.vector_store %arg7[%c8, %c0_4], %1 {strides = array<i32>} : memref<24x640xf32, #tpu.memory_space<vmem>>, vector<8x640xf32>,
    %c0_5 = arith.constant 0 : index
    %c0_6 = arith.constant 0 : index
    %5 = vector.load %arg7[%c0_5, %c0_6] : memref<24x640xf32, #tpu.memory_space<vmem>>, vector<24x640xf32>
    %c0_7 = arith.constant 0 : index
    %c0_8 = arith.constant 0 : index
    %c0_9 = arith.constant 0 : index
    %6 = vector.load %arg2[%c0_7, %c0_8, %c0_9] : memref<3x5x640xf32, #tpu.memory_space<vmem>>, vector<1x5x640xf32>
    %7 = vector.shape_cast %6 : vector<1x5x640xf32> to vector<5x640xf32>
    %8 = vector.extract_strided_slice %5 {offsets = [6, 0], sizes = [8, 640], strides = [1, 1]} : vector<24x640xf32> to vector<8x640xf32>
    %9 = vector.extract_strided_slice %7 {offsets = [0, 0], sizes = [1, 640], strides = [1, 1]} : vector<5x640xf32> to vector<1x640xf32>
    %10 = vector.broadcast %9 : vector<1x640xf32> to vector<8x640xf32>
    %11 = arith.mulf %8, %10 : vector<8x640xf32>
    %12 = vector.extract_strided_slice %5 {offsets = [7, 0], sizes = [8, 640], strides = [1, 1]} : vector<24x640xf32> to vector<8x640xf32>
    %13 = vector.extract_strided_slice %7 {offsets = [1, 0], sizes = [1, 640], strides = [1, 1]} : vector<5x640xf32> to vector<1x640xf32>
    %14 = vector.broadcast %13 : vector<1x640xf32> to vector<8x640xf32>
    %15 = arith.mulf %12, %14 : vector<8x640xf32>
    %16 = arith.addf %11, %15 : vector<8x640xf32>
    %17 = vector.extract_strided_slice %5 {offsets = [8, 0], sizes = [8, 640], strides = [1, 1]} : vector<24x640xf32> to vector<8x640xf32>
    %18 = vector.extract_strided_slice %7 {offsets = [2, 0], sizes = [1, 640], strides = [1, 1]} : vector<5x640xf32> to vector<1x640xf32>
    %19 = vector.broadcast %18 : vector<1x640xf32> to vector<8x640xf32>
    %20 = arith.mulf %17, %19 : vector<8x640xf32>
    %21 = arith.addf %16, %20 : vector<8x640xf32>
    %22 = vector.extract_strided_slice %5 {offsets = [9, 0], sizes = [8, 640], strides = [1, 1]} : vector<24x640xf32> to vector<8x640xf32>
    %23 = vector.extract_strided_slice %7 {offsets = [3, 0], sizes = [1, 640], strides = [1, 1]} : vector<5x640xf32> to vector<1x640xf32>
    %24 = vector.broadcast %23 : vector<1x640xf32> to vector<8x640xf32>
    %25 = arith.mulf %22, %24 : vector<8x640xf32>
    %26 = arith.addf %21, %25 : vector<8x640xf32>
    %27 = vector.extract_strided_slice %5 {offsets = [10, 0], sizes = [8, 640], strides = [1, 1]} : vector<24x640xf32> to vector<8x640xf32>
    %28 = vector.extract_strided_slice %7 {offsets = [4, 0], sizes = [1, 640], strides = [1, 1]} : vector<5x640xf32> to vector<1x640xf32>
    %29 = vector.broadcast %28 : vector<1x640xf32> to vector<8x640xf32>
    %30 = arith.mulf %27, %29 : vector<8x640xf32>
    %31 = arith.addf %26, %30 : vector<8x640xf32>
    %c0_10 = arith.constant 0 : index
    %c0_11 = arith.constant 0 : index
    %c0_12 = arith.constant 0 : index
    %32 = vector.load %arg3[%c0_10, %c0_11, %c0_12] : memref<3x1x640xf32, #tpu.memory_space<vmem>>, vector<1x1x640xf32>
    %33 = vector.shape_cast %32 : vector<1x1x640xf32> to vector<1x640xf32>
    %34 = vector.broadcast %33 : vector<1x640xf32> to vector<8x640xf32>
    %35 = arith.addf %31, %34 : vector<8x640xf32>
    %36 = arith.truncf %35 : vector<8x640xf32> to vector<8x640xbf16>
    %c0_13 = arith.constant 0 : index
    %c0_14 = arith.constant 0 : index
    %c0_15 = arith.constant 0 : index
    %37 = vector.load %arg4[%c0_13, %c0_14, %c0_15] : memref<3x640x640xbf16, #tpu.memory_space<vmem>>, vector<1x640x640xbf16>
    %38 = vector.shape_cast %37 : vector<1x640x640xbf16> to vector<640x640xbf16>
    %cst_16 = arith.constant dense<0.000000e+00> : vector<8x640xf32>
    %39 = tpu.matmul %36, %38, %cst_16 {dimension_numbers = #tpu.dot_dimension_numbers<[1], [0], [0], [1], [0, 0, 1, 1], [], []>} : vector<8x640xbf16>, vector<640x640xbf16>, vector<8x640xf32> -> vector<8x640xf32>
    %c0_17 = arith.constant 0 : index
    %c0_18 = arith.constant 0 : index
    %c0_19 = arith.constant 0 : index
    %40 = vector.load %arg5[%c0_17, %c0_18, %c0_19] : memref<3x1x640xf32, #tpu.memory_space<vmem>>, vector<1x1x640xf32>
    %41 = vector.shape_cast %40 : vector<1x1x640xf32> to vector<1x640xf32>
    %42 = vector.broadcast %41 : vector<1x640xf32> to vector<8x640xf32>
    %43 = arith.addf %39, %42 : vector<8x640xf32>
    %cst_20 = arith.constant 0.000000e+00 : f32
    %44 = vector.broadcast %cst_20 : f32 to vector<8x640xf32>
    %45 = arith.maximumf %43, %44 : vector<8x640xf32>
    %c8_21 = arith.constant 8 : index
    %c0_22 = arith.constant 0 : index
    %46 = vector.load %arg7[%c8_21, %c0_22] : memref<24x640xf32, #tpu.memory_space<vmem>>, vector<8x640xf32>
    tpu.vector_store %arg7[%c8_21, %c0_22], %45 {strides = array<i32>} : memref<24x640xf32, #tpu.memory_space<vmem>>, vector<8x640xf32>,
    %c0_23 = arith.constant 0 : index
    %c0_24 = arith.constant 0 : index
    %47 = vector.load %arg7[%c0_23, %c0_24] : memref<24x640xf32, #tpu.memory_space<vmem>>, vector<24x640xf32>
    %c1 = arith.constant 1 : index
    %c0_25 = arith.constant 0 : index
    %c0_26 = arith.constant 0 : index
    %48 = vector.load %arg2[%c1, %c0_25, %c0_26] : memref<3x5x640xf32, #tpu.memory_space<vmem>>, vector<1x5x640xf32>
    %49 = vector.shape_cast %48 : vector<1x5x640xf32> to vector<5x640xf32>
    %50 = vector.extract_strided_slice %47 {offsets = [6, 0], sizes = [8, 640], strides = [1, 1]} : vector<24x640xf32> to vector<8x640xf32>
    %51 = vector.extract_strided_slice %49 {offsets = [0, 0], sizes = [1, 640], strides = [1, 1]} : vector<5x640xf32> to vector<1x640xf32>
    %52 = vector.broadcast %51 : vector<1x640xf32> to vector<8x640xf32>
    %53 = arith.mulf %50, %52 : vector<8x640xf32>
    %54 = vector.extract_strided_slice %47 {offsets = [7, 0], sizes = [8, 640], strides = [1, 1]} : vector<24x640xf32> to vector<8x640xf32>
    %55 = vector.extract_strided_slice %49 {offsets = [1, 0], sizes = [1, 640], strides = [1, 1]} : vector<5x640xf32> to vector<1x640xf32>
    %56 = vector.broadcast %55 : vector<1x640xf32> to vector<8x640xf32>
    %57 = arith.mulf %54, %56 : vector<8x640xf32>
    %58 = arith.addf %53, %57 : vector<8x640xf32>
    %59 = vector.extract_strided_slice %47 {offsets = [8, 0], sizes = [8, 640], strides = [1, 1]} : vector<24x640xf32> to vector<8x640xf32>
    %60 = vector.extract_strided_slice %49 {offsets = [2, 0], sizes = [1, 640], strides = [1, 1]} : vector<5x640xf32> to vector<1x640xf32>
    %61 = vector.broadcast %60 : vector<1x640xf32> to vector<8x640xf32>
    %62 = arith.mulf %59, %61 : vector<8x640xf32>
    %63 = arith.addf %58, %62 : vector<8x640xf32>
    %64 = vector.extract_strided_slice %47 {offsets = [9, 0], sizes = [8, 640], strides = [1, 1]} : vector<24x640xf32> to vector<8x640xf32>
    %65 = vector.extract_strided_slice %49 {offsets = [3, 0], sizes = [1, 640], strides = [1, 1]} : vector<5x640xf32> to vector<1x640xf32>
    %66 = vector.broadcast %65 : vector<1x640xf32> to vector<8x640xf32>
    %67 = arith.mulf %64, %66 : vector<8x640xf32>
    %68 = arith.addf %63, %67 : vector<8x640xf32>
    %69 = vector.extract_strided_slice %47 {offsets = [10, 0], sizes = [8, 640], strides = [1, 1]} : vector<24x640xf32> to vector<8x640xf32>
    %70 = vector.extract_strided_slice %49 {offsets = [4, 0], sizes = [1, 640], strides = [1, 1]} : vector<5x640xf32> to vector<1x640xf32>
    %71 = vector.broadcast %70 : vector<1x640xf32> to vector<8x640xf32>
    %72 = arith.mulf %69, %71 : vector<8x640xf32>
    %73 = arith.addf %68, %72 : vector<8x640xf32>
    %c1_27 = arith.constant 1 : index
    %c0_28 = arith.constant 0 : index
    %c0_29 = arith.constant 0 : index
    %74 = vector.load %arg3[%c1_27, %c0_28, %c0_29] : memref<3x1x640xf32, #tpu.memory_space<vmem>>, vector<1x1x640xf32>
    %75 = vector.shape_cast %74 : vector<1x1x640xf32> to vector<1x640xf32>
    %76 = vector.broadcast %75 : vector<1x640xf32> to vector<8x640xf32>
    %77 = arith.addf %73, %76 : vector<8x640xf32>
    %78 = arith.truncf %77 : vector<8x640xf32> to vector<8x640xbf16>
    %c1_30 = arith.constant 1 : index
    %c0_31 = arith.constant 0 : index
    %c0_32 = arith.constant 0 : index
    %79 = vector.load %arg4[%c1_30, %c0_31, %c0_32] : memref<3x640x640xbf16, #tpu.memory_space<vmem>>, vector<1x640x640xbf16>
    %80 = vector.shape_cast %79 : vector<1x640x640xbf16> to vector<640x640xbf16>
    %cst_33 = arith.constant dense<0.000000e+00> : vector<8x640xf32>
    %81 = tpu.matmul %78, %80, %cst_33 {dimension_numbers = #tpu.dot_dimension_numbers<[1], [0], [0], [1], [0, 0, 1, 1], [], []>} : vector<8x640xbf16>, vector<640x640xbf16>, vector<8x640xf32> -> vector<8x640xf32>
    %c1_34 = arith.constant 1 : index
    %c0_35 = arith.constant 0 : index
    %c0_36 = arith.constant 0 : index
    %82 = vector.load %arg5[%c1_34, %c0_35, %c0_36] : memref<3x1x640xf32, #tpu.memory_space<vmem>>, vector<1x1x640xf32>
    %83 = vector.shape_cast %82 : vector<1x1x640xf32> to vector<1x640xf32>
    %84 = vector.broadcast %83 : vector<1x640xf32> to vector<8x640xf32>
    %85 = arith.addf %81, %84 : vector<8x640xf32>
    %cst_37 = arith.constant 0.000000e+00 : f32
    %86 = vector.broadcast %cst_37 : f32 to vector<8x640xf32>
    %87 = arith.maximumf %85, %86 : vector<8x640xf32>
    %c8_38 = arith.constant 8 : index
    %c0_39 = arith.constant 0 : index
    %88 = vector.load %arg7[%c8_38, %c0_39] : memref<24x640xf32, #tpu.memory_space<vmem>>, vector<8x640xf32>
    tpu.vector_store %arg7[%c8_38, %c0_39], %87 {strides = array<i32>} : memref<24x640xf32, #tpu.memory_space<vmem>>, vector<8x640xf32>,
    %c0_40 = arith.constant 0 : index
    %c0_41 = arith.constant 0 : index
    %89 = vector.load %arg7[%c0_40, %c0_41] : memref<24x640xf32, #tpu.memory_space<vmem>>, vector<24x640xf32>
    %c2 = arith.constant 2 : index
    %c0_42 = arith.constant 0 : index
    %c0_43 = arith.constant 0 : index
    %90 = vector.load %arg2[%c2, %c0_42, %c0_43] : memref<3x5x640xf32, #tpu.memory_space<vmem>>, vector<1x5x640xf32>
    %91 = vector.shape_cast %90 : vector<1x5x640xf32> to vector<5x640xf32>
    %92 = vector.extract_strided_slice %89 {offsets = [6, 0], sizes = [8, 640], strides = [1, 1]} : vector<24x640xf32> to vector<8x640xf32>
    %93 = vector.extract_strided_slice %91 {offsets = [0, 0], sizes = [1, 640], strides = [1, 1]} : vector<5x640xf32> to vector<1x640xf32>
    %94 = vector.broadcast %93 : vector<1x640xf32> to vector<8x640xf32>
    %95 = arith.mulf %92, %94 : vector<8x640xf32>
    %96 = vector.extract_strided_slice %89 {offsets = [7, 0], sizes = [8, 640], strides = [1, 1]} : vector<24x640xf32> to vector<8x640xf32>
    %97 = vector.extract_strided_slice %91 {offsets = [1, 0], sizes = [1, 640], strides = [1, 1]} : vector<5x640xf32> to vector<1x640xf32>
    %98 = vector.broadcast %97 : vector<1x640xf32> to vector<8x640xf32>
    %99 = arith.mulf %96, %98 : vector<8x640xf32>
    %100 = arith.addf %95, %99 : vector<8x640xf32>
    %101 = vector.extract_strided_slice %89 {offsets = [8, 0], sizes = [8, 640], strides = [1, 1]} : vector<24x640xf32> to vector<8x640xf32>
    %102 = vector.extract_strided_slice %91 {offsets = [2, 0], sizes = [1, 640], strides = [1, 1]} : vector<5x640xf32> to vector<1x640xf32>
    %103 = vector.broadcast %102 : vector<1x640xf32> to vector<8x640xf32>
    %104 = arith.mulf %101, %103 : vector<8x640xf32>
    %105 = arith.addf %100, %104 : vector<8x640xf32>
    %106 = vector.extract_strided_slice %89 {offsets = [9, 0], sizes = [8, 640], strides = [1, 1]} : vector<24x640xf32> to vector<8x640xf32>
    %107 = vector.extract_strided_slice %91 {offsets = [3, 0], sizes = [1, 640], strides = [1, 1]} : vector<5x640xf32> to vector<1x640xf32>
    %108 = vector.broadcast %107 : vector<1x640xf32> to vector<8x640xf32>
    %109 = arith.mulf %106, %108 : vector<8x640xf32>
    %110 = arith.addf %105, %109 : vector<8x640xf32>
    %111 = vector.extract_strided_slice %89 {offsets = [10, 0], sizes = [8, 640], strides = [1, 1]} : vector<24x640xf32> to vector<8x640xf32>
    %112 = vector.extract_strided_slice %91 {offsets = [4, 0], sizes = [1, 640], strides = [1, 1]} : vector<5x640xf32> to vector<1x640xf32>
    %113 = vector.broadcast %112 : vector<1x640xf32> to vector<8x640xf32>
    %114 = arith.mulf %111, %113 : vector<8x640xf32>
    %115 = arith.addf %110, %114 : vector<8x640xf32>
    %c2_44 = arith.constant 2 : index
    %c0_45 = arith.constant 0 : index
    %c0_46 = arith.constant 0 : index
    %116 = vector.load %arg3[%c2_44, %c0_45, %c0_46] : memref<3x1x640xf32, #tpu.memory_space<vmem>>, vector<1x1x640xf32>
    %117 = vector.shape_cast %116 : vector<1x1x640xf32> to vector<1x640xf32>
    %118 = vector.broadcast %117 : vector<1x640xf32> to vector<8x640xf32>
    %119 = arith.addf %115, %118 : vector<8x640xf32>
    %120 = arith.truncf %119 : vector<8x640xf32> to vector<8x640xbf16>
    %c2_47 = arith.constant 2 : index
    %c0_48 = arith.constant 0 : index
    %c0_49 = arith.constant 0 : index
    %121 = vector.load %arg4[%c2_47, %c0_48, %c0_49] : memref<3x640x640xbf16, #tpu.memory_space<vmem>>, vector<1x640x640xbf16>
    %122 = vector.shape_cast %121 : vector<1x640x640xbf16> to vector<640x640xbf16>
    %cst_50 = arith.constant dense<0.000000e+00> : vector<8x640xf32>
    %123 = tpu.matmul %120, %122, %cst_50 {dimension_numbers = #tpu.dot_dimension_numbers<[1], [0], [0], [1], [0, 0, 1, 1], [], []>} : vector<8x640xbf16>, vector<640x640xbf16>, vector<8x640xf32> -> vector<8x640xf32>
    %c2_51 = arith.constant 2 : index
    %c0_52 = arith.constant 0 : index
    %c0_53 = arith.constant 0 : index
    %124 = vector.load %arg5[%c2_51, %c0_52, %c0_53] : memref<3x1x640xf32, #tpu.memory_space<vmem>>, vector<1x1x640xf32>
    %125 = vector.shape_cast %124 : vector<1x1x640xf32> to vector<1x640xf32>
    %126 = vector.broadcast %125 : vector<1x640xf32> to vector<8x640xf32>
    %127 = arith.addf %123, %126 : vector<8x640xf32>
    %cst_54 = arith.constant 0.000000e+00 : f32
    %128 = vector.broadcast %cst_54 : f32 to vector<8x640xf32>
    %129 = arith.maximumf %127, %128 : vector<8x640xf32>
    %c0_55 = arith.constant 0 : index
    %c0_56 = arith.constant 0 : index
    %130 = vector.load %arg6[%c0_55, %c0_56] : memref<8x640xf32, #tpu.memory_space<vmem>>, vector<8x640xf32>
    tpu.vector_store %arg6[%c0_55, %c0_56], %129 {strides = array<i32>} : memref<8x640xf32, #tpu.memory_space<vmem>>, vector<8x640xf32>,
    return
  }
  func.func @transform_0(%arg0: i32) -> (i32, i32, i32) {
    %c0_i32 = arith.constant 0 : i32
    %c0_i32_0 = arith.constant 0 : i32
    %c0_i32_1 = arith.constant 0 : i32
    return %arg0, %c0_i32, %c0_i32_0 : i32, i32, i32
  }
  func.func @transform_1(%arg0: i32) -> (i32, i32, i32) {
    %c0_i32 = arith.constant 0 : i32
    %c0_i32_0 = arith.constant 0 : i32
    %c0_i32_1 = arith.constant 0 : i32
    %c0_i32_2 = arith.constant 0 : i32
    return %c0_i32, %c0_i32_0, %c0_i32_1 : i32, i32, i32
  }
  func.func @transform_2(%arg0: i32) -> (i32, i32, i32) {
    %c0_i32 = arith.constant 0 : i32
    %c0_i32_0 = arith.constant 0 : i32
    %c0_i32_1 = arith.constant 0 : i32
    %c0_i32_2 = arith.constant 0 : i32
    return %c0_i32, %c0_i32_0, %c0_i32_1 : i32, i32, i32
  }
  func.func @transform_3(%arg0: i32) -> (i32, i32, i32) {
    %c0_i32 = arith.constant 0 : i32
    %c0_i32_0 = arith.constant 0 : i32
    %c0_i32_1 = arith.constant 0 : i32
    %c0_i32_2 = arith.constant 0 : i32
    return %c0_i32, %c0_i32_0, %c0_i32_1 : i32, i32, i32
  }
  func.func @transform_4(%arg0: i32) -> (i32, i32, i32) {
    %c0_i32 = arith.constant 0 : i32
    %c0_i32_0 = arith.constant 0 : i32
    %c0_i32_1 = arith.constant 0 : i32
    %c0_i32_2 = arith.constant 0 : i32
    return %c0_i32, %c0_i32_0, %c0_i32_1 : i32, i32, i32
  }
  func.func @transform_5(%arg0: i32) -> (i32, i32) {
    %c0_i32 = arith.constant 0 : i32
    %c0_i32_0 = arith.constant 0 : i32
    return %c0_i32, %arg0 : i32, i32
  }
}

</mosaic_0001>

<bundles_post_ra>
// kernel: tpu_custom_call.1
= control target key start
LH: loop header
LB: loop body
LE: loop exit
PB: predicated region body
PF: predicated region fallthrough
CT: control target
= control target key end

     0   :  { %s10320_s0 = inlined_call_operand.hbm [shape: f32[2,8,640], index: 0, kind: input, shape index: {}]   ;;  %s10321_s1 = inlined_call_operand.vmem [shape: f32[3,5,640], index: 1, kind: input, shape index: {}]   ;;  %s10322_s2 = inlined_call_operand.hbm [shape: f32[3,1,640], index: 2, kind: input, shape index: {}]   ;;  %s10323_s3 = inlined_call_operand.hbm [shape: bf16[3,640,640], index: 3, kind: input, shape index: {}]   ;;  %s10324_s4 = inlined_call_operand.hbm [shape: f32[3,1,640], index: 4, kind: input, shape index: {}]   ;;  %s10325_s5 = inlined_call_operand.hbm [shape: f32[8,1280], index: 5, kind: output, shape index: {}]  }
   0x1   :  { %10326 = sst [smem:[#allocation16_spill]] %s10322_s2 }
   0x2   :  { %10327 = sst [smem:[#allocation17_spill]] %s10323_s3 }
   0x3   :  { %10 = vsyncpa [#allocation4], 0 }
   0x4   :  { %12 = vsyncpa [#allocation4 + $0x1], 0 }
   0x5   :  { %13 = vsyncpa [#allocation7], 0 }
   0x6   :  { %14 = vsyncpa [#allocation10], 0 }
   0x7   :  { %15 = vsyncpa [#allocation5], 0 }
   0x8   :  { %17 = vsyncpa [#allocation5 + $0x1], 0  ;;  %s9549_s18 = smov 0   ;;  %s9551_s19 = smov 0  }
   0x9   :  { %s9553_s20 = smov 0   ;;  %s9555_s21 = smov 0  }
   0xa LB: > { %s10328_s2 = sld [smem:[#allocation16_spill]]  ;;  %s9573_s25 = sadd.s32 4294967295, %s9510_s21   ;;  %s9510_s21 = sphi %s9555_s21, %s10340_s21   ;;  %s9506_s20 = sphi %s9553_s20, %s10339_s20   ;;  %s9502_s19 = sphi %s9551_s19, %s10338_s19   ;;  %s9498_s18 = sphi %s9549_s18, %s10337_s18  }
   0xb   : > { %p6204_p0 = scmp.ge.s32.totalorder %s9510_s21, 1  ;;  %p44_p1 = scmp.eq.s32.totalorder %s9573_s25, 0 }
   0xc   : > { %p164_p2 = scmp.lt.s32.totalorder %s9510_s21, 3  ;;  %s9512_s27 = smov [#allocation6]  }
   0xd   : > { %s180_s28 = sshll.u32 %s9512_s27, 4  ;;  %s10330_s3 = sld [smem:[#allocation17_spill]]  ;;  %s181_s28 = int_to_ptr.vmem [resolvable:$true] %s180_s28 }
   0xe   : > { %p9578_p3 = pnand %p6204_p0, %p164_p2  ;;  %s9513_s8 = smov [#allocation8]  }
   0xf   : > { %s194_s9 = sshll.u32 %s9513_s8, 4  ;;  %s9514_s10 = smov 80   ;;  %s195_s9 = int_to_ptr.vmem [resolvable:$true] %s194_s9 }
  0x10   : > { %s178_s24 = sshll.u32 %s10328_s2, 4  ;;  %p9247_p4 = pneg %p9578_p3  ;;  %s179_s24 = int_to_ptr.hbm [resolvable:$true] %s178_s24 }
  0x11   : > { %s9515_s11 = smov 5   ;;  %s9516_s12 = smov 320  }
  0x12   : > { %p9590_p6 = pnand %p9247_p4, %p44_p1  ;;  %s9517_s13 = smov 20  }
  0x13   : > { %s192_s6 = sshll.u32 %s10330_s3, 4  ;;  %s206_s16 = sshll.u32 %s10324_s4, 4  ;;  %s193_s6 = int_to_ptr.hbm [resolvable:$true] %s192_s6  ;;  %s207_s16 = int_to_ptr.hbm [resolvable:$true] %s206_s16 }
  0x14   : > { %9250 = dma.hbm_to_vmem [thread:$0]  (!%p9590_p6), %s179_s24, 240, %s181_s28, [#allocation7], %s9514_s10, %s9514_s10, %s9515_s11  }
  0x15   : > { %9253 = dma.hbm_to_vmem [thread:$0]  (!%p9590_p6), %s193_s6, 76800, %s195_s9, [#allocation7], %s9516_s12, %s9516_s12, %s9517_s13  }
  0x16   : > { %s9518_s17 = smov [#allocation9]   ;;  %s6203_s23 = sadd.s32 4294967294, %s9510_s21  }
  0x17   : > { %s208_s22 = sshll.u32 %s9518_s17, 4  ;;  %s9605_s24 = sadd.s32 1, %s9510_s21   ;;  %s209_s22 = int_to_ptr.vmem [resolvable:$true] %s208_s22 }
  0x18   : > { %9256 = dma.hbm_to_vmem [thread:$0]  (!%p9590_p6), %s207_s16, 240, %s209_s22, [#allocation10], %s9514_s10, %s9514_s10, %s9515_s11  }
  0x19   : > { %s30_s27 = sadd.s32 1, %s9506_s20  ;;  %s27_s28 = ssub.s32 %s9510_s21, %s9605_s24 }
  0x1a   : > { %p37_p7 = scmp.ne.s32.totalorder %s9506_s20, %s9502_s19  ;;  %p28_p8 = scmp.eq.s32.totalorder %s27_s28, 0 }
  0x1b   : > { %p38_p9 = scmp.eq.s32.totalorder %s9510_s21, 0  ;;  %p43_p10 = scmp.ne.s32.totalorder %s9502_s19, %s9498_s18 }
  0x1c   : > { %p151_p11 = scmp.eq.s32.totalorder %s9573_s25, 1  ;;  %p157_p2 = scmp.eq.s32.totalorder %s6203_s23, 1 }
  0x1d   : > { %s9617_s29 = scalar_select %p28_p8, %s9506_s20, %s30_s27  }
  0x1e   : > { %p39_p12 = por %p38_p9, %p37_p7  ;;  %p9621_p13 = por %p44_p1, %p43_p10 }
  0x1f   : > { %p9625_p0 = por %p151_p11, %p37_p7  ;;  %p9268_p4 = scmp.lt.s32.totalorder %s9510_s21, 2 }
  0x20   : > { %s222_s7 = sand.u32 1, %s9506_s20   ;;  %p9631_p6 = por %p157_p2, %p43_p10 }
  0x21   : > { %s9228_s9 = smul.u32 40, %s222_s7  ;;  %p9635_p8 = pnand %p9268_p4, %p39_p12 }
  0x22   : > { %s9229_s11 = smul.u32 40, %s9510_s21  ;;  %s223_s22 = scalar_lea.sflag [#allocation4], %s222_s7 }
  0x23   : > { %s226_s15 = scalar_lea.vmem [#allocation3], %s9228_s9  ;;  %p9410_p9 = pneg %p9635_p8 }
  0x24   : > { %s231_s14 = scalar_lea.hbm %s10320_s0, %s9229_s11  ;;  %s235_s16 = sshll.u32 %s226_s15, 4  ;;  %s236_s16 = int_to_ptr.vmem [resolvable:$true] %s235_s16 }
  0x25   : > { %s233_s17 = sshll.u32 %s231_s14, 4  ;;  %s9413_s3 = scalar_lea.hbm %s10320_s0, 80  ;;  %s234_s17 = int_to_ptr.hbm [resolvable:$true] %s233_s17 }
  0x26   : > { %s9406_s23 = sshra.s32 %s234_s17, 4  ;;  %s9407_s23 = int_to_ptr.hbm [resolvable:$true] %s9406_s23 }
  0x27   : > { %s9408_s27 = scalar_lea.hbm %s9407_s23, 40  ;;  %p9414_p12 = scmp.lt.s32.totalorder %s9407_s23, %s10320_s0 }
  0x28   : > { %p9409_p7 = scmp.ne.s32.totalorder %s9407_s23, %s9408_s27  ;;  %p9415_p2 = scmp.lt.s32.totalorder %s9413_s3, %s9408_s27 }
  0x2a   : > { %p9411_p10 = pnand %p9410_p9, %p9409_p7  ;;  %p9416_p4 = por %p9415_p2, %p9414_p12 }
  0x2c   : > { %p9412_p11 = pneg %p9411_p10 }
  0x2e   : > { %p9417_p5 = pnand %p9416_p4, %p9412_p11 }
  0x30   : > { %9420 = shalt.err (!%p9417_p5)
}
  0x31   : > { %9260 = dma.hbm_to_vmem [thread:$0]  (!%p9635_p8), %s234_s17, 640, %s236_s16, %s223_s22  }
  0x32   : > { %244 = sbr.rel (%p9578_p3) target bundleno = 994 (0x3e2), region = 40  ;;  %s9656_s7 = sand.u32 (!%p9578_p3), 1, %s9502_s19  }
  0x33   : > { %s9230_s2 = smul.u32 (!%p9578_p3), 40, %s9656_s7  ;;  %s247_s9 = scalar_lea.sflag (!%p9578_p3), [#allocation4], %s9656_s7 }
  0x35   : > { %s9662_s3 = scalar_lea.vmem (!%p9578_p3), [#allocation3], %s9230_s2 }
  0x37   : > { %9481 = dma.done.wait (%p9621_p13), %s247_s9, 640  }
  0x38   : > { %9483 = vsyncadd (%p9621_p13), %s247_s9, 4294966656 }
  0x39   : > { %9485 = dma.done.wait (%p44_p1), [#allocation7], 77040  }
  0x3a   : > { %9487 = vsyncadd (%p44_p1), [#allocation7], 4294890256 }
  0x3b   : > { %9489 = dma.done.wait (%p44_p1), [#allocation10], 240  }
  0x3c   : > { %9491 = vsyncadd (%p44_p1), [#allocation10], 4294967056  ;;  %v6356_v0 = vld [vmem:[#allocation8 + $0x118] sm:$0xf]  ;;  %v8664_v1 = vld [vmem:[#allocation8 + $0x128] sm:$0xf0] }
  0x3d   : > { %v6676_v2 = vld [vmem:[#allocation8 + $0x398] sm:$0xf]  ;;  %v6357_v3 = vor.u32 %v8664_v1, %v6356_v0  ;;  %v8744_v4 = vld [vmem:[#allocation8 + $0x3a8] sm:$0xf0]  ;;  %v6336_v11 = vld [vmem:[#allocation8 + $0xf0] sm:$0xf] }
  0x3e   : > { %v6516_v5 = vld [vmem:[#allocation8 + $0x258] sm:$0xf]  ;;  %v8704_v6 = vld [vmem:[#allocation8 + $0x268] sm:$0xf0]  ;;  %v6677_v7 = vor.u32 %v8744_v4, %v6676_v2  ;;  %v8659_v13 = vld [vmem:[#allocation8 + $0x100] sm:$0xf0] }
  0x3f   : > { %v6517_v8 = vor.u32 %v8704_v6, %v6516_v5  ;;  %v6836_v9 = vld [vmem:[#allocation8 + $0x4d8] sm:$0xf]  ;;  %v8784_v10 = vld [vmem:[#allocation8 + $0x4e8] sm:$0xf0]  ;;  %1906 = vmatpush.bf16.msra.mxu0 %v6357_v3  ;;  %v6656_v14 = vld [vmem:[#allocation8 + $0x370] sm:$0xf]  ;;  %v6337_v16 = vor.u32 %v8659_v13, %v6336_v11 }
  0x40   : > { %v6837_v12 = vor.u32 %v8784_v10, %v6836_v9  ;;  %v8739_v15 = vld [vmem:[#allocation8 + $0x380] sm:$0xf0]  ;;  %1932 = vmatpush.bf16.msra.mxu2 %v6677_v7  ;;  %v6496_v18 = vld [vmem:[#allocation8 + $0x230] sm:$0xf]  ;;  %v6316_v23 = vld [vmem:[#allocation8 + $0xc8] sm:$0xf] }
  0x41   : > { %1919 = vmatpush.bf16.msra.mxu1 %v6517_v8  ;;  %v6657_v17 = vor.u32 %v8739_v15, %v6656_v14  ;;  %v8699_v19 = vld [vmem:[#allocation8 + $0x240] sm:$0xf0]  ;;  %v6816_v20 = vld [vmem:[#allocation8 + $0x4b0] sm:$0xf]  ;;  %v8654_v24 = vld [vmem:[#allocation8 + $0xd8] sm:$0xf0] }
  0x42   : > { %1945 = vmatpush.bf16.msra.mxu3 %v6837_v12  ;;  %v6497_v21 = vor.u32 %v8699_v19, %v6496_v18  ;;  %v8779_v22 = vld [vmem:[#allocation8 + $0x4c0] sm:$0xf0]  ;;  %v6636_v26 = vld [vmem:[#allocation8 + $0x348] sm:$0xf]  ;;  %v8734_v27 = vld [vmem:[#allocation8 + $0x358] sm:$0xf0]  ;;  %v6317_v29 = vor.u32 %v8654_v24, %v6316_v23 }
  0x43   : > { %v6817_v25 = vor.u32 %v8779_v22, %v6816_v20  ;;  %v6476_v28 = vld [vmem:[#allocation8 + $0x208] sm:$0xf]  ;;  %1907 = vmatpush.bf16.msra.mxu0 %v6337_v16  ;;  %v8694_v30 = vld [vmem:[#allocation8 + $0x218] sm:$0xf0]  ;;  %v6637_v33 = vor.u32 %v8734_v27, %v6636_v26  ;;  %v6296_v35 = vld [vmem:[#allocation8 + $0xa0] sm:$0xf] }
  0x44   : > { %v6796_v31 = vld [vmem:[#allocation8 + $0x488] sm:$0xf]  ;;  %v8774_v32 = vld [vmem:[#allocation8 + $0x498] sm:$0xf0]  ;;  %1933 = vmatpush.bf16.msra.mxu2 %v6657_v17  ;;  %v6477_v34 = vor.u32 %v8694_v30, %v6476_v28  ;;  %v8649_v36 = vld [vmem:[#allocation8 + $0xb0] sm:$0xf0] }
  0x45   : > { %1920 = vmatpush.bf16.msra.mxu1 %v6497_v21  ;;  %v6616_v37 = vld [vmem:[#allocation8 + $0x320] sm:$0xf]  ;;  %v6797_v38 = vor.u32 %v8774_v32, %v6796_v31  ;;  %v8729_v39 = vld [vmem:[#allocation8 + $0x330] sm:$0xf0]  ;;  %v6297_v44 = vor.u32 %v8649_v36, %v6296_v35  ;;  %v6276_v47 = vld [vmem:[#allocation8 + $0x78] sm:$0xf] }
  0x46   : > { %1946 = vmatpush.bf16.msra.mxu3 %v6817_v25  ;;  %v6456_v40 = vld [vmem:[#allocation8 + $0x1e0] sm:$0xf]  ;;  %v8689_v41 = vld [vmem:[#allocation8 + $0x1f0] sm:$0xf0]  ;;  %v6617_v45 = vor.u32 %v8729_v39, %v6616_v37  ;;  %v8644_v48 = vld [vmem:[#allocation8 + $0x88] sm:$0xf0] }
  0x47   : > { %v6776_v42 = vld [vmem:[#allocation8 + $0x460] sm:$0xf]  ;;  %v8769_v43 = vld [vmem:[#allocation8 + $0x470] sm:$0xf0]  ;;  %1908 = vmatpush.bf16.msra.mxu0 %v6317_v29  ;;  %v6457_v46 = vor.u32 %v8689_v41, %v6456_v40  ;;  %v6596_v49 = vld [vmem:[#allocation8 + $0x2f8] sm:$0xf]  ;;  %v6277_v56 = vor.u32 %v8644_v48, %v6276_v47 }
  0x48   : > { %1934 = vmatpush.bf16.msra.mxu2 %v6637_v33  ;;  %v6777_v50 = vor.u32 %v8769_v43, %v6776_v42  ;;  %v8724_v51 = vld [vmem:[#allocation8 + $0x308] sm:$0xf0]  ;;  %v6436_v52 = vld [vmem:[#allocation8 + $0x1b8] sm:$0xf]  ;;  %v6256_v59 = vld [vmem:[#allocation8 + $0x50] sm:$0xf] }
  0x49   : > { %1921 = vmatpush.bf16.msra.mxu1 %v6477_v34  ;;  %v8684_v53 = vld [vmem:[#allocation8 + $0x1c8] sm:$0xf0]  ;;  %v6756_v54 = vld [vmem:[#allocation8 + $0x438] sm:$0xf]  ;;  %v6597_v57 = vor.u32 %v8724_v51, %v6596_v49  ;;  %v8639_v60 = vld [vmem:[#allocation8 + $0x60] sm:$0xf0] }
  0x4a   : > { %1947 = vmatpush.bf16.msra.mxu3 %v6797_v38  ;;  %v8764_v55 = vld [vmem:[#allocation8 + $0x448] sm:$0xf0]  ;;  %v6437_v58 = vor.u32 %v8684_v53, %v6436_v52  ;;  %v6576_v61 = vld [vmem:[#allocation8 + $0x2d0] sm:$0xf]  ;;  %v8719_v63 = vld [vmem:[#allocation8 + $0x2e0] sm:$0xf0]  ;;  %v6257_v4 = vor.u32 %v8639_v60, %v6256_v59 }
  0x4b   : > { %1909 = vmatpush.bf16.msra.mxu0 %v6297_v44  ;;  %v6757_v62 = vor.u32 %v8764_v55, %v6756_v54  ;;  %v6416_v0 = vld [vmem:[#allocation8 + $0x190] sm:$0xf]  ;;  %v8679_v1 = vld [vmem:[#allocation8 + $0x1a0] sm:$0xf0]  ;;  %v6236_v5 = vld [vmem:[#allocation8 + $0x28] sm:$0xf]  ;;  %v6577_v7 = vor.u32 %v8719_v63, %v6576_v61 }
  0x4c   : > { %1935 = vmatpush.bf16.msra.mxu2 %v6617_v45  ;;  %v6736_v2 = vld [vmem:[#allocation8 + $0x410] sm:$0xf]  ;;  %v8759_v3 = vld [vmem:[#allocation8 + $0x420] sm:$0xf0]  ;;  %v8634_v6 = vld [vmem:[#allocation8 + $0x38] sm:$0xf0]  ;;  %v6417_v8 = vor.u32 %v8679_v1, %v6416_v0 }
  0x4d   : > { %1922 = vmatpush.bf16.msra.mxu1 %v6457_v46  ;;  %v6556_v9 = vld [vmem:[#allocation8 + $0x2a8] sm:$0xf]  ;;  %v8714_v10 = vld [vmem:[#allocation8 + $0x2b8] sm:$0xf0]  ;;  %v6737_v12 = vor.u32 %v8759_v3, %v6736_v2  ;;  %v9676_v16 = vld [vmem:[#allocation8] sm:$0xf]  ;;  %v6237_v22 = vor.u32 %v8634_v6, %v6236_v5 }
  0x4e   : > { %1948 = vmatpush.bf16.msra.mxu3 %v6777_v50  ;;  %v6396_v11 = vld [vmem:[#allocation8 + $0x168] sm:$0xf]  ;;  %v8674_v13 = vld [vmem:[#allocation8 + $0x178] sm:$0xf0]  ;;  %v8629_v17 = vld [vmem:[#allocation8 + $0x10] sm:$0xf0]  ;;  %v6557_v29 = vor.u32 %v8714_v10, %v6556_v9 }
  0x4f   : > { %1910 = vmatpush.bf16.msra.mxu0 %v6277_v56  ;;  %v6716_v14 = vld [vmem:[#allocation8 + $0x3e8] sm:$0xf]  ;;  %v8754_v15 = vld [vmem:[#allocation8 + $0x3f8] sm:$0xf0]  ;;  %v9678_v18 = vld [vmem:[#allocation8 + $0x280] sm:$0xf]  ;;  %v6397_v30 = vor.u32 %v8674_v13, %v6396_v11  ;;  %v6217_v45 = vor.u32 %v8629_v17, %v9676_v16 }
  0x50   : > { %1936 = vmatpush.bf16.msra.mxu2 %v6597_v57  ;;  %v9680_v19 = vld [vmem:[#allocation8 + $0x290] sm:$0xf0]  ;;  %v9682_v20 = vld [vmem:[#allocation8 + $0x618] sm:$0xf]  ;;  %v9684_v21 = vld [vmem:[#allocation8 + $0x628] sm:$0xf0]  ;;  %v6717_v38 = vor.u32 %v8754_v15, %v6716_v14 }
  0x51   : > { %1923 = vmatpush.bf16.msra.mxu1 %v6437_v58  ;;  %v9686_v23 = vld [vmem:[#allocation8 + $0x25c] sm:$0xf]  ;;  %v9688_v24 = vld [vmem:[#allocation8 + $0x26c] sm:$0xf0]  ;;  %v9690_v25 = vld [vmem:[#allocation8 + $0x140] sm:$0xf]  ;;  %v6537_v46 = vor.u32 %v9680_v19, %v9678_v18  ;;  %v6997_v47 = vor.u32 %v9684_v21, %v9682_v20 }
  0x52   : > { %1949 = vmatpush.bf16.msra.mxu3 %v6757_v62  ;;  %v9692_v26 = vld [vmem:[#allocation8 + $0x150] sm:$0xf0]  ;;  %v9694_v27 = vld [vmem:[#allocation8 + $0x3c0] sm:$0xf]  ;;  %v9698_v31 = vld [vmem:[#allocation8 + $0x11c] sm:$0xf]  ;;  %v6521_v51 = vor.u32 %v9686_v23, %v9688_v24 }
  0x53   : > { %1911 = vmatpush.bf16.msra.mxu0 %v6257_v4  ;;  %v9696_v28 = vld [vmem:[#allocation8 + $0x3d0] sm:$0xf0]  ;;  %v9700_v32 = vld [vmem:[#allocation8 + $0x12c] sm:$0xf0]  ;;  %v9702_v33 = vld [vmem:[#allocation8 + $0x39c] sm:$0xf]  ;;  %v6377_v52 = vor.u32 %v9692_v26, %v9690_v25 }
  0x54   : > { %1937 = vmatpush.bf16.msra.mxu2 %v6577_v7  ;;  %v9704_v34 = vld [vmem:[#allocation8 + $0x3ac] sm:$0xf0]  ;;  %v9708_v36 = vld [vmem:[#allocation8 + $0x600] sm:$0xf0]  ;;  %v9710_v37 = vld [vmem:[#allocation8 + $0x234] sm:$0xf]  ;;  %v6697_v53 = vor.u32 %v9696_v28, %v9694_v27  ;;  %v6361_v57 = vor.u32 %v9698_v31, %v9700_v32 }
  0x55   : > { %1924 = vmatpush.bf16.msra.mxu1 %v6417_v8  ;;  %v9706_v35 = vld [vmem:[#allocation8 + $0x5f0] sm:$0xf]  ;;  %v9712_v39 = vld [vmem:[#allocation8 + $0x244] sm:$0xf0]  ;;  %v9714_v40 = vld [vmem:[#allocation8 + $0xf4] sm:$0xf]  ;;  %v6681_v58 = vor.u32 %v9702_v33, %v9704_v34 }
  0x56   : > { %1950 = vmatpush.bf16.msra.mxu3 %v6737_v12  ;;  %v9716_v41 = vld [vmem:[#allocation8 + $0x104] sm:$0xf0]  ;;  %v9718_v42 = vld [vmem:[#allocation8 + $0x374] sm:$0xf]  ;;  %v9729_v48 = vld [vmem:[#allocation8 + $0x5d8] sm:$0xf0]  ;;  %v6977_v59 = vor.u32 %v9708_v36, %v9706_v35  ;;  %v6501_v60 = vor.u32 %v9710_v37, %v9712_v39 }
  0x57   : > { %v9720_v43 = vld [vmem:[#allocation8 + $0x384] sm:$0xf0]  ;;  %1912 = vmatpush.bf16.msra.mxu0 %v6237_v22  ;;  %v9731_v49 = vld [vmem:[#allocation8 + $0x20c] sm:$0xf]  ;;  %v9733_v50 = vld [vmem:[#allocation8 + $0x21c] sm:$0xf0]  ;;  %v6341_v0 = vor.u32 %v9714_v40, %v9716_v41 }
  0x58   : > { %v9722_v44 = vld [vmem:[#allocation8 + $0x5c8] sm:$0xf]  ;;  %1938 = vmatpush.bf16.msra.mxu2 %v6557_v29  ;;  %v9741_v54 = vld [vmem:[#allocation8 + $0xcc] sm:$0xf]  ;;  %v9743_v55 = vld [vmem:[#allocation8 + $0xdc] sm:$0xf0]  ;;  %v6661_v1 = vor.u32 %v9718_v42, %v9720_v43  ;;  %v6481_v3 = vor.u32 %v9731_v49, %v9733_v50 }
  0x59   : > { %1925 = vmatpush.bf16.msra.mxu1 %v6397_v30  ;;  %v9745_v56 = vld [vmem:[#allocation8 + $0x34c] sm:$0xf]  ;;  %v9755_v61 = vld [vmem:[#allocation8 + $0x35c] sm:$0xf0]  ;;  %v9759_v63 = vld [vmem:[#allocation8 + $0x5b0] sm:$0xf0]  ;;  %v6957_v2 = vor.u32 %v9729_v48, %v9722_v44  ;;  %v6321_v7 = vor.u32 %v9741_v54, %v9743_v55 }
  0x5a   : > { %1951 = vmatpush.bf16.msra.mxu3 %v6717_v38  ;;  %v9757_v62 = vld [vmem:[#allocation8 + $0x5a0] sm:$0xf]  ;;  %v9769_v4 = vld [vmem:[#allocation8 + $0x1e4] sm:$0xf]  ;;  %v9771_v5 = vld [vmem:[#allocation8 + $0x1f4] sm:$0xf0]  ;;  %v6641_v8 = vor.u32 %v9745_v56, %v9755_v61 }
  0x5b   : > { %v9773_v6 = vld [vmem:[#allocation8 + $0xa4] sm:$0xf]  ;;  %1913 = vmatpush.bf16.msra.mxu0 %v6217_v45  ;;  %v6937_v9 = vor.u32 %v9759_v63, %v9757_v62  ;;  %v6461_v10 = vor.u32 %v9769_v4, %v9771_v5  ;;  %v9783_v11 = vld [vmem:[#allocation8 + $0xb4] sm:$0xf0]  ;;  %vm379_vm0 = vcmask 1046528   ;;  %vm475_vm1 = vcmask 1044480  }
  0x5c   : > { %v9785_v12 = vld [vmem:[#allocation8 + $0x324] sm:$0xf]  ;;  %v9787_v13 = vld [vmem:[#allocation8 + $0x334] sm:$0xf0]  ;;  %1939 = vmatpush.bf16.msra.mxu2 %v6537_v46  ;;  %v6301_v14 = vor.u32 %v9773_v6, %v9783_v11  ;;  %v9797_v22 = vld [vmem:[#allocation6] sm:$0x1f] }
  0x5d   : > { %v6621_v15 = vor.u32 %v9785_v12, %v9787_v13  ;;  %v294_v16 = vld [vmem:[%s9662_s3] sm:$0xff]  ;;  %1926 = vmatpush.bf16.msra.mxu1 %v6377_v52  ;;  %vm536_vm2 = vcmask 1043456   ;;  %v574_v24 = vperm.slane %v9797_v22, 0  ;;  %v9800_v25 = vld [vmem:[#allocation8 + $0x578] sm:$0xf]  ;;  %v576_v26 = vperm.slane %v9797_v22, 2 }
  0x5e   : > { %v334_v17 = vld [vmem:[%s10321_s1] sm:$0x1f]  ;;  %1952 = vmatpush.bf16.msra.mxu3 %v6697_v53  ;;  %v9803_v31 = vld [vmem:[#allocation8 + $0x588] sm:$0xf0]  ;;  %v9805_v32 = vld [vmem:[#allocation8 + $0x1bc] sm:$0xf] }
  0x5f   : > { %1958 = vmatpush.bf16.msrb.mxu0 %v6997_v47  ;;  %v339_v18 = vperm.slane %v334_v17, 0  ;;  %v354_v19 = vperm.slane %v334_v17, 1  ;;  %v415_v20 = vperm.slane %v334_v17, 2  ;;  %v450_v21 = vperm.slane %v334_v17, 3  ;;  %v9807_v37 = vld [vmem:[#allocation8 + $0x1cc] sm:$0xf0] }
  0x60   : > { %1984 = vmatpush.bf16.msrb.mxu2 %v6521_v51  ;;  %v511_v23 = vperm.slane %v334_v17, 4  ;;  %v9809_v38 = vld [vmem:[#allocation8 + $0x7c] sm:$0xf]  ;;  %v6917_v42 = vor.u32 %v9803_v31, %v9800_v25  ;;  %v9813_v43 = vld [vmem:[#allocation8 + $0x8c] sm:$0xf0]  ;;  %s10274_s9 = scalar_lea.vmem [#allocation11], %s9230_s2 }
  0x61   : > { %1971 = vmatpush.bf16.msrb.mxu1 %v6361_v57  ;;  %v344_v27 = vmul.f32 0.0, %v339_v18  ;;  %v349_v28 = vmul.f32 %v339_v18, %v294_v16  ;;  %v359_v29 = vmul.f32 0.0, %v354_v19  ;;  %v364_v30 = vmul.f32 %v354_v19, %v294_v16  ;;  %v9815_v52 = vld [vmem:[#allocation8 + $0x2fc] sm:$0xf]  ;;  %v9832_v19 = vld [vmem:[#allocation8 + $0x560] sm:$0xf0] }
  0x62   : > { %1997 = vmatpush.bf16.msrb.mxu3 %v6681_v58  ;;  %v420_v33 = vmul.f32 %v415_v20, %v294_v16  ;;  %v455_v34 = vmul.f32 %v450_v21, %v294_v16  ;;  %v460_v35 = vmul.f32 0.0, %v450_v21  ;;  %v516_v36 = vmul.f32 %v511_v23, %v294_v16  ;;  %v9822_v16 = vld [vmem:[#allocation8 + $0x550] sm:$0xf]  ;;  %v9834_v20 = vld [vmem:[#allocation8 + $0x194] sm:$0xf]  ;;  %s9227_s2 = smul.u32 40, %s9573_s25 }
  0x63   : > { %1959 = vmatpush.bf16.msrb.mxu0 %v6977_v59  ;;  %v380_v39 = vrot.slane %v359_v29, 1  ;;  %v381_v40 = vrot.slane %v364_v30, 1  ;;  %v521_v41 = vmul.f32 0.0, %v511_v23  ;;  %v6441_v59 = vor.u32 %v9805_v32, %v9807_v37  ;;  %v9836_v21 = vld [vmem:[#allocation8 + $0x1a4] sm:$0xf0]  ;;  %v296_v50 = vld [vmem:[%s9662_s3 + $0x10] sm:$0xff] }
  0x64   : > { %1985 = vmatpush.bf16.msrb.mxu2 %v6501_v60  ;;  %v430_v45 = vrot.slane %v420_v33, 2  ;;  %v476_v46 = vrot.slane %v455_v34, 3  ;;  %v481_v47 = vrot.slane %v460_v35, 3  ;;  %v537_v51 = vrot.slane %v516_v36, 4  ;;  %v9820_v60 = vld [vmem:[#allocation8 + $0x30c] sm:$0xf0]  ;;  %s6099_s30 = scalar_lea.hbm %s10325_s5, %s9227_s2 }
  0x65   : > { %1972 = vmatpush.bf16.msrb.mxu1 %v6341_v0  ;;  %v382_v53 = vsel %vm379_vm0, %v380_v39, %v381_v40  ;;  %v410_v57 = vadd.f32 %v381_v40, %v349_v28  ;;  %v542_v58 = vrot.slane %v521_v41, 4  ;;  %v6601_v18 = vor.u32 %v9815_v52, %v9820_v60  ;;  %v9849_v28 = vld [vmem:[#allocation8 + $0x54] sm:$0xf]  ;;  %v9851_v29 = vld [vmem:[#allocation8 + $0x64] sm:$0xf0]  ;;  %s6101_s10 = sshll.u32 %s10274_s9, 4  ;;  %s6102_s10 = int_to_ptr.vmem [resolvable:$true] %s6101_s10 }
  0x66   : > { %1998 = vmatpush.bf16.msrb.mxu3 %v6661_v1  ;;  %v405_v0 = vadd.f32 %v382_v53, %v344_v27  ;;  %v482_v17 = vsel %vm475_vm1, %v476_v46, %v481_v47  ;;  %v6281_v1 = vor.u32 %v9809_v38, %v9813_v43  ;;  %v6421_v23 = vor.u32 %v9834_v20, %v9836_v21  ;;  %v336_v27 = vld [vmem:[%s10321_s1 + $0x10] sm:$0x1f]  ;;  %v6578_v41 = vld [vmem:[#allocation8 + $0x2e4] sm:$0xf0]  ;;  %v337_v12 = vld [vmem:[%s10321_s1 + $0x18] sm:$0x1f] }
  0x67   : > { %1960 = vmatpush.bf16.msrb.mxu0 %v6957_v2  ;;  %v445_v44 = vadd.f32 %v430_v45, %v410_v57  ;;  %v543_v48 = vsel %vm536_vm2, %v537_v51, %v542_v58  ;;  %v6897_v2 = vor.u32 %v9832_v19, %v9822_v16  ;;  %v356_v30 = vperm.slane %v336_v27, 1  ;;  %v8794_v20 = vld [vmem:[#allocation8 + $0x538] sm:$0xf0]  ;;  %s6103_s13 = sshll.u32 %s6099_s30, 4  ;;  %s6088_s14 = scalar_lea.sflag [#allocation5], %s9656_s7  ;;  %s6104_s13 = int_to_ptr.hbm [resolvable:$true] %s6103_s13 }
  0x68   : > { %1986 = vmatpush.bf16.msrb.mxu2 %v6481_v3  ;;  %v440_v49 = vadd.f32 %v430_v45, %v405_v0  ;;  %v341_v3 = vperm.slane %v336_v27, 0  ;;  %v417_v32 = vperm.slane %v336_v27, 2  ;;  %v452_v34 = vperm.slane %v336_v27, 3  ;;  %s9450_s15 = sshra.s32 %s6104_s13, 4  ;;  %s9456_s22 = scalar_lea.hbm %s10325_s5, 80  ;;  %s9451_s15 = int_to_ptr.hbm [resolvable:$true] %s9450_s15 }
  0x69   : > { %1973 = vmatpush.bf16.msrb.mxu1 %v6321_v7  ;;  %v506_v33 = vadd.f32 %v482_v17, %v445_v44  ;;  %v513_v35 = vperm.slane %v336_v27, 4  ;;  %v6261_v36 = vor.u32 %v9849_v28, %v9851_v29  ;;  %v361_v37 = vmul.f32 0.0, %v356_v30  ;;  %s9452_s16 = scalar_lea.hbm %s9451_s15, 40  ;;  %p9457_p13 = scmp.lt.s32.totalorder %s9451_s15, %s10325_s5 }
  0x6a   : > { %1999 = vmatpush.bf16.msrb.mxu3 %v6641_v8  ;;  %v501_v54 = vadd.f32 %v476_v46, %v440_v49  ;;  %v346_v55 = vmul.f32 0.0, %v341_v3  ;;  %v351_v7 = vmul.f32 %v341_v3, %v296_v50  ;;  %v366_v61 = vmul.f32 %v356_v30, %v296_v50  ;;  %v6876_v3 = vld [vmem:[#allocation8 + $0x528] sm:$0xf]  ;;  %p9453_p1 = scmp.ne.s32.totalorder %s9451_s15, %s9452_s16  ;;  %p9458_p8 = scmp.lt.s32.totalorder %s9456_s22, %s9452_s16 }
  0x6b   : > { %1961 = vmatpush.bf16.msrb.mxu0 %v6937_v9  ;;  %v567_v56 = vadd.f32 %v543_v48, %v506_v33  ;;  %v422_v8 = vmul.f32 %v417_v32, %v296_v50  ;;  %v457_v38 = vmul.f32 %v452_v34, %v296_v50  ;;  %v386_v40 = vrot.slane %v361_v37, 1  ;;  %v8717_v9 = vld [vmem:[#allocation8 + $0x2d4] sm:$0xf]  ;;  %v8672_v33 = vld [vmem:[#allocation8 + $0x16c] sm:$0xf] }
  0x6c   : > { %1987 = vmatpush.bf16.msrb.mxu2 %v6461_v10  ;;  %v562_v39 = vadd.f32 %v537_v51, %v501_v54  ;;  %v462_v62 = vmul.f32 0.0, %v452_v34  ;;  %v518_v63 = vmul.f32 %v513_v35, %v296_v50  ;;  %v387_v5 = vrot.slane %v366_v61, 1  ;;  %v6398_v34 = vld [vmem:[#allocation8 + $0x17c] sm:$0xf0]  ;;  %p9454_p3 = pnand %p9453_p1, %p9625_p0  ;;  %p9459_p7 = por %p9458_p8, %p9457_p13 }
  0x6d   : > { %1974 = vmatpush.bf16.msrb.mxu1 %v6301_v14  ;;  %v589_v4 = vadd.f32 %v574_v24, %v567_v56  ;;  %v432_v10 = vrot.slane %v422_v8, 2  ;;  %v478_v43 = vrot.slane %v457_v38, 3  ;;  %v523_v14 = vmul.f32 0.0, %v513_v35  ;;  %v335_v8 = vld [vmem:[%s10321_s1 + $0x8] sm:$0x1f] }
  0x6e   : > { %2000 = vmatpush.bf16.msrb.mxu3 %v6621_v15  ;;  %v584_v6 = vadd.f32 %v574_v24, %v562_v39  ;;  %v485_v11 = vrot.slane %v462_v62, 3  ;;  %v539_v45 = vrot.slane %v518_v63, 4  ;;  %v388_v13 = vsel %vm379_vm0, %v386_v40, %v387_v5  ;;  %p9455_p5 = pneg %p9454_p3 }
  0x6f   : > { %1962 = vmatpush.bf16.msrb.mxu0 %v6917_v42  ;;  %v412_v15 = vadd.f32 %v387_v5, %v351_v7  ;;  %v6581_v46 = vor.u32 %v8717_v9, %v6578_v41  ;;  %v342_v47 = vperm.slane %v337_v12, 0  ;;  %v407_v24 = vadd.f32 %v388_v13, %v346_v55  ;;  %v297_v42 = vld [vmem:[%s9662_s3 + $0x18] sm:$0xff] }
  0x70   : > { %1988 = vmatpush.bf16.msrb.mxu2 %v6441_v59  ;;  %v594_v51 = vpack.c.bf16 %v589_v4, %v584_v6  ;;  %v486_v25 = vsel %vm475_vm1, %v478_v43, %v485_v11  ;;  %v546_v31 = vrot.slane %v523_v14, 4  ;;  %v357_v58 = vperm.slane %v337_v12, 1  ;;  %p9460_p9 = pnand %p9459_p7, %p9455_p5 }
  0x71   : > { %1975 = vmatpush.bf16.msrb.mxu1 %v6281_v1  ;;  %v447_v52 = vadd.f32 %v432_v10, %v412_v15  ;;  %v347_v53 = vmul.f32 0.0, %v342_v47  ;;  %v352_v57 = vmul.f32 %v342_v47, %v297_v42  ;;  %v442_v59 = vadd.f32 %v432_v10, %v407_v24 }
  0x72   : > { %2001 = vmatpush.bf16.msrb.mxu3 %v6601_v18  ;;  %v9887_v60 = vrot.slane %v594_v51, 3  ;;  %v547_v16 = vsel %vm536_vm2, %v539_v45, %v546_v31  ;;  %v418_v0 = vperm.slane %v337_v12, 2  ;;  %v362_v1 = vmul.f32 0.0, %v357_v58 }
  0x73   : > { %1963 = vmatpush.bf16.msrb.mxu0 %v6897_v2  ;;  %v508_v17 = vadd.f32 %v486_v25, %v447_v52  ;;  %v367_v19 = vmul.f32 %v357_v58, %v297_v42  ;;  %v453_v44 = vperm.slane %v337_v12, 3  ;;  %v503_v18 = vadd.f32 %v478_v43, %v442_v59  ;;  %v6238_v52 = vld [vmem:[#allocation8 + $0x3c] sm:$0xf0] }
  0x74   : > { %1989 = vmatpush.bf16.msrb.mxu2 %v6421_v23  ;;  %1914 = vmatmul.bf16.vlgmr.msra.gmra.mxu0 %v9887_v60  ;;  %v423_v48 = vmul.f32 %v418_v0, %v297_v42  ;;  %v514_v27 = vperm.slane %v337_v12, 4  ;;  %v577_v2 = vperm.slane %v9797_v22, 3  ;;  %v389_v29 = vrot.slane %v362_v1, 1  ;;  %v6558_v0 = vld [vmem:[#allocation8 + $0x2bc] sm:$0xf0] }
  0x75   : > { %1976 = vmatpush.bf16.msrb.mxu1 %v6261_v36  ;;  %v569_v28 = vadd.f32 %v547_v16, %v508_v17  ;;  %v390_v49 = vrot.slane %v367_v19, 1  ;;  %v458_v50 = vmul.f32 %v453_v44, %v297_v42  ;;  %v564_v21 = vadd.f32 %v539_v45, %v503_v18  ;;  %v8712_v16 = vld [vmem:[#allocation8 + $0x2ac] sm:$0xf]  ;;  %v6856_v17 = vld [vmem:[#allocation8 + $0x500] sm:$0xf] }
  0x76   : > { %2002 = vmatpush.bf16.msrb.mxu3 %v6581_v46  ;;  %v433_v23 = vrot.slane %v423_v48, 2  ;;  %v463_v30 = vmul.f32 0.0, %v453_v44  ;;  %v519_v32 = vmul.f32 %v514_v27, %v297_v42  ;;  %v524_v61 = vmul.f32 0.0, %v514_v27  ;;  %v8632_v42 = vld [vmem:[#allocation8 + $0x2c] sm:$0xf] }
  0x77   : > { %v591_v35 = vadd.f32 %v576_v26, %v569_v28  ;;  %v391_v36 = vsel %vm379_vm0, %v389_v29, %v390_v49  ;;  %v413_v54 = vadd.f32 %v390_v49, %v352_v57  ;;  %v479_v55 = vrot.slane %v458_v50, 3  ;;  %v8789_v1 = vld [vmem:[#allocation8 + $0x510] sm:$0xf0]  ;;  %v8667_v27 = vld [vmem:[#allocation8 + $0x144] sm:$0xf] }
  0x78   : > { %v586_v7 = vadd.f32 %v576_v26, %v564_v21  ;;  %v408_v37 = vadd.f32 %v391_v36, %v347_v53  ;;  %v487_v56 = vrot.slane %v463_v30, 3  ;;  %v540_v39 = vrot.slane %v519_v32, 4  ;;  %v295_v26 = vld [vmem:[%s9662_s3 + $0x8] sm:$0xff]  ;;  %v6378_v28 = vld [vmem:[#allocation8 + $0x154] sm:$0xf0] }
  0x79   : > { %v448_v38 = vadd.f32 %v433_v23, %v413_v54  ;;  %v6877_v40 = vor.u32 %v8794_v20, %v6876_v3  ;;  %v6401_v62 = vor.u32 %v8672_v33, %v6398_v34  ;;  %v548_v4 = vrot.slane %v524_v61, 4  ;;  %v8782_v20 = vld [vmem:[#allocation8 + $0x4dc] sm:$0xf]  ;;  %v6838_v33 = vld [vmem:[#allocation8 + $0x4ec] sm:$0xf0] }
  0x7a   : > { %v596_v63 = vpack.c.bf16 %v591_v35, %v586_v7  ;;  %v443_v9 = vadd.f32 %v433_v23, %v408_v37  ;;  %v488_v41 = vsel %vm475_vm1, %v479_v55, %v487_v56  ;;  %v340_v10 = vperm.slane %v335_v8, 0  ;;  %v6364_v34 = vld [vmem:[#allocation8 + $0x120] sm:$0xf]  ;;  %v8665_v35 = vld [vmem:[#allocation8 + $0x130] sm:$0xf0] }
  0x7b   : > { %v509_v5 = vadd.f32 %v488_v41, %v448_v38  ;;  %1964 = vmatpush.bf16.msrb.mxu0 %v6877_v40  ;;  %1990 = vmatpush.bf16.msrb.mxu2 %v6401_v62  ;;  %v355_v43 = vperm.slane %v335_v8, 1  ;;  %v416_v6 = vperm.slane %v335_v8, 2  ;;  %v549_v45 = vsel %vm536_vm2, %v540_v39, %v548_v4  ;;  %v8627_v37 = vld [vmem:[#allocation8 + $0x4] sm:$0xf]  ;;  %v6218_v56 = vld [vmem:[#allocation8 + $0x14] sm:$0xf0] }
  0x7c   : > { %v9905_v11 = vrot.slane %v596_v63, 3  ;;  %v504_v14 = vadd.f32 %v479_v55, %v443_v9  ;;  %v451_v12 = vperm.slane %v335_v8, 3  ;;  %v345_v15 = vmul.f32 0.0, %v340_v10  ;;  %v8707_v40 = vld [vmem:[#allocation8 + $0x284] sm:$0xf] }
  0x7d   : > { %v570_v13 = vadd.f32 %v549_v45, %v509_v5  ;;  %v350_v46 = vmul.f32 %v340_v10, %v295_v26  ;;  %v360_v47 = vmul.f32 0.0, %v355_v43  ;;  %v365_v24 = vmul.f32 %v355_v43, %v295_v26  ;;  %v6538_v62 = vld [vmem:[#allocation8 + $0x294] sm:$0xf0]  ;;  %v298_v43 = vld [vmem:[%s9662_s3 + $0x20] sm:$0xff] }
  0x7e   : > { %1940 = vmatmul.bf16.vlgmr.msra.gmra.mxu2 %v9905_v11  ;;  %v565_v51 = vadd.f32 %v540_v39, %v504_v14  ;;  %v421_v25 = vmul.f32 %v416_v6, %v295_v26  ;;  %v456_v31 = vmul.f32 %v451_v12, %v295_v26  ;;  %v461_v58 = vmul.f32 0.0, %v451_v12 }
  0x7f   : > { %v592_v53 = vadd.f32 %v577_v2, %v570_v13  ;;  %v383_v57 = vrot.slane %v360_v47, 1  ;;  %v512_v59 = vperm.slane %v335_v8, 4  ;;  %v384_v44 = vrot.slane %v365_v24, 1 }
  0x80   : > { %v587_v19 = vadd.f32 %v577_v2, %v565_v51  ;;  %v431_v18 = vrot.slane %v421_v25, 2  ;;  %v477_v48 = vrot.slane %v456_v31, 3  ;;  %v483_v29 = vrot.slane %v461_v58, 3  ;;  %v338_v2 = vld [vmem:[%s10321_s1 + $0x20] sm:$0x1f] }
  0x81   : > { %v517_v49 = vmul.f32 %v512_v59, %v295_v26  ;;  %v522_v50 = vmul.f32 0.0, %v512_v59  ;;  %v575_v3 = vperm.slane %v9797_v22, 1  ;;  %v385_v23 = vsel %vm379_vm0, %v383_v57, %v384_v44  ;;  %v8822_v59 = vld [vmem:[#allocation8 + $0x61c] sm:$0xf] }
  0x82   : > { %v597_v21 = vpack.c.bf16 %v592_v53, %v587_v19  ;;  %v411_v30 = vadd.f32 %v384_v44, %v350_v46  ;;  %v6241_v32 = vor.u32 %v8632_v42, %v6238_v52  ;;  %v406_v36 = vadd.f32 %v385_v23, %v345_v15 }
  0x83   : > { %v484_v54 = vsel %vm475_vm1, %v477_v48, %v483_v29  ;;  %v538_v55 = vrot.slane %v517_v49, 4  ;;  %v544_v7 = vrot.slane %v522_v50, 4  ;;  %v6561_v38 = vor.u32 %v8712_v16, %v6558_v0  ;;  %v6998_v16 = vld [vmem:[#allocation8 + $0x62c] sm:$0xf0]  ;;  %v6524_v0 = vld [vmem:[#allocation8 + $0x260] sm:$0xf] }
  0x84   : > { %v9915_v61 = vrot.slane %v597_v21, 3  ;;  %v446_v8 = vadd.f32 %v431_v18, %v411_v30  ;;  %1977 = vmatpush.bf16.msrb.mxu1 %v6241_v32  ;;  %v6857_v39 = vor.u32 %v8789_v1, %v6856_v17  ;;  %v441_v63 = vadd.f32 %v431_v18, %v406_v36  ;;  %v8705_v17 = vld [vmem:[#allocation8 + $0x270] sm:$0xf0]  ;;  %v8660_v32 = vld [vmem:[#allocation8 + $0x108] sm:$0xf0] }
  0x85   : > { %v545_v9 = vsel %vm536_vm2, %v538_v55, %v544_v7  ;;  %v6381_v41 = vor.u32 %v8667_v27, %v6378_v28  ;;  %v6841_v4 = vor.u32 %v8782_v20, %v6838_v33  ;;  %v6365_v26 = vor.u32 %v8665_v35, %v6364_v34  ;;  %2003 = vmatpush.bf16.msrb.mxu3 %v6561_v38  ;;  %v6818_v27 = vld [vmem:[#allocation8 + $0x4c4] sm:$0xf0]  ;;  %v6344_v20 = vld [vmem:[#allocation8 + $0xf8] sm:$0xf]  ;;  %v8817_v33 = vld [vmem:[#allocation8 + $0x5f4] sm:$0xf] }
  0x86   : > { %1953 = vmatmul.bf16.vlgmr.msra.gmra.mxu3 %v9915_v61  ;;  %v507_v5 = vadd.f32 %v484_v54, %v446_v8  ;;  %1965 = vmatpush.bf16.msrb.mxu0 %v6857_v39  ;;  %v6221_v10 = vor.u32 %v8627_v37, %v6218_v56  ;;  %v343_v6 = vperm.slane %v338_v2, 0  ;;  %v502_v14 = vadd.f32 %v477_v48, %v441_v63  ;;  %v8777_v48 = vld [vmem:[#allocation8 + $0x4b4] sm:$0xf]  ;;  %v6978_v34 = vld [vmem:[#allocation8 + $0x604] sm:$0xf0] }
  0x87   : > { %1991 = vmatpush.bf16.msrb.mxu2 %v6381_v41  ;;  %v6541_v45 = vor.u32 %v8707_v40, %v6538_v62  ;;  %v358_v12 = vperm.slane %v338_v2, 1  ;;  %v419_v13 = vperm.slane %v338_v2, 2  ;;  %v454_v51 = vperm.slane %v338_v2, 3  ;;  %v6504_v54 = vld [vmem:[#allocation8 + $0x238] sm:$0xf] }
  0x88   : > { %v568_v15 = vadd.f32 %v545_v9, %v507_v5  ;;  %v348_v46 = vmul.f32 0.0, %v343_v6  ;;  %v353_v47 = vmul.f32 %v343_v6, %v298_v43  ;;  %v563_v24 = vadd.f32 %v538_v55, %v502_v14  ;;  %1978 = vmatpush.bf16.msrb.mxu1 %v6221_v10  ;;  %v8700_v55 = vld [vmem:[#allocation8 + $0x248] sm:$0xf0]  ;;  %v6798_v39 = vld [vmem:[#allocation8 + $0x49c] sm:$0xf0] }
  0x89   : > { %v363_v25 = vmul.f32 0.0, %v358_v12  ;;  %v368_v31 = vmul.f32 %v358_v12, %v298_v43  ;;  %v424_v42 = vmul.f32 %v419_v13, %v298_v43  ;;  %v459_v53 = vmul.f32 %v454_v51, %v298_v43  ;;  %2004 = vmatpush.bf16.msrb.mxu3 %v6541_v45  ;;  %v8772_v38 = vld [vmem:[#allocation8 + $0x48c] sm:$0xf]  ;;  %v6324_v41 = vld [vmem:[#allocation8 + $0xd0] sm:$0xf] }
  0x8a   : > { %2010 = vmatpush.bf16.msra.mxu0 %v6841_v4  ;;  %v590_v52 = vadd.f32 %v575_v3, %v568_v15  ;;  %v464_v57 = vmul.f32 0.0, %v454_v51  ;;  %v515_v58 = vperm.slane %v338_v2, 4  ;;  %v585_v1 = vadd.f32 %v575_v3, %v563_v24  ;;  %v8655_v4 = vld [vmem:[#allocation8 + $0xe0] sm:$0xf0]  ;;  %v8812_v45 = vld [vmem:[#allocation8 + $0x5cc] sm:$0xf] }
  0x8b   : > { %2036 = vmatpush.bf16.msra.mxu2 %v6365_v26  ;;  %v392_v19 = vrot.slane %v363_v25, 1  ;;  %v393_v44 = vrot.slane %v368_v31, 1  ;;  %v434_v18 = vrot.slane %v424_v42, 2  ;;  %v480_v28 = vrot.slane %v459_v53, 3  ;;  %v6484_v12 = vld [vmem:[#allocation8 + $0x210] sm:$0xf] }
  0x8c   : > { %v489_v29 = vrot.slane %v464_v57, 3  ;;  %v520_v49 = vmul.f32 %v515_v58, %v298_v43  ;;  %v525_v50 = vmul.f32 0.0, %v515_v58  ;;  %v595_v21 = vpack.c.bf16 %v590_v52, %v585_v1  ;;  %v8695_v13 = vld [vmem:[#allocation8 + $0x220] sm:$0xf0]  ;;  %v6778_v24 = vld [vmem:[#allocation8 + $0x474] sm:$0xf0] }
  0x8d   : > { %v394_v23 = vsel %vm379_vm0, %v392_v19, %v393_v44  ;;  %v414_v30 = vadd.f32 %v393_v44, %v353_v47  ;;  %v7001_v56 = vor.u32 %v8822_v59, %v6998_v16  ;;  %v6525_v8 = vor.u32 %v8705_v17, %v6524_v0  ;;  %v6958_v47 = vld [vmem:[#allocation8 + $0x5dc] sm:$0xf0]  ;;  %v8767_v51 = vld [vmem:[#allocation8 + $0x464] sm:$0xf]  ;;  %v6304_v31 = vld [vmem:[#allocation8 + $0xa8] sm:$0xf] }
  0x8e   : > { %v409_v35 = vadd.f32 %v394_v23, %v348_v46  ;;  %v490_v3 = vsel %vm475_vm1, %v480_v28, %v489_v29  ;;  %v541_v2 = vrot.slane %v520_v49, 4  ;;  %v550_v36 = vrot.slane %v525_v50, 4  ;;  %v8650_v42 = vld [vmem:[#allocation8 + $0xb8] sm:$0xf0]  ;;  %v8807_v59 = vld [vmem:[#allocation8 + $0x5a4] sm:$0xf] }
  0x8f   : > { %v9922_v7 = vrot.slane %v595_v21, 3  ;;  %v449_v37 = vadd.f32 %v434_v18, %v414_v30  ;;  %v6821_v63 = vor.u32 %v8777_v48, %v6818_v27  ;;  %v6345_v9 = vor.u32 %v8660_v32, %v6344_v20  ;;  %2049 = vmatpush.bf16.msra.mxu3 %v6525_v8  ;;  %v6464_v16 = vld [vmem:[#allocation8 + $0x1e8] sm:$0xf]  ;;  %v8690_v0 = vld [vmem:[#allocation8 + $0x1f8] sm:$0xf0] }
  0x90   : > { %v444_v40 = vadd.f32 %v434_v18, %v409_v35  ;;  %v551_v62 = vsel %vm536_vm2, %v541_v2, %v550_v36  ;;  %v578_v26 = vperm.slane %v9797_v22, 4  ;;  %v6505_v10 = vor.u32 %v8700_v55, %v6504_v54  ;;  %v6938_v1 = vld [vmem:[#allocation8 + $0x5b4] sm:$0xf0]  ;;  %v8762_v19 = vld [vmem:[#allocation8 + $0x43c] sm:$0xf] }
  0x91   : > { %1927 = vmatmul.bf16.vlgmr.msra.gmra.mxu1 %v9922_v7  ;;  %v510_v5 = vadd.f32 %v490_v3, %v449_v37  ;;  %2011 = vmatpush.bf16.msra.mxu0 %v6821_v63  ;;  %v6981_v6 = vor.u32 %v8817_v33, %v6978_v34  ;;  %v6801_v14 = vor.u32 %v8772_v38, %v6798_v39  ;;  %v6758_v44 = vld [vmem:[#allocation8 + $0x44c] sm:$0xf0]  ;;  %v6284_v48 = vld [vmem:[#allocation8 + $0x80] sm:$0xf]  ;;  %v8645_v27 = vld [vmem:[#allocation8 + $0x90] sm:$0xf0] }
  0x92   : > { %v505_v43 = vadd.f32 %v480_v28, %v444_v40  ;;  %2023 = vmatpush.bf16.msra.mxu1 %v7001_v56  ;;  %2037 = vmatpush.bf16.msra.mxu2 %v6345_v9  ;;  %v6325_v46 = vor.u32 %v8655_v4, %v6324_v41  ;;  %v6485_v52 = vor.u32 %v8695_v13, %v6484_v12  ;;  %v8802_v29 = vld [vmem:[#allocation8 + $0x57c] sm:$0xf]  ;;  %v6444_v21 = vld [vmem:[#allocation8 + $0x1c0] sm:$0xf]  ;;  %v8685_v23 = vld [vmem:[#allocation8 + $0x1d0] sm:$0xf0] }
  0x93   : > { %v571_v15 = vadd.f32 %v551_v62, %v510_v5  ;;  %1992 = vmatmul.bf16.vlgmr.msrb.gmra.mxu2 %v9922_v7  ;;  %2050 = vmatpush.bf16.msra.mxu3 %v6505_v10  ;;  %v6961_v57 = vor.u32 %v8812_v45, %v6958_v47  ;;  %v6781_v58 = vor.u32 %v8767_v51, %v6778_v24  ;;  %v6918_v32 = vld [vmem:[#allocation8 + $0x58c] sm:$0xf0]  ;;  %v8757_v33 = vld [vmem:[#allocation8 + $0x414] sm:$0xf]  ;;  %v6738_v34 = vld [vmem:[#allocation8 + $0x424] sm:$0xf0] }
  0x94   : > { %v566_v25 = vadd.f32 %v541_v2, %v505_v43  ;;  %v6305_v17 = vor.u32 %v8650_v42, %v6304_v31  ;;  %v6465_v28 = vor.u32 %v8690_v0, %v6464_v16  ;;  %v6941_v50 = vor.u32 %v8807_v59, %v6938_v1  ;;  %v6264_v35 = vld [vmem:[#allocation8 + $0x58] sm:$0xf]  ;;  %v8640_v3 = vld [vmem:[#allocation8 + $0x68] sm:$0xf0]  ;;  %v8797_v55 = vld [vmem:[#allocation8 + $0x554] sm:$0xf] }
  0x95   : > { %v593_v22 = vadd.f32 %v578_v26, %v571_v15  ;;  %2012 = vmatpush.bf16.msra.mxu0 %v6801_v14  ;;  %v6761_v20 = vor.u32 %v8762_v19, %v6758_v44  ;;  %v6285_v30 = vor.u32 %v8645_v27, %v6284_v48  ;;  %v6445_v2 = vor.u32 %v8685_v23, %v6444_v21  ;;  %v6424_v37 = vld [vmem:[#allocation8 + $0x198] sm:$0xf]  ;;  %v8680_v56 = vld [vmem:[#allocation8 + $0x1a8] sm:$0xf0]  ;;  %v6898_v38 = vld [vmem:[#allocation8 + $0x564] sm:$0xf0] }
  0x96   : > { %v588_v53 = vadd.f32 %v578_v26, %v566_v25  ;;  %2024 = vmatpush.bf16.msra.mxu1 %v6981_v6  ;;  %2038 = vmatpush.bf16.msra.mxu2 %v6325_v46  ;;  %v6921_v36 = vor.u32 %v8802_v29, %v6918_v32  ;;  %v6741_v54 = vor.u32 %v8757_v33, %v6738_v34  ;;  %v8752_v39 = vld [vmem:[#allocation8 + $0x3ec] sm:$0xf]  ;;  %v6718_v40 = vld [vmem:[#allocation8 + $0x3fc] sm:$0xf0]  ;;  %v6244_v62 = vld [vmem:[#allocation8 + $0x30] sm:$0xf] }
  0x97   : > { %2005 = vmatmul.bf16.vlgmr.msrb.gmra.mxu3 %v9905_v11  ;;  %v6265_v8 = vor.u32 %v8640_v3, %v6264_v35  ;;  %v8635_v63 = vld [vmem:[#allocation8 + $0x40] sm:$0xf0]  ;;  %v6425_v9 = vor.u32 %v8680_v56, %v6424_v37  ;;  %v8792_v41 = vld [vmem:[#allocation8 + $0x52c] sm:$0xf]  ;;  %v6901_v4 = vor.u32 %v8797_v55, %v6898_v38  ;;  %v6721_v5 = vor.u32 %v8752_v39, %v6718_v40  ;;  %v6878_v26 = vld [vmem:[#allocation8 + $0x53c] sm:$0xf0] }
  0x98   : > { %v598_v18 = vpack.c.bf16 %v593_v22, %v588_v53  ;;  %2051 = vmatpush.bf16.msra.mxu3 %v6485_v52  ;;  %v6404_v10 = vld [vmem:[#allocation8 + $0x170] sm:$0xf]  ;;  %v8675_v43 = vld [vmem:[#allocation8 + $0x180] sm:$0xf0]  ;;  %v6245_v6 = vor.u32 %v8635_v63, %v6244_v62  ;;  %v6698_v45 = vld [vmem:[#allocation8 + $0x3d4] sm:$0xf0]  ;;  %v6881_v31 = vor.u32 %v8792_v41, %v6878_v26 }
  0x99   : > { %2013 = vmatpush.bf16.msra.mxu0 %v6781_v58  ;;  %v8747_v14 = vld [vmem:[#allocation8 + $0x3c4] sm:$0xf]  ;;  %v6224_v12 = vld [vmem:[#allocation8 + $0x8] sm:$0xf]  ;;  %v8630_v13 = vld [vmem:[#allocation8 + $0x18] sm:$0xf0]  ;;  %v6405_v47 = vor.u32 %v8675_v43, %v6404_v10 }
  0x9a   : > { %v9929_v49 = vrot.slane %v598_v18, 3  ;;  %2025 = vmatpush.bf16.msra.mxu1 %v6961_v57  ;;  %2039 = vmatpush.bf16.msra.mxu2 %v6305_v17  ;;  %v6684_v15 = vld [vmem:[#allocation8 + $0x3a0] sm:$0xf]  ;;  %v8745_v46 = vld [vmem:[#allocation8 + $0x3b0] sm:$0xf0]  ;;  %v6701_v42 = vor.u32 %v8747_v14, %v6698_v45  ;;  %v6225_v57 = vor.u32 %v8630_v13, %v6224_v12 }
  0x9b   : > { %v7004_v51 = vld [vmem:[#allocation8 + $0x620] sm:$0xf]  ;;  %v8825_v24 = vld [vmem:[#allocation8 + $0x630] sm:$0xf0]  ;;  %v8787_v25 = vld [vmem:[#allocation8 + $0x504] sm:$0xf]  ;;  %v6685_v58 = vor.u32 %v8745_v46, %v6684_v15 }
  0x9c   : > { %1966 = vmatmul.bf16.vlgmr.msrb.gmra.mxu0 %v9929_v49  ;;  %2052 = vmatpush.bf16.msra.mxu3 %v6465_v28  ;;  %v6858_v22 = vld [vmem:[#allocation8 + $0x514] sm:$0xf0]  ;;  %v6384_v52 = vld [vmem:[#allocation8 + $0x148] sm:$0xf]  ;;  %v8670_v53 = vld [vmem:[#allocation8 + $0x158] sm:$0xf0]  ;;  %v7005_v17 = vor.u32 %v8825_v24, %v7004_v51 }
  0x9d   : > { %2014 = vmatpush.bf16.msra.mxu0 %v6761_v20  ;;  %v8663_v59 = vld [vmem:[#allocation8 + $0x124] sm:$0xf]  ;;  %v6366_v16 = vld [vmem:[#allocation8 + $0x134] sm:$0xf0]  ;;  %v8740_v1 = vld [vmem:[#allocation8 + $0x388] sm:$0xf0]  ;;  %v6385_v18 = vor.u32 %v8670_v53, %v6384_v52  ;;  %v6861_v28 = vor.u32 %v8787_v25, %v6858_v22 }
  0x9e   : > { %2026 = vmatpush.bf16.msra.mxu1 %v6941_v50  ;;  %2040 = vmatpush.bf16.msra.mxu2 %v6285_v30  ;;  %v6664_v0 = vld [vmem:[#allocation8 + $0x378] sm:$0xf]  ;;  %v6844_v19 = vld [vmem:[#allocation8 + $0x4e0] sm:$0xf]  ;;  %v8785_v44 = vld [vmem:[#allocation8 + $0x4f0] sm:$0xf0]  ;;  %v6369_v29 = vor.u32 %v8663_v59, %v6366_v16 }
  0x9f   : > { %v6984_v48 = vld [vmem:[#allocation8 + $0x5f8] sm:$0xf]  ;;  %v8820_v27 = vld [vmem:[#allocation8 + $0x608] sm:$0xf0]  ;;  %v6665_v50 = vor.u32 %v8740_v1, %v6664_v0  ;;  %v6845_v20 = vor.u32 %v8785_v44, %v6844_v19  ;;  %v8658_v21 = vld [vmem:[#allocation8 + $0xfc] sm:$0xf] }
  0xa0   : > { %2053 = vmatpush.bf16.msra.mxu3 %v6445_v2  ;;  %v6346_v23 = vld [vmem:[#allocation8 + $0x10c] sm:$0xf0]  ;;  %v6985_v32 = vor.u32 %v8820_v27, %v6984_v48  ;;  %v8735_v33 = vld [vmem:[#allocation8 + $0x360] sm:$0xf0]  ;;  %v6824_v34 = vld [vmem:[#allocation8 + $0x4b8] sm:$0xf] }
  0xa1   : > { %1979 = vmatmul.bf16.vlgmr.msrb.gmra.mxu1 %v9887_v60  ;;  %2015 = vmatpush.bf16.msra.mxu0 %v6741_v54  ;;  %v6644_v30 = vld [vmem:[#allocation8 + $0x350] sm:$0xf]  ;;  %v8780_v35 = vld [vmem:[#allocation8 + $0x4c8] sm:$0xf0]  ;;  %v8815_v2 = vld [vmem:[#allocation8 + $0x5e0] sm:$0xf0] }
  0xa2   : > { %2027 = vmatpush.bf16.msra.mxu1 %v6921_v36  ;;  %2041 = vmatpush.bf16.msra.mxu2 %v6265_v8  ;;  %v6964_v3 = vld [vmem:[#allocation8 + $0x5d0] sm:$0xf]  ;;  %v6349_v36 = vor.u32 %v8658_v21, %v6346_v23  ;;  %v6645_v54 = vor.u32 %v8735_v33, %v6644_v30  ;;  %v6825_v55 = vor.u32 %v8780_v35, %v6824_v34  ;;  %v8653_v37 = vld [vmem:[#allocation8 + $0xd4] sm:$0xf]  ;;  %v6326_v56 = vld [vmem:[#allocation8 + $0xe4] sm:$0xf0] }
  0xa3   : > { %v6624_v8 = vld [vmem:[#allocation8 + $0x328] sm:$0xf]  ;;  %v6965_v38 = vor.u32 %v8815_v2, %v6964_v3  ;;  %v8730_v39 = vld [vmem:[#allocation8 + $0x338] sm:$0xf0]  ;;  %v6804_v40 = vld [vmem:[#allocation8 + $0x490] sm:$0xf]  ;;  %v6329_v41 = vor.u32 %v8653_v37, %v6326_v56 }
  0xa4   : > { %2054 = vmatpush.bf16.msra.mxu3 %v6425_v9  ;;  %v8775_v62 = vld [vmem:[#allocation8 + $0x4a0] sm:$0xf0]  ;;  %v6944_v63 = vld [vmem:[#allocation8 + $0x5a8] sm:$0xf]  ;;  %v8810_v9 = vld [vmem:[#allocation8 + $0x5b8] sm:$0xf0] }
  0xa5   : > { %2016 = vmatpush.bf16.msra.mxu0 %v6721_v5  ;;  %v6805_v5 = vor.u32 %v8775_v62, %v6804_v40  ;;  %v8648_v26 = vld [vmem:[#allocation8 + $0xac] sm:$0xf]  ;;  %v6306_v10 = vld [vmem:[#allocation8 + $0xbc] sm:$0xf0]  ;;  %v8725_v14 = vld [vmem:[#allocation8 + $0x310] sm:$0xf0] }
  0xa6   : > { %2028 = vmatpush.bf16.msra.mxu1 %v6901_v4  ;;  %2042 = vmatpush.bf16.msra.mxu2 %v6245_v6  ;;  %v6625_v4 = vor.u32 %v8730_v39, %v6624_v8  ;;  %v6604_v43 = vld [vmem:[#allocation8 + $0x300] sm:$0xf]  ;;  %v6945_v6 = vor.u32 %v8810_v9, %v6944_v63  ;;  %v6784_v45 = vld [vmem:[#allocation8 + $0x468] sm:$0xf]  ;;  %v8770_v12 = vld [vmem:[#allocation8 + $0x478] sm:$0xf0]  ;;  %v6309_v46 = vor.u32 %v8648_v26, %v6306_v10 }
  0xa7   : > { %v6924_v13 = vld [vmem:[#allocation8 + $0x580] sm:$0xf]  ;;  %v8805_v15 = vld [vmem:[#allocation8 + $0x590] sm:$0xf0]  ;;  %v6785_v51 = vor.u32 %v8770_v12, %v6784_v45  ;;  %v8643_v24 = vld [vmem:[#allocation8 + $0x84] sm:$0xf] }
  0xa8   : > { %2055 = vmatpush.bf16.msra.mxu3 %v6405_v47  ;;  %v6605_v47 = vor.u32 %v8725_v14, %v6604_v43  ;;  %v6286_v25 = vld [vmem:[#allocation8 + $0x94] sm:$0xf0]  ;;  %v8720_v22 = vld [vmem:[#allocation8 + $0x2e8] sm:$0xf0]  ;;  %v6764_v52 = vld [vmem:[#allocation8 + $0x440] sm:$0xf] }
  0xa9   : > { %2017 = vmatpush.bf16.msra.mxu0 %v6701_v42  ;;  %v6925_v42 = vor.u32 %v8805_v15, %v6924_v13  ;;  %v8765_v53 = vld [vmem:[#allocation8 + $0x450] sm:$0xf0]  ;;  %v6289_v59 = vor.u32 %v8643_v24, %v6286_v25  ;;  %v6266_v1 = vld [vmem:[#allocation8 + $0x6c] sm:$0xf0]  ;;  %v6744_v48 = vld [vmem:[#allocation8 + $0x418] sm:$0xf] }
  0xaa   : > { %2029 = vmatpush.bf16.msra.mxu1 %v6881_v31  ;;  %2043 = vmatpush.bf16.msra.mxu2 %v6225_v57  ;;  %v6584_v31 = vld [vmem:[#allocation8 + $0x2d8] sm:$0xf]  ;;  %v6765_v0 = vor.u32 %v8765_v53, %v6764_v52  ;;  %v6564_v19 = vld [vmem:[#allocation8 + $0x2b0] sm:$0xf]  ;;  %v8760_v27 = vld [vmem:[#allocation8 + $0x428] sm:$0xf0] }
  0xab   : > { %v6904_v57 = vld [vmem:[#allocation8 + $0x558] sm:$0xf]  ;;  %v6585_v16 = vor.u32 %v8720_v22, %v6584_v31  ;;  %v6745_v23 = vor.u32 %v8760_v27, %v6744_v48  ;;  %v6246_v30 = vld [vmem:[#allocation8 + $0x44] sm:$0xf0]  ;;  %v8710_v33 = vld [vmem:[#allocation8 + $0x298] sm:$0xf0] }
  0xac   : > { %2056 = vmatpush.bf16.msra.mxu3 %v6385_v18  ;;  %2018 = vmatmul.bf16.vlgmr.msra.gmra.mxu0 %v9915_v61  ;;  %v8715_v18 = vld [vmem:[#allocation8 + $0x2c0] sm:$0xf0]  ;;  %v6724_v35 = vld [vmem:[#allocation8 + $0x3f0] sm:$0xf]  ;;  %v6864_v2 = vld [vmem:[#allocation8 + $0x508] sm:$0xf] }
  0xad   : > { %2062 = vmatpush.bf16.msrb.mxu0 %v6685_v58  ;;  %2044 = vmatmul.bf16.vlgmr.msra.gmra.mxu2 %v9887_v60  ;;  %v8800_v58 = vld [vmem:[#allocation8 + $0x568] sm:$0xf0]  ;;  %v6565_v21 = vor.u32 %v8715_v18, %v6564_v19  ;;  %v8755_v3 = vld [vmem:[#allocation8 + $0x400] sm:$0xf0]  ;;  %v6846_v8 = vld [vmem:[#allocation8 + $0x4f4] sm:$0xf0] }
  0xae   : > { %2088 = vmatpush.bf16.msrb.mxu2 %v7005_v17  ;;  %2030 = vmatpush.bf16.msra.mxu1 %v6861_v28  ;;  %v8638_v17 = vld [vmem:[#allocation8 + $0x5c] sm:$0xf]  ;;  %v6905_v44 = vor.u32 %v8800_v58, %v6904_v57  ;;  %v6884_v28 = vld [vmem:[#allocation8 + $0x530] sm:$0xf]  ;;  %v8783_v56 = vld [vmem:[#allocation8 + $0x4e4] sm:$0xf]  ;;  %v6725_v39 = vor.u32 %v8755_v3, %v6724_v35 }
  0xaf   : > { %2057 = vmatmul.bf16.vlgmr.msra.gmra.mxu3 %v9922_v7  ;;  %v8628_v40 = vld [vmem:[#allocation8 + $0xc] sm:$0xf]  ;;  %v6226_v62 = vld [vmem:[#allocation8 + $0x1c] sm:$0xf0]  ;;  %v8823_v63 = vld [vmem:[#allocation8 + $0x624] sm:$0xf]  ;;  %v6849_v10 = vor.u32 %v8783_v56, %v6846_v8 }
  0xb0   : > { %2101 = vmatpush.bf16.msrb.mxu3 %v6369_v29  ;;  %v8795_v29 = vld [vmem:[#allocation8 + $0x540] sm:$0xf0]  ;;  %v8750_v26 = vld [vmem:[#allocation8 + $0x3d8] sm:$0xf0]  ;;  %v6229_v45 = vor.u32 %v8628_v40, %v6226_v62  ;;  %v6686_v12 = vld [vmem:[#allocation8 + $0x3b4] sm:$0xf0] }
  0xb1   : > { %2063 = vmatpush.bf16.msrb.mxu0 %v6665_v50  ;;  %2031 = vmatmul.bf16.vlgmr.msra.gmra.mxu1 %v9929_v49  ;;  %v6269_v50 = vor.u32 %v8638_v17, %v6266_v1  ;;  %v6885_v34 = vor.u32 %v8795_v29, %v6884_v28  ;;  %v8698_v43 = vld [vmem:[#allocation8 + $0x23c] sm:$0xf]  ;;  %v8743_v14 = vld [vmem:[#allocation8 + $0x3a4] sm:$0xf]  ;;  %v6826_v15 = vld [vmem:[#allocation8 + $0x4cc] sm:$0xf0] }
  0xb2   : > { %2075 = vmatpush.bf16.msrb.mxu1 %v6845_v20  ;;  %2089 = vmatpush.bf16.msrb.mxu2 %v6985_v32  ;;  %v8633_v20 = vld [vmem:[#allocation8 + $0x34] sm:$0xf]  ;;  %v6544_v32 = vld [vmem:[#allocation8 + $0x288] sm:$0xf]  ;;  %v8778_v13 = vld [vmem:[#allocation8 + $0x4bc] sm:$0xf]  ;;  %v6689_v31 = vor.u32 %v8743_v14, %v6686_v12 }
  0xb3   : > { %v6249_v37 = vor.u32 %v8633_v20, %v6246_v30  ;;  %v8818_v24 = vld [vmem:[#allocation8 + $0x5fc] sm:$0xf]  ;;  %v6986_v25 = vld [vmem:[#allocation8 + $0x60c] sm:$0xf0]  ;;  %v8693_v22 = vld [vmem:[#allocation8 + $0x214] sm:$0xf] }
  0xb4   : > { %2102 = vmatpush.bf16.msrb.mxu3 %v6349_v36  ;;  %v8790_v36 = vld [vmem:[#allocation8 + $0x518] sm:$0xf0]  ;;  %v6486_v52 = vld [vmem:[#allocation8 + $0x224] sm:$0xf0]  ;;  %v6666_v57 = vld [vmem:[#allocation8 + $0x38c] sm:$0xf0] }
  0xb5   : > { %2064 = vmatpush.bf16.msrb.mxu0 %v6645_v54  ;;  %v8703_v54 = vld [vmem:[#allocation8 + $0x264] sm:$0xf]  ;;  %v6865_v9 = vor.u32 %v8790_v36, %v6864_v2  ;;  %v8738_v53 = vld [vmem:[#allocation8 + $0x37c] sm:$0xf]  ;;  %v8773_v58 = vld [vmem:[#allocation8 + $0x494] sm:$0xf] }
  0xb6   : > { %2076 = vmatpush.bf16.msrb.mxu1 %v6825_v55  ;;  %2090 = vmatpush.bf16.msrb.mxu2 %v6965_v38  ;;  %v6526_v55 = vld [vmem:[#allocation8 + $0x274] sm:$0xf0]  ;;  %v6545_v38 = vor.u32 %v8710_v33, %v6544_v32  ;;  %v8813_v17 = vld [vmem:[#allocation8 + $0x5d4] sm:$0xf]  ;;  %v6966_v1 = vld [vmem:[#allocation8 + $0x5e4] sm:$0xf0]  ;;  %v6669_v19 = vor.u32 %v8738_v53, %v6666_v57 }
  0xb7   : > { %v8688_v18 = vld [vmem:[#allocation8 + $0x1ec] sm:$0xf]  ;;  %v6466_v48 = vld [vmem:[#allocation8 + $0x1fc] sm:$0xf0]  ;;  %v8733_v27 = vld [vmem:[#allocation8 + $0x354] sm:$0xf]  ;;  %v6969_v20 = vor.u32 %v8813_v17, %v6966_v1 }
  0xb8   : > { %2103 = vmatpush.bf16.msrb.mxu3 %v6329_v41  ;;  %v6529_v41 = vor.u32 %v8703_v54, %v6526_v55  ;;  %v6646_v28 = vld [vmem:[#allocation8 + $0x364] sm:$0xf0]  ;;  %v8768_v29 = vld [vmem:[#allocation8 + $0x46c] sm:$0xf]  ;;  %v6946_v30 = vld [vmem:[#allocation8 + $0x5bc] sm:$0xf0] }
  0xb9   : > { %2065 = vmatpush.bf16.msrb.mxu0 %v6625_v4  ;;  %v7006_v4 = vld [vmem:[#allocation8 + $0x634] sm:$0xf0]  ;;  %v6649_v32 = vor.u32 %v8733_v27, %v6646_v28  ;;  %v8728_v3 = vld [vmem:[#allocation8 + $0x32c] sm:$0xf]  ;;  %v6626_v2 = vld [vmem:[#allocation8 + $0x33c] sm:$0xf0] }
  0xba   : > { %2077 = vmatpush.bf16.msrb.mxu1 %v6805_v5  ;;  %2091 = vmatpush.bf16.msrb.mxu2 %v6945_v6  ;;  %v6704_v5 = vld [vmem:[#allocation8 + $0x3c8] sm:$0xf]  ;;  %v6506_v6 = vld [vmem:[#allocation8 + $0x24c] sm:$0xf0]  ;;  %v6446_v35 = vld [vmem:[#allocation8 + $0x1d4] sm:$0xf0] }
  0xbb   : > { %v8763_v36 = vld [vmem:[#allocation8 + $0x444] sm:$0xf]  ;;  %v6766_v54 = vld [vmem:[#allocation8 + $0x454] sm:$0xf0]  ;;  %v8678_v40 = vld [vmem:[#allocation8 + $0x19c] sm:$0xf] }
  0xbc   : > { %2104 = vmatpush.bf16.msrb.mxu3 %v6309_v46  ;;  %v7009_v46 = vor.u32 %v8823_v63, %v7006_v4  ;;  %v8803_v56 = vld [vmem:[#allocation8 + $0x584] sm:$0xf]  ;;  %v6926_v8 = vld [vmem:[#allocation8 + $0x594] sm:$0xf0]  ;;  %v6426_v62 = vld [vmem:[#allocation8 + $0x1ac] sm:$0xf0] }
  0xbd   : > { %2066 = vmatpush.bf16.msrb.mxu0 %v6605_v47  ;;  %v6705_v47 = vor.u32 %v8750_v26, %v6704_v5  ;;  %v8723_v63 = vld [vmem:[#allocation8 + $0x304] sm:$0xf]  ;;  %v6746_v4 = vld [vmem:[#allocation8 + $0x42c] sm:$0xf0]  ;;  %v6929_v5 = vor.u32 %v8803_v56, %v6926_v8  ;;  %v6429_v26 = vor.u32 %v8678_v40, %v6426_v62  ;;  %v6406_v12 = vld [vmem:[#allocation8 + $0x184] sm:$0xf0] }
  0xbe   : > { %2078 = vmatpush.bf16.msrb.mxu1 %v6785_v51  ;;  %2092 = vmatpush.bf16.msrb.mxu2 %v6925_v42  ;;  %v6509_v51 = vor.u32 %v8698_v43, %v6506_v6  ;;  %v6829_v42 = vor.u32 %v8778_v13, %v6826_v15  ;;  %v6906_v43 = vld [vmem:[#allocation8 + $0x56c] sm:$0xf0]  ;;  %v8718_v13 = vld [vmem:[#allocation8 + $0x2dc] sm:$0xf]  ;;  %v6386_v53 = vld [vmem:[#allocation8 + $0x15c] sm:$0xf0] }
  0xbf   : > { %v6586_v15 = vld [vmem:[#allocation8 + $0x2ec] sm:$0xf0]  ;;  %v8713_v57 = vld [vmem:[#allocation8 + $0x2b4] sm:$0xf]  ;;  %v8666_v1 = vld [vmem:[#allocation8 + $0x138] sm:$0xf0] }
  0xc0   : > { %2105 = vmatpush.bf16.msrb.mxu3 %v6289_v59  ;;  %v6806_v59 = vld [vmem:[#allocation8 + $0x4a4] sm:$0xf0]  ;;  %v6866_v27 = vld [vmem:[#allocation8 + $0x51c] sm:$0xf0]  ;;  %v8781_v8 = vld [vmem:[#allocation8 + $0x4d0] sm:$0xf0] }
  0xc1   : > { %2067 = vmatpush.bf16.msrb.mxu0 %v6585_v16  ;;  %v6989_v16 = vor.u32 %v8818_v24, %v6986_v25  ;;  %v8793_v25 = vld [vmem:[#allocation8 + $0x534] sm:$0xf]  ;;  %v6832_v56 = vld [vmem:[#allocation8 + $0x4c0] sm:$0xf]  ;;  %v6332_v40 = vld [vmem:[#allocation8 + $0xd8] sm:$0xf] }
  0xc2   : > { %2079 = vmatpush.bf16.msrb.mxu1 %v6765_v0  ;;  %2093 = vmatpush.bf16.msrb.mxu2 %v6905_v44  ;;  %v6489_v0 = vor.u32 %v8693_v22, %v6486_v52  ;;  %v6809_v44 = vor.u32 %v8773_v58, %v6806_v59  ;;  %v6589_v22 = vor.u32 %v8718_v13, %v6586_v15  ;;  %v6566_v58 = vld [vmem:[#allocation8 + $0x2c4] sm:$0xf0]  ;;  %v8748_v59 = vld [vmem:[#allocation8 + $0x3cc] sm:$0xf]  ;;  %v6492_v13 = vld [vmem:[#allocation8 + $0x218] sm:$0xf] }
  0xc3   : > { %v6569_v28 = vor.u32 %v8713_v57, %v6566_v58  ;;  %v8656_v62 = vld [vmem:[#allocation8 + $0xe8] sm:$0xf0]  ;;  %v6472_v57 = vld [vmem:[#allocation8 + $0x1f0] sm:$0xf] }
  0xc4   : > { %2106 = vmatpush.bf16.msrb.mxu3 %v6269_v50  ;;  %v6786_v50 = vld [vmem:[#allocation8 + $0x47c] sm:$0xf0] }
  0xc5   : > { %2068 = vmatpush.bf16.msrb.mxu0 %v6565_v21  ;;  %v6469_v21 = vor.u32 %v8688_v18, %v6466_v48  ;;  %v6789_v33 = vor.u32 %v8768_v29, %v6786_v50  ;;  %v8788_v48 = vld [vmem:[#allocation8 + $0x50c] sm:$0xf]  ;;  %v6852_v50 = vld [vmem:[#allocation8 + $0x4e8] sm:$0xf] }
  0xc6   : > { %2080 = vmatpush.bf16.msrb.mxu1 %v6745_v23  ;;  %2094 = vmatpush.bf16.msrb.mxu2 %v6885_v34  ;;  %v8808_v23 = vld [vmem:[#allocation8 + $0x5ac] sm:$0xf]  ;;  %v8683_v34 = vld [vmem:[#allocation8 + $0x1c4] sm:$0xf] }
  0xc7   : > { %v6949_v55 = vor.u32 %v8808_v23, %v6946_v30  ;;  %v8708_v23 = vld [vmem:[#allocation8 + $0x28c] sm:$0xf]  ;;  %v6546_v30 = vld [vmem:[#allocation8 + $0x29c] sm:$0xf0] }
  0xc8   : > { %2107 = vmatpush.bf16.msrb.mxu3 %v6249_v37  ;;  %v6449_v37 = vor.u32 %v8683_v34, %v6446_v35  ;;  %v6352_v34 = vld [vmem:[#allocation8 + $0x100] sm:$0xf]  ;;  %v8661_v35 = vld [vmem:[#allocation8 + $0x110] sm:$0xf0] }
  0xc9   : > { %2069 = vmatpush.bf16.msrb.mxu0 %v6545_v38  ;;  %v6629_v38 = vor.u32 %v8728_v3, %v6626_v2  ;;  %v6532_v3 = vld [vmem:[#allocation8 + $0x268] sm:$0xf]  ;;  %v8706_v2 = vld [vmem:[#allocation8 + $0x278] sm:$0xf0] }
  0xca   : > { %2081 = vmatpush.bf16.msrb.mxu1 %v6725_v39  ;;  %2095 = vmatpush.bf16.msrb.mxu2 %v6865_v9  ;;  %v6769_v39 = vor.u32 %v8763_v36, %v6766_v54  ;;  %v6606_v9 = vld [vmem:[#allocation8 + $0x314] sm:$0xf0]  ;;  %v6672_v54 = vld [vmem:[#allocation8 + $0x380] sm:$0xf] }
  0xcb   : > { %v6609_v6 = vor.u32 %v8723_v63, %v6606_v9  ;;  %v6512_v63 = vld [vmem:[#allocation8 + $0x240] sm:$0xf] }
  0xcc   : > { %2108 = vmatpush.bf16.msrb.mxu3 %v6229_v45  ;;  %2070 = vmatmul.bf16.vlgmr.msrb.gmra.mxu0 %v9905_v11  ;;  %v8673_v45 = vld [vmem:[#allocation8 + $0x174] sm:$0xf] }
  0xcd   : > { %2114 = vmatpush.bf16.msra.mxu0 %v6529_v41  ;;  %2096 = vmatmul.bf16.vlgmr.msrb.gmra.mxu2 %v9929_v49  ;;  %v8758_v41 = vld [vmem:[#allocation8 + $0x41c] sm:$0xf]  ;;  %v6409_v24 = vor.u32 %v8673_v45, %v6406_v12  ;;  %v6312_v45 = vld [vmem:[#allocation8 + $0xb0] sm:$0xf]  ;;  %v8651_v12 = vld [vmem:[#allocation8 + $0xc0] sm:$0xf0] }
  0xce   : > { %2140 = vmatpush.bf16.msra.mxu2 %v6849_v10  ;;  %2082 = vmatpush.bf16.msrb.mxu1 %v6705_v47  ;;  %v8798_v10 = vld [vmem:[#allocation8 + $0x55c] sm:$0xf]  ;;  %v6749_v14 = vor.u32 %v8758_v41, %v6746_v4  ;;  %v6726_v47 = vld [vmem:[#allocation8 + $0x404] sm:$0xf0]  ;;  %v8701_v41 = vld [vmem:[#allocation8 + $0x250] sm:$0xf0]  ;;  %v6833_v4 = vor.u32 %v8781_v8, %v6832_v56 }
  0xcf   : > { %2109 = vmatmul.bf16.vlgmr.msrb.gmra.mxu3 %v9887_v60  ;;  %v6572_v56 = vld [vmem:[#allocation8 + $0x2b8] sm:$0xf]  ;;  %v8716_v8 = vld [vmem:[#allocation8 + $0x2c8] sm:$0xf0] }
  0xd0   : > { %2153 = vmatpush.bf16.msra.mxu3 %v7009_v46  ;;  %v8753_v46 = vld [vmem:[#allocation8 + $0x3f4] sm:$0xf] }
  0xd1   : > { %2115 = vmatpush.bf16.msra.mxu0 %v6509_v51  ;;  %2083 = vmatmul.bf16.vlgmr.msrb.gmra.mxu1 %v9915_v61  ;;  %v6909_v51 = vor.u32 %v8798_v10, %v6906_v43  ;;  %v6729_v52 = vor.u32 %v8753_v46, %v6726_v47  ;;  %v6812_v10 = vld [vmem:[#allocation8 + $0x498] sm:$0xf]  ;;  %v8776_v43 = vld [vmem:[#allocation8 + $0x4a8] sm:$0xf0] }
  0xd2   : > { %2127 = vmatpush.bf16.msra.mxu1 %v6689_v31  ;;  %2141 = vmatpush.bf16.msra.mxu2 %v6829_v42  ;;  %v6886_v31 = vld [vmem:[#allocation8 + $0x544] sm:$0xf0]  ;;  %v8668_v42 = vld [vmem:[#allocation8 + $0x14c] sm:$0xf]  ;;  %v6813_v47 = vor.u32 %v8776_v43, %v6812_v10  ;;  %v8826_v43 = vld [vmem:[#allocation8 + $0x638] sm:$0xf0] }
  0xd3   : > { %v6889_v17 = vor.u32 %v8793_v25, %v6886_v31  ;;  %v6389_v18 = vor.u32 %v8668_v42, %v6386_v53  ;;  %v8696_v46 = vld [vmem:[#allocation8 + $0x228] sm:$0xf0]  ;;  %v6792_v25 = vld [vmem:[#allocation8 + $0x470] sm:$0xf]  ;;  %v8771_v31 = vld [vmem:[#allocation8 + $0x480] sm:$0xf0]  ;;  %v6313_v42 = vor.u32 %v8651_v12, %v6312_v45 }
  0xd4   : > { %2154 = vmatpush.bf16.msra.mxu3 %v6989_v16  ;;  %v6706_v16 = vld [vmem:[#allocation8 + $0x3dc] sm:$0xf0]  ;;  %v8646_v53 = vld [vmem:[#allocation8 + $0x98] sm:$0xf0]  ;;  %v7012_v10 = vld [vmem:[#allocation8 + $0x628] sm:$0xf] }
  0xd5   : > { %2116 = vmatpush.bf16.msra.mxu0 %v6489_v0  ;;  %v6372_v0 = vld [vmem:[#allocation8 + $0x128] sm:$0xf]  ;;  %v6709_v29 = vor.u32 %v8748_v59, %v6706_v16  ;;  %v8691_v59 = vld [vmem:[#allocation8 + $0x200] sm:$0xf0]  ;;  %v6793_v16 = vor.u32 %v8771_v31, %v6792_v25  ;;  %v6712_v12 = vld [vmem:[#allocation8 + $0x3d0] sm:$0xf] }
  0xd6   : > { %2128 = vmatpush.bf16.msra.mxu1 %v6669_v19  ;;  %2142 = vmatpush.bf16.msra.mxu2 %v6809_v44  ;;  %v6692_v19 = vld [vmem:[#allocation8 + $0x3a8] sm:$0xf]  ;;  %v8746_v44 = vld [vmem:[#allocation8 + $0x3b8] sm:$0xf0]  ;;  %v8711_v45 = vld [vmem:[#allocation8 + $0x2a0] sm:$0xf0] }
  0xd7   : > { %v6992_v25 = vld [vmem:[#allocation8 + $0x600] sm:$0xf]  ;;  %v8821_v31 = vld [vmem:[#allocation8 + $0x610] sm:$0xf0] }
  0xd8   : > { %2155 = vmatpush.bf16.msra.mxu3 %v6969_v20  ;;  %v8786_v20 = vld [vmem:[#allocation8 + $0x4f8] sm:$0xf0] }
  0xd9   : > { %2117 = vmatpush.bf16.msra.mxu0 %v6469_v21  ;;  %v6373_v21 = vor.u32 %v8666_v1, %v6372_v0  ;;  %v6853_v36 = vor.u32 %v8786_v20, %v6852_v50  ;;  %v6612_v0 = vld [vmem:[#allocation8 + $0x308] sm:$0xf]  ;;  %v8686_v20 = vld [vmem:[#allocation8 + $0x1d8] sm:$0xf0] }
  0xda   : > { %2129 = vmatpush.bf16.msra.mxu1 %v6649_v32  ;;  %2143 = vmatpush.bf16.msra.mxu2 %v6789_v33  ;;  %v6693_v32 = vor.u32 %v8746_v44, %v6692_v19  ;;  %v6869_v33 = vor.u32 %v8788_v48, %v6866_v27  ;;  %v6772_v19 = vld [vmem:[#allocation8 + $0x448] sm:$0xf]  ;;  %v8766_v44 = vld [vmem:[#allocation8 + $0x458] sm:$0xf0]  ;;  %v6473_v48 = vor.u32 %v8691_v59, %v6472_v57  ;;  %v6272_v27 = vld [vmem:[#allocation8 + $0x60] sm:$0xf] }
  0xdb   : > { %v8904_v59 = vld [vmem:[#allocation8 + $0x8a8] sm:$0xf0] }
  0xdc   : > { %2156 = vmatpush.bf16.msra.mxu3 %v6949_v55  ;;  %v8741_v55 = vld [vmem:[#allocation8 + $0x390] sm:$0xf0] }
  0xdd   : > { %2118 = vmatpush.bf16.msra.mxu0 %v6449_v37  ;;  %v6549_v37 = vor.u32 %v8708_v23, %v6546_v30  ;;  %v6673_v9 = vor.u32 %v8741_v55, %v6672_v54  ;;  %v6592_v23 = vld [vmem:[#allocation8 + $0x2e0] sm:$0xf]  ;;  %v8721_v30 = vld [vmem:[#allocation8 + $0x2f0] sm:$0xf0] }
  0xde   : > { %2130 = vmatpush.bf16.msra.mxu1 %v6629_v38  ;;  %2144 = vmatpush.bf16.msra.mxu2 %v6769_v39  ;;  %v6353_v38 = vor.u32 %v8661_v35, %v6352_v34  ;;  %v6533_v39 = vor.u32 %v8706_v2, %v6532_v3  ;;  %v6252_v3 = vld [vmem:[#allocation8 + $0x38] sm:$0xf]  ;;  %v8636_v2 = vld [vmem:[#allocation8 + $0x48] sm:$0xf0]  ;;  %v6593_v54 = vor.u32 %v8721_v30, %v6592_v23  ;;  %v8681_v55 = vld [vmem:[#allocation8 + $0x1b0] sm:$0xf0] }
  0xe0   : > { %2157 = vmatpush.bf16.msra.mxu3 %v6929_v5  ;;  %v6652_v5 = vld [vmem:[#allocation8 + $0x358] sm:$0xf] }
  0xe1   : > { %2119 = vmatpush.bf16.msra.mxu0 %v6429_v26  ;;  %v8736_v26 = vld [vmem:[#allocation8 + $0x368] sm:$0xf0] }
  0xe2   : > { %2131 = vmatpush.bf16.msra.mxu1 %v6609_v6  ;;  %2145 = vmatpush.bf16.msra.mxu2 %v6749_v14  ;;  %v6333_v6 = vor.u32 %v8656_v62, %v6332_v40  ;;  %v6513_v14 = vor.u32 %v8701_v41, %v6512_v63  ;;  %v6653_v15 = vor.u32 %v8736_v26, %v6652_v5  ;;  %v8756_v40 = vld [vmem:[#allocation8 + $0x408] sm:$0xf0]  ;;  %v6232_v63 = vld [vmem:[#allocation8 + $0x10] sm:$0xf]  ;;  %v8631_v41 = vld [vmem:[#allocation8 + $0x20] sm:$0xf0] }
  0xe3   : > { %v6253_v62 = vor.u32 %v8636_v2, %v6252_v3  ;;  %v8676_v5 = vld [vmem:[#allocation8 + $0x188] sm:$0xf0]  ;;  %v6573_v26 = vor.u32 %v8716_v8, %v6572_v56  ;;  %v8854_v3 = vld [vmem:[#allocation8 + $0x718] sm:$0xf0]  ;;  %v7281_v2 = vld [vmem:[#allocation8 + $0x848] sm:$0xf] }
  0xe4   : > { %2158 = vmatpush.bf16.msra.mxu3 %v6909_v51  ;;  %v6632_v51 = vld [vmem:[#allocation8 + $0x330] sm:$0xf]  ;;  %v8889_v8 = vld [vmem:[#allocation8 + $0x830] sm:$0xf0] }
  0xe5   : > { %2120 = vmatpush.bf16.msra.mxu0 %v6409_v24  ;;  %v8731_v24 = vld [vmem:[#allocation8 + $0x340] sm:$0xf0] }
  0xe6   : > { %2132 = vmatpush.bf16.msra.mxu1 %v6589_v22  ;;  %2146 = vmatpush.bf16.msra.mxu2 %v6729_v52  ;;  %v6493_v22 = vor.u32 %v8696_v46, %v6492_v13  ;;  %v6292_v52 = vld [vmem:[#allocation8 + $0x88] sm:$0xf]  ;;  %v6633_v58 = vor.u32 %v8731_v24, %v6632_v51  ;;  %v8751_v13 = vld [vmem:[#allocation8 + $0x3e0] sm:$0xf0]  ;;  %v6392_v51 = vld [vmem:[#allocation8 + $0x150] sm:$0xf] }
  0xe7   : > { %v8671_v24 = vld [vmem:[#allocation8 + $0x160] sm:$0xf0] }
  0xe8   : > { %2159 = vmatpush.bf16.msra.mxu3 %v6889_v17  ;;  %v8726_v17 = vld [vmem:[#allocation8 + $0x318] sm:$0xf0] }
  0xe9   : > { %2121 = vmatpush.bf16.msra.mxu0 %v6389_v18  ;;  %v6293_v18 = vor.u32 %v8646_v53, %v6292_v52  ;;  %v6613_v50 = vor.u32 %v8726_v17, %v6612_v0  ;;  %v6713_v52 = vor.u32 %v8751_v13, %v6712_v12  ;;  %v8864_v53 = vld [vmem:[#allocation8 + $0x768] sm:$0xf0]  ;;  %v9949_v0 = vld [vmem:[#allocation9] sm:$0x1f]  ;;  %v6393_v17 = vor.u32 %v8671_v24, %v6392_v51 }
  0xea   : > { %2133 = vmatpush.bf16.msra.mxu1 %v6569_v28  ;;  %2147 = vmatpush.bf16.msra.mxu2 %v6709_v29  ;;  %v8641_v28 = vld [vmem:[#allocation8 + $0x70] sm:$0xf0]  ;;  %v6452_v29 = vld [vmem:[#allocation8 + $0x1c8] sm:$0xf] }
  0xeb   : > { %v6273_v34 = vor.u32 %v8641_v28, %v6272_v27  ;;  %v6453_v35 = vor.u32 %v8686_v20, %v6452_v29  ;;  %v7141_v27 = vld [vmem:[#allocation8 + $0x730] sm:$0xf]  ;;  %v8859_v28 = vld [vmem:[#allocation8 + $0x740] sm:$0xf0] }
  0xec   : > { %2160 = vmatpush.bf16.msra.mxu3 %v6869_v33  ;;  %2122 = vmatmul.bf16.vlgmr.msra.gmra.mxu0 %v9922_v7  ;;  %v8761_v33 = vld [vmem:[#allocation8 + $0x430] sm:$0xf0]  ;;  %v7301_v29 = vld [vmem:[#allocation8 + $0x870] sm:$0xf]  ;;  %v7142_v30 = vor.u32 %v8859_v28, %v7141_v27  ;;  %v8791_v27 = vld [vmem:[#allocation8 + $0x520] sm:$0xf0] }
  0xed   : > { %2166 = vmatpush.bf16.msrb.mxu0 %v6373_v21  ;;  %2148 = vmatmul.bf16.vlgmr.msra.gmra.mxu2 %v9915_v61  ;;  %v6773_v21 = vor.u32 %v8766_v44, %v6772_v19  ;;  %v6993_v19 = vor.u32 %v8821_v31, %v6992_v25  ;;  %v6892_v25 = vld [vmem:[#allocation8 + $0x538] sm:$0xf]  ;;  %v8796_v31 = vld [vmem:[#allocation8 + $0x548] sm:$0xf0] }
  0xee   : > { %2192 = vmatpush.bf16.msrb.mxu2 %v6693_v32  ;;  %2134 = vmatpush.bf16.msra.mxu1 %v6549_v37  ;;  %v6752_v32 = vld [vmem:[#allocation8 + $0x420] sm:$0xf] }
  0xef   : > { %2161 = vmatmul.bf16.vlgmr.msra.gmra.mxu3 %v9929_v49  ;;  %v6753_v37 = vor.u32 %v8761_v33, %v6752_v32  ;;  %v6952_v32 = vld [vmem:[#allocation8 + $0x5b0] sm:$0xf]  ;;  %v8811_v33 = vld [vmem:[#allocation8 + $0x5c0] sm:$0xf0] }
  0xf0   : > { %2205 = vmatpush.bf16.msrb.mxu3 %v6853_v36  ;;  %v6432_v36 = vld [vmem:[#allocation8 + $0x1a0] sm:$0xf]  ;;  %v6953_v56 = vor.u32 %v8811_v33, %v6952_v32  ;;  %v7201_v33 = vld [vmem:[#allocation8 + $0x7a8] sm:$0xf] }
  0xf1   : > { %2167 = vmatpush.bf16.msrb.mxu0 %v6353_v38  ;;  %2135 = vmatmul.bf16.vlgmr.msra.gmra.mxu1 %v9905_v11  ;;  %v9945_v1 = vpop.f32.mrf.mxu0 }
  0xf2   : > { %2179 = vmatpush.bf16.msrb.mxu1 %v6533_v39  ;;  %2193 = vmatpush.bf16.msrb.mxu2 %v6673_v9  ;;  %v6732_v39 = vld [vmem:[#allocation8 + $0x3f8] sm:$0xf]  ;;  %v6433_v9 = vor.u32 %v8681_v55, %v6432_v36  ;;  %v8894_v36 = vld [vmem:[#allocation8 + $0x858] sm:$0xf0]  ;;  %v7261_v55 = vld [vmem:[#allocation8 + $0x820] sm:$0xf] }
  0xf4   : > { %2206 = vmatpush.bf16.msrb.mxu3 %v6833_v4  ;;  %v6412_v4 = vld [vmem:[#allocation8 + $0x178] sm:$0xf] }
  0xf5   : > { %2168 = vmatpush.bf16.msrb.mxu0 %v6333_v6  ;;  %v6733_v6 = vor.u32 %v8756_v40, %v6732_v39  ;;  %v6413_v46 = vor.u32 %v8676_v5, %v6412_v4  ;;  %v8806_v39 = vld [vmem:[#allocation8 + $0x598] sm:$0xf0]  ;;  %v7101_v40 = vld [vmem:[#allocation8 + $0x6e0] sm:$0xf]  ;;  %v8801_v5 = vld [vmem:[#allocation8 + $0x570] sm:$0xf0] }
  0xf6   : > { %2180 = vmatpush.bf16.msrb.mxu1 %v6513_v14  ;;  %2194 = vmatpush.bf16.msrb.mxu2 %v6653_v15  ;;  %v6552_v14 = vld [vmem:[#allocation8 + $0x290] sm:$0xf]  ;;  %v6233_v15 = vor.u32 %v8631_v41, %v6232_v63  ;;  %v6912_v41 = vld [vmem:[#allocation8 + $0x560] sm:$0xf] }
  0xf8   : > { %2207 = vmatpush.bf16.msrb.mxu3 %v6813_v47  ;;  %v7013_v47 = vor.u32 %v8826_v43, %v7012_v10  ;;  %v8844_v10 = vld [vmem:[#allocation8 + $0x6c8] sm:$0xf0] }
  0xf9   : > { %2169 = vmatpush.bf16.msrb.mxu0 %v6313_v42  ;;  %v1917_v38 = vpop.f32.mrf.mxu0  ;;  %v7161_v42 = vld [vmem:[#allocation8 + $0x758] sm:$0xf] }
  0xfa   : > { %2181 = vmatpush.bf16.msrb.mxu1 %v6493_v22  ;;  %2195 = vmatpush.bf16.msrb.mxu2 %v6633_v58  ;;  %v6553_v22 = vor.u32 %v8711_v45, %v6552_v14  ;;  %v7321_v58 = vld [vmem:[#allocation8 + $0x898] sm:$0xf]  ;;  %v7162_v44 = vor.u32 %v8864_v53, %v7161_v42  ;;  %v8884_v14 = vld [vmem:[#allocation8 + $0x808] sm:$0xf0]  ;;  %v7061_v42 = vld [vmem:[#allocation8 + $0x690] sm:$0xf] }
  0xfb   : > { %v7481_v45 = vld [vmem:[#allocation8 + $0x9d8] sm:$0xf]  ;;  %v8879_v53 = vld [vmem:[#allocation8 + $0x7e0] sm:$0xf0] }
  0xfc   : > { %2208 = vmatpush.bf16.msrb.mxu3 %v6793_v16  ;;  %v7322_v16 = vor.u32 %v8904_v59, %v7321_v58 }
  0xfd   : > { %2170 = vmatpush.bf16.msrb.mxu0 %v6293_v18  ;;  %v6972_v18 = vld [vmem:[#allocation8 + $0x5d8] sm:$0xf] }
  0xfe   : > { %2182 = vmatpush.bf16.msrb.mxu1 %v6473_v48  ;;  %2196 = vmatpush.bf16.msrb.mxu2 %v6613_v50  ;;  %v8816_v48 = vld [vmem:[#allocation8 + $0x5e8] sm:$0xf0]  ;;  %v8899_v50 = vld [vmem:[#allocation8 + $0x880] sm:$0xf0] }
  0xff   : > { %v7302_v20 = vor.u32 %v8899_v50, %v7301_v29  ;;  %v6973_v23 = vor.u32 %v8816_v48, %v6972_v18  ;;  %v6893_v18 = vor.u32 %v8796_v31, %v6892_v25  ;;  %v6872_v48 = vld [vmem:[#allocation8 + $0x510] sm:$0xf]  ;;  %v7041_v50 = vld [vmem:[#allocation8 + $0x668] sm:$0xf] }
 0x100   : > { %2209 = vmatpush.bf16.msrb.mxu3 %v6773_v21  ;;  %v841_v21 = vperm.slane %v9949_v0, 0 }
 0x101   : > { %2171 = vmatpush.bf16.msrb.mxu0 %v6273_v34  ;;  %v9947_v57 = vpop.f32.mrf.mxu2  ;;  %v7121_v34 = vld [vmem:[#allocation8 + $0x708] sm:$0xf] }
 0x102   : > { %2183 = vmatpush.bf16.msrb.mxu1 %v6453_v35  ;;  %2197 = vmatpush.bf16.msrb.mxu2 %v6593_v54  ;;  %v7282_v54 = vor.u32 %v8894_v36, %v7281_v2  ;;  %v7122_v38 = vor.u32 %v8854_v3, %v7121_v34  ;;  %v8874_v34 = vld [vmem:[#allocation8 + $0x7b8] sm:$0xf0] }
 0x103   : > { %v7202_v2 = vor.u32 %v8874_v34, %v7201_v33  ;;  %v8852_v34 = vld [vmem:[#allocation8 + $0x70c] sm:$0xf] }
 0x104   : > { %2210 = vmatpush.bf16.msrb.mxu3 %v6753_v37  ;;  %v1916_v37 = vadd.f32 %v9945_v1, %v841_v21  ;;  %v8939_v21 = vld [vmem:[#allocation8 + $0x9c0] sm:$0xf0] }
 0x105   : > { %2172 = vmatpush.bf16.msrb.mxu0 %v6253_v62  ;;  %v8849_v62 = vld [vmem:[#allocation8 + $0x6f0] sm:$0xf0] }
 0x106   : > { %2184 = vmatpush.bf16.msrb.mxu1 %v6433_v9  ;;  %2198 = vmatpush.bf16.msrb.mxu2 %v6573_v26  ;;  %v7102_v4 = vor.u32 %v8849_v62, %v7101_v40  ;;  %v7081_v26 = vld [vmem:[#allocation8 + $0x6b8] sm:$0xf]  ;;  %v7441_v62 = vld [vmem:[#allocation8 + $0x988] sm:$0xf] }
 0x107   : > { %v7082_v24 = vor.u32 %v8844_v10, %v7081_v26 }
 0x108   : > { %2211 = vmatpush.bf16.msrb.mxu3 %v6733_v6  ;;  %v7241_v6 = vld [vmem:[#allocation8 + $0x7f8] sm:$0xf] }
 0x109   : > { %2173 = vmatpush.bf16.msrb.mxu0 %v6233_v15  ;;  %v1954_v35 = vpop.f32.mrf.mxu3  ;;  %v7242_v15 = vor.u32 %v8884_v14, %v7241_v6 }
 0x10a   : > { %2185 = vmatpush.bf16.msrb.mxu1 %v6413_v46  ;;  %2199 = vmatpush.bf16.msrb.mxu2 %v6553_v22  ;;  %v8944_v46 = vld [vmem:[#allocation8 + $0x9e8] sm:$0xf0]  ;;  %v8839_v22 = vld [vmem:[#allocation8 + $0x6a0] sm:$0xf0] }
 0x10b   : > { %v7482_v51 = vor.u32 %v8944_v46, %v7481_v45  ;;  %v7062_v29 = vor.u32 %v8839_v22, %v7061_v42  ;;  %v8862_v45 = vld [vmem:[#allocation8 + $0x75c] sm:$0xf]  ;;  %v7421_v42 = vld [vmem:[#allocation8 + $0x960] sm:$0xf]  ;;  %v8929_v22 = vld [vmem:[#allocation8 + $0x970] sm:$0xf0] }
 0x10c   : > { %2212 = vmatpush.bf16.msrb.mxu3 %v6713_v52  ;;  %2174 = vmatmul.bf16.vlgmr.msrb.gmra.mxu0 %v9887_v60  ;;  %v1943_v60 = vpop.f32.mrf.mxu2  ;;  %v7221_v52 = vld [vmem:[#allocation8 + $0x7d0] sm:$0xf] }
 0x10d   : > { %2218 = vmatpush.bf16.msra.mxu0 %v7013_v47  ;;  %2200 = vmatmul.bf16.vlgmr.msrb.gmra.mxu2 %v9905_v11  ;;  %v6932_v11 = vld [vmem:[#allocation8 + $0x588] sm:$0xf]  ;;  %v6913_v47 = vor.u32 %v8801_v5, %v6912_v41  ;;  %v8869_v5 = vld [vmem:[#allocation8 + $0x790] sm:$0xf0] }
 0x10e   : > { %3842 = vmatpush.bf16.msra.mxu2 %v7322_v16  ;;  %2186 = vmatpush.bf16.msrb.mxu1 %v6393_v17  ;;  %v1928_v63 = vpop.f32.mrf.mxu1  ;;  %v6933_v1 = vor.u32 %v8806_v39, %v6932_v11  ;;  %v7222_v17 = vor.u32 %v8879_v53, %v7221_v52  ;;  %v8829_v11 = vld [vmem:[#allocation8 + $0x650] sm:$0xf0] }
 0x10f   : > { %2213 = vmatmul.bf16.vlgmr.msrb.gmra.mxu3 %v9915_v61  ;;  %v7262_v61 = vor.u32 %v8889_v8, %v7261_v55  ;;  %v1929_v9 = vadd.f32 %v1928_v63, %v1916_v37  ;;  %v6873_v55 = vor.u32 %v8791_v27, %v6872_v48  ;;  %v7401_v48 = vld [vmem:[#allocation8 + $0x938] sm:$0xf]  ;;  %v8924_v27 = vld [vmem:[#allocation8 + $0x948] sm:$0xf0] }
 0x110   : > { %3855 = vmatpush.bf16.msra.mxu3 %v7482_v51  ;;  %v7163_v51 = vld [vmem:[#allocation8 + $0x76c] sm:$0xf0]  ;;  %v7402_v33 = vor.u32 %v8924_v27, %v7401_v48 }
 0x111   : > { %2219 = vmatpush.bf16.msra.mxu0 %v6993_v19  ;;  %2187 = vmatmul.bf16.vlgmr.msrb.gmra.mxu1 %v9922_v7  ;;  %v9960_v7 = vld [vmem:[%s10321_s1 + $0x28] sm:$0x1f]  ;;  %v1956_v43 = vpop.f32.mrf.mxu3  ;;  %v1942_v12 = vadd.f32 %v9947_v57, %v1929_v9 }
 0x112   : > { %3829 = vmatpush.bf16.msra.mxu1 %v7162_v44  ;;  %3843 = vmatpush.bf16.msra.mxu2 %v7302_v20  ;;  %v2277_v13 = vperm.slane %v9960_v7, 1  ;;  %v2262_v57 = vperm.slane %v9960_v7, 0  ;;  %v2372_v19 = vperm.slane %v9960_v7, 3  ;;  %v2432_v44 = vperm.slane %v9960_v7, 4  ;;  %v7461_v20 = vld [vmem:[#allocation8 + $0x9b0] sm:$0xf] }
 0x113   : > { %v1955_v58 = vadd.f32 %v1954_v35, %v1942_v12  ;;  %v7462_v32 = vor.u32 %v8939_v21, %v7461_v20  ;;  %v2337_v3 = vperm.slane %v9960_v7, 2 }
 0x114   : > { %v9965_v59 = vmul.f32 0.0, %v2277_v13  ;;  %v2382_v36 = vmul.f32 0.0, %v2372_v19  ;;  %v2442_v40 = vmul.f32 0.0, %v2432_v44 }
 0x115   : > { %2220 = vmatpush.bf16.msra.mxu0 %v6973_v23  ;;  %3856 = vmatpush.bf16.msra.mxu3 %v7462_v32 }
 0x116   : > { %3830 = vmatpush.bf16.msra.mxu1 %v7142_v30  ;;  %3844 = vmatpush.bf16.msra.mxu2 %v7282_v54  ;;  %v1930_v16 = vpop.f32.mrf.mxu1  ;;  %v9969_v28 = vpop.f32.mrf.mxu2  ;;  %v8834_v30 = vld [vmem:[#allocation8 + $0x678] sm:$0xf0]  ;;  %v842_v54 = vperm.slane %v9949_v0, 1  ;;  %v2302_v39 = vrot.slane %v9965_v59, 1  ;;  %v2402_v26 = vrot.slane %v2382_v36, 3 }
 0x117   : > { %v7042_v8 = vor.u32 %v8834_v30, %v7041_v50  ;;  %v7143_v59 = vld [vmem:[#allocation8 + $0x744] sm:$0xf0]  ;;  %v7422_v50 = vor.u32 %v8929_v22, %v7421_v42  ;;  %v7381_v36 = vld [vmem:[#allocation8 + $0x910] sm:$0xf] }
 0x119   : > { %2221 = vmatpush.bf16.msra.mxu0 %v6953_v56  ;;  %v1967_v23 = vpop.f32.mrf.mxu0  ;;  %v2267_v56 = vmul.f32 0.0, %v2262_v57 }
 0x11a   : > { %3831 = vmatpush.bf16.msra.mxu1 %v7122_v38  ;;  %3845 = vmatpush.bf16.msra.mxu2 %v7262_v61  ;;  %v1968_v35 = vadd.f32 %v1967_v23, %v1955_v58  ;;  %v9972_v60 = vpop.f32.mrf.mxu3  ;;  %v7021_v38 = vld [vmem:[#allocation8 + $0x640] sm:$0xf]  ;;  %v8934_v61 = vld [vmem:[#allocation8 + $0x998] sm:$0xf0]  ;;  %v9978_v58 = vld [vmem:[#allocation6 + $0x5] sm:$0x1f] }
 0x11b   : > { %v7022_v6 = vor.u32 %v8829_v11, %v7021_v38  ;;  %v2495_v21 = vperm.slane %v9978_v58, 0  ;;  %v7641_v38 = vld [vmem:[#allocation8 + $0xb18] sm:$0xf]  ;;  %v8984_v11 = vld [vmem:[#allocation8 + $0xb28] sm:$0xf0] }
 0x11c   : > { %v2231_v37 = vmax.f32 %v1968_v35, 0.0  ;;  %v7123_v35 = vld [vmem:[#allocation8 + $0x71c] sm:$0xf0] }
 0x11d   : > { %2222 = vmatpush.bf16.msra.mxu0 %v6933_v1 }
 0x11e   : > { %3832 = vmatpush.bf16.msra.mxu1 %v7102_v4  ;;  %3846 = vmatpush.bf16.msra.mxu2 %v7242_v15  ;;  %v2272_v63 = vmul.f32 %v2262_v57, %v2231_v37  ;;  %v2287_v9 = vmul.f32 %v2277_v13, %v2231_v37  ;;  %v2342_v7 = vmul.f32 %v2337_v3, %v2231_v37  ;;  %v1980_v41 = vpop.f32.mrf.mxu1  ;;  %v7181_v4 = vld [vmem:[#allocation8 + $0x780] sm:$0xf]  ;;  %v1995_v14 = vpop.f32.mrf.mxu2  ;;  %v2462_v13 = vrot.slane %v2442_v40, 4  ;;  %v8857_v57 = vld [vmem:[#allocation8 + $0x734] sm:$0xf] }
 0x11f   : > { %v2377_v1 = vmul.f32 %v2372_v19, %v2231_v37  ;;  %v2437_v10 = vmul.f32 %v2432_v44, %v2231_v37  ;;  %v1981_v43 = vadd.f32 %v1980_v41, %v842_v54  ;;  %v7182_v31 = vor.u32 %v8869_v5, %v7181_v4  ;;  %v8919_v54 = vld [vmem:[#allocation8 + $0x920] sm:$0xf0]  ;;  %v8914_v41 = vld [vmem:[#allocation8 + $0x8f8] sm:$0xf0] }
 0x120   : > { %v2303_v12 = vrot.slane %v2287_v9, 1  ;;  %v2352_v15 = vrot.slane %v2342_v7, 2  ;;  %v7146_v23 = vor.u32 %v8857_v57, %v7143_v59  ;;  %v7642_v9 = vor.u32 %v8984_v11, %v7641_v38  ;;  %v8842_v14 = vld [vmem:[#allocation8 + $0x6bc] sm:$0xf]  ;;  %v7621_v38 = vld [vmem:[#allocation8 + $0xaf0] sm:$0xf] }
 0x121   : > { %2223 = vmatpush.bf16.msra.mxu0 %v6913_v47  ;;  %v2397_v46 = vrot.slane %v2377_v1, 3  ;;  %v7442_v47 = vor.u32 %v8934_v61, %v7441_v62  ;;  %v1969_v25 = vpop.f32.mrf.mxu0  ;;  %v1994_v44 = vadd.f32 %v9969_v28, %v1981_v43  ;;  %v9987_v28 = vld [vmem:[%s10321_s1 + $0x30] sm:$0x1f]  ;;  %v7382_v62 = vor.u32 %v8919_v54, %v7381_v36  ;;  %v8847_v61 = vld [vmem:[#allocation8 + $0x6e4] sm:$0xf] }
 0x122   : > { %3833 = vmatpush.bf16.msra.mxu1 %v7082_v24  ;;  %3847 = vmatpush.bf16.msra.mxu2 %v7222_v17  ;;  %v2457_v24 = vrot.slane %v2437_v10, 4  ;;  %v2304_v52 = vsel %vm379_vm0, %v2302_v39, %v2303_v12  ;;  %v2332_v53 = vadd.f32 %v2303_v12, %v2272_v63  ;;  %v2008_v16 = vpop.f32.mrf.mxu3  ;;  %v7103_v63 = vld [vmem:[#allocation8 + $0x6f4] sm:$0xf0]  ;;  %v2263_v4 = vperm.slane %v9987_v28, 0  ;;  %v8902_v25 = vld [vmem:[#allocation8 + $0x89c] sm:$0xf] }
 0x123   : > { %3857 = vmatpush.bf16.msra.mxu3 %v7442_v47  ;;  %v2327_v17 = vadd.f32 %v2304_v52, %v2267_v56  ;;  %v2403_v19 = vsel %vm475_vm1, %v2397_v46, %v2402_v26  ;;  %v2278_v56 = vperm.slane %v9987_v28, 1  ;;  %v2373_v5 = vperm.slane %v9987_v28, 3  ;;  %v8909_v47 = vld [vmem:[#allocation8 + $0x8d0] sm:$0xf0]  ;;  %v8832_v54 = vld [vmem:[#allocation8 + $0x66c] sm:$0xf] }
 0x124   : > { %v2433_v43 = vperm.slane %v9987_v28, 4  ;;  %v8979_v11 = vld [vmem:[#allocation8 + $0xb00] sm:$0xf0] }
 0x125   : > { %2224 = vmatpush.bf16.msra.mxu0 %v6893_v18  ;;  %v7166_v18 = vor.u32 %v8862_v45, %v7163_v51  ;;  %v2362_v20 = vadd.f32 %v2352_v15, %v2327_v17  ;;  %v2283_v10 = vmul.f32 0.0, %v2278_v56  ;;  %v2383_v42 = vmul.f32 0.0, %v2373_v5 }
 0x126   : > { %3834 = vmatpush.bf16.msra.mxu1 %v7062_v29  ;;  %3848 = vmatpush.bf16.msra.mxu2 %v7202_v2  ;;  %v2367_v29 = vadd.f32 %v2352_v15, %v2332_v53  ;;  %v1982_v32 = vpop.f32.mrf.mxu1  ;;  %v2007_v2 = vadd.f32 %v9972_v60, %v1994_v44  ;;  %v7361_v60 = vld [vmem:[#allocation8 + $0x8e8] sm:$0xf]  ;;  %v7083_v15 = vld [vmem:[#allocation8 + $0x6cc] sm:$0xf0]  ;;  %v2443_v57 = vmul.f32 0.0, %v2433_v43 }
 0x127   : > { %3858 = vmatpush.bf16.msra.mxu3 %v7422_v50  ;;  %v2422_v3 = vadd.f32 %v2397_v46, %v2362_v20  ;;  %v7362_v12 = vor.u32 %v8914_v41, %v7361_v60  ;;  %v7341_v46 = vld [vmem:[#allocation8 + $0x8c0] sm:$0xf]  ;;  %v7086_v52 = vor.u32 %v8842_v14, %v7083_v15  ;;  %v2305_v53 = vrot.slane %v2283_v10, 1  ;;  %v7063_v44 = vld [vmem:[#allocation8 + $0x6a4] sm:$0xf0] }
 0x128   : > { %v2427_v30 = vadd.f32 %v2403_v19, %v2367_v29  ;;  %v7342_v16 = vor.u32 %v8909_v47, %v7341_v46  ;;  %v8837_v19 = vld [vmem:[#allocation8 + $0x694] sm:$0xf]  ;;  %v2268_v20 = vmul.f32 0.0, %v2263_v4  ;;  %v7303_v32 = vld [vmem:[#allocation8 + $0x884] sm:$0xf0]  ;;  %v843_v46 = vperm.slane %v9949_v0, 2 }
 0x129   : > { %2225 = vmatpush.bf16.msra.mxu0 %v6873_v55  ;;  %v2482_v37 = vadd.f32 %v2457_v24, %v2422_v3  ;;  %v2019_v40 = vpop.f32.mrf.mxu0  ;;  %v8827_v41 = vld [vmem:[#allocation8 + $0x644] sm:$0xf] }
 0x12a   : > { %3835 = vmatpush.bf16.msra.mxu1 %v7042_v8  ;;  %3849 = vmatpush.bf16.msra.mxu2 %v7182_v31  ;;  %v7126_v8 = vor.u32 %v8852_v34, %v7123_v35  ;;  %v2020_v1 = vadd.f32 %v2019_v40, %v2007_v2  ;;  %v7323_v31 = vld [vmem:[#allocation8 + $0x8ac] sm:$0xf0]  ;;  %v7066_v35 = vor.u32 %v8837_v19, %v7063_v44  ;;  %v2464_v2 = vrot.slane %v2443_v57, 4  ;;  %v7561_v19 = vld [vmem:[#allocation8 + $0xa78] sm:$0xf] }
 0x12b   : > { %3859 = vmatpush.bf16.msra.mxu3 %v7402_v33  ;;  %v2505_v7 = vadd.f32 %v2495_v21, %v2482_v37  ;;  %v7326_v17 = vor.u32 %v8902_v25, %v7323_v31  ;;  %v7263_v25 = vld [vmem:[#allocation8 + $0x834] sm:$0xf0]  ;;  %v8964_v44 = vld [vmem:[#allocation8 + $0xa88] sm:$0xf0] }
 0x12c   : > { %2226 = vmatmul.bf16.vlgmr.msra.gmra.mxu0 %v9929_v49  ;;  %v2463_v49 = vsel %vm536_vm2, %v2457_v24, %v2462_v13  ;;  %v2338_v13 = vperm.slane %v9987_v28, 2 }
 0x12d   : > { %v2487_v55 = vadd.f32 %v2463_v49, %v2427_v30  ;;  %3868 = vmatpush.bf16.msrb.mxu0 %v7642_v9  ;;  %v2404_v49 = vrot.slane %v2383_v42, 3  ;;  %v8897_v30 = vld [vmem:[#allocation8 + $0x874] sm:$0xf]  ;;  %v8892_v9 = vld [vmem:[#allocation8 + $0x84c] sm:$0xf] }
 0x12e   : > { %3836 = vmatpush.bf16.msra.mxu1 %v7022_v6  ;;  %3894 = vmatpush.bf16.msrb.mxu2 %v7166_v18  ;;  %v7106_v6 = vor.u32 %v8847_v61, %v7103_v63  ;;  %v2032_v45 = vpop.f32.mrf.mxu1  ;;  %v7622_v63 = vor.u32 %v8979_v11, %v7621_v38  ;;  %v7581_v42 = vld [vmem:[#allocation8 + $0xaa0] sm:$0xf]  ;;  %v8867_v11 = vld [vmem:[#allocation8 + $0x784] sm:$0xf] }
 0x12f   : > { %v2510_v39 = vadd.f32 %v2495_v21, %v2487_v55  ;;  %3860 = vmatpush.bf16.msra.mxu3 %v7382_v62  ;;  %v2033_v24 = vadd.f32 %v2032_v45, %v2020_v1  ;;  %v7043_v55 = vld [vmem:[#allocation8 + $0x67c] sm:$0xf0] }
 0x130   : > { %v7046_v61 = vor.u32 %v8832_v54, %v7043_v55  ;;  %v8954_v54 = vld [vmem:[#allocation8 + $0xa38] sm:$0xf0] }
 0x131   : > { %v2515_v26 = vpack.c.bf16 %v2510_v39, %v2505_v7  ;;  %v2232_v22 = vmax.f32 %v2033_v24, 0.0  ;;  %v2021_v59 = vpop.f32.mrf.mxu0  ;;  %v7283_v7 = vld [vmem:[#allocation8 + $0x85c] sm:$0xf0]  ;;  %3869 = vmatpush.bf16.msrb.mxu0 %v7622_v63 }
 0x132   : > { %3895 = vmatpush.bf16.msrb.mxu2 %v7146_v23  ;;  %v9998_v50 = vpop.f32.mrf.mxu3  ;;  %v2045_v23 = vpop.f32.mrf.mxu2  ;;  %v7286_v10 = vor.u32 %v8892_v9, %v7283_v7  ;;  %v8882_v59 = vld [vmem:[#allocation8 + $0x7fc] sm:$0xf] }
 0x133   : > { %v9994_v51 = vrot.slane %v2515_v26, 3  ;;  %3861 = vmatpush.bf16.msra.mxu3 %v7362_v12  ;;  %v2273_v18 = vmul.f32 %v2263_v4, %v2232_v22  ;;  %v2288_v48 = vmul.f32 %v2278_v56, %v2232_v22  ;;  %v2343_v27 = vmul.f32 %v2338_v13, %v2232_v22  ;;  %v7023_v4 = vld [vmem:[#allocation8 + $0x654] sm:$0xf0]  ;;  %v8887_v13 = vld [vmem:[#allocation8 + $0x824] sm:$0xf] }
 0x134   : > { %v2378_v29 = vmul.f32 %v2373_v5, %v2232_v22  ;;  %v2438_v21 = vmul.f32 %v2433_v43, %v2232_v22  ;;  %v2496_v26 = vperm.slane %v9978_v58, 1  ;;  %v7601_v43 = vld [vmem:[#allocation8 + $0xac8] sm:$0xf]  ;;  %v7026_v24 = vor.u32 %v8827_v41, %v7023_v4  ;;  %v8969_v22 = vld [vmem:[#allocation8 + $0xab0] sm:$0xf0] }
 0x135   : > { %3837 = vmatmul.bf16.vlgmr.msra.gmra.mxu1 %v9994_v51  ;;  %v2306_v28 = vrot.slane %v2288_v48, 1  ;;  %v2353_v33 = vrot.slane %v2343_v27, 2  ;;  %v7582_v57 = vor.u32 %v8969_v22, %v7581_v42 }
 0x136   : > { %3896 = vmatpush.bf16.msrb.mxu2 %v7126_v8  ;;  %v2398_v34 = vrot.slane %v2378_v29, 3  ;;  %v2458_v3 = vrot.slane %v2438_v21, 4  ;;  %v2034_v36 = vpop.f32.mrf.mxu1  ;;  %v7306_v8 = vor.u32 %v8897_v30, %v7303_v32  ;;  %v7562_v29 = vor.u32 %v8964_v44, %v7561_v19  ;;  %v7541_v30 = vld [vmem:[#allocation8 + $0xa50] sm:$0xf]  ;;  %v8959_v32 = vld [vmem:[#allocation8 + $0xa60] sm:$0xf0] }
 0x137   : > { %3862 = vmatpush.bf16.msra.mxu3 %v7342_v16  ;;  %v2307_v37 = vsel %vm379_vm0, %v2305_v53, %v2306_v28  ;;  %v2333_v56 = vadd.f32 %v2306_v28, %v2273_v18  ;;  %v7266_v53 = vor.u32 %v8887_v13, %v7263_v25  ;;  %v2046_v18 = vadd.f32 %v2045_v23, %v843_v46  ;;  %v7016_v23 = vld [vmem:[%s10321_s1 + $0x38] sm:$0x1f]  ;;  %v7521_v36 = vld [vmem:[#allocation8 + $0xa28] sm:$0xf] }
 0x138   : > { %v2328_v39 = vadd.f32 %v2307_v37, %v2268_v20  ;;  %v2405_v40 = vsel %vm475_vm1, %v2398_v34, %v2404_v49  ;;  %v2465_v60 = vsel %vm536_vm2, %v2458_v3, %v2464_v2  ;;  %v8877_v20 = vld [vmem:[#allocation8 + $0x7d4] sm:$0xf]  ;;  %v7223_v49 = vld [vmem:[#allocation8 + $0x7e4] sm:$0xf0]  ;;  %v7203_v2 = vld [vmem:[#allocation8 + $0x7bc] sm:$0xf0] }
 0x139   : > { %v2368_v62 = vadd.f32 %v2353_v33, %v2333_v56  ;;  %v2059_v28 = vadd.f32 %v9998_v50, %v2046_v18  ;;  %v2279_v37 = vperm.slane %v7016_v23, 1  ;;  %v7522_v56 = vor.u32 %v8954_v54, %v7521_v36  ;;  %v8927_v54 = vld [vmem:[#allocation8 + $0x964] sm:$0xf] }
 0x13a   : > { %3897 = vmatpush.bf16.msrb.mxu2 %v7106_v6  ;;  %v2363_v1 = vadd.f32 %v2353_v33, %v2328_v39  ;;  %v8974_v6 = vld [vmem:[#allocation8 + $0xad8] sm:$0xf0]  ;;  %v2060_v14 = vpop.f32.mrf.mxu3  ;;  %v2047_v12 = vpop.f32.mrf.mxu2  ;;  %v2374_v38 = vperm.slane %v7016_v23, 3  ;;  %v7183_v39 = vld [vmem:[#allocation8 + $0x794] sm:$0xf0]  ;;  %v2434_v7 = vperm.slane %v7016_v23, 4 }
 0x13b   : > { %3907 = vmatpush.bf16.msrb.mxu3 %v7326_v17  ;;  %v2428_v5 = vadd.f32 %v2405_v40, %v2368_v62  ;;  %v7602_v15 = vor.u32 %v8974_v6, %v7601_v43  ;;  %v7243_v17 = vld [vmem:[#allocation8 + $0x80c] sm:$0xf0]  ;;  %v7501_v62 = vld [vmem:[#allocation8 + $0xa00] sm:$0xf]  ;;  %v2284_v9 = vmul.f32 0.0, %v2279_v37  ;;  %v2264_v4 = vperm.slane %v7016_v23, 0 }
 0x13c   : > { %v2423_v45 = vadd.f32 %v2398_v34, %v2363_v1  ;;  %v7246_v27 = vor.u32 %v8882_v59, %v7243_v17  ;;  %v7226_v34 = vor.u32 %v8877_v20, %v7223_v49  ;;  %v8942_v1 = vld [vmem:[#allocation8 + $0x9dc] sm:$0xf]  ;;  %v2384_v43 = vmul.f32 0.0, %v2374_v38 }
 0x13d   : > { %v2488_v47 = vadd.f32 %v2465_v60, %v2428_v5  ;;  %3870 = vmatpush.bf16.msrb.mxu0 %v7602_v15  ;;  %v7483_v60 = vld [vmem:[#allocation8 + $0x9ec] sm:$0xf0]  ;;  %v2339_v5 = vperm.slane %v7016_v23, 2  ;;  %v2308_v15 = vrot.slane %v2284_v9, 1  ;;  %v2444_v46 = vmul.f32 0.0, %v2434_v7 }
 0x13e   : > { %3898 = vmatpush.bf16.msrb.mxu2 %v7086_v52  ;;  %v2483_v31 = vadd.f32 %v2458_v3, %v2423_v45  ;;  %v8872_v3 = vld [vmem:[#allocation8 + $0x7ac] sm:$0xf]  ;;  %v7486_v12 = vor.u32 %v8942_v1, %v7483_v60  ;;  %v2269_v22 = vmul.f32 0.0, %v2264_v4  ;;  %v9022_v60 = vld [vmem:[#allocation8 + $0xc5c] sm:$0xf] }
 0x13f   : > { %3908 = vmatpush.bf16.msrb.mxu3 %v7306_v8  ;;  %v2511_v52 = vadd.f32 %v2496_v26, %v2488_v47  ;;  %v7206_v50 = vor.u32 %v8872_v3, %v7203_v2  ;;  %v8937_v47 = vld [vmem:[#allocation8 + $0x9b4] sm:$0xf]  ;;  %v2466_v18 = vrot.slane %v2444_v46, 4  ;;  %v2497_v2 = vperm.slane %v9978_v58, 2  ;;  %v9024_v9 = vld [vmem:[#allocation8 + $0xc68] sm:$0xf0] }
 0x140   : > { %v2506_v16 = vadd.f32 %v2496_v26, %v2483_v31 }
 0x141   : > { %3871 = vmatpush.bf16.msrb.mxu0 %v7582_v57 }
 0x142   : > { %3899 = vmatpush.bf16.msrb.mxu2 %v7066_v35  ;;  %v2516_v48 = vpack.c.bf16 %v2511_v52, %v2506_v16  ;;  %v7542_v35 = vor.u32 %v8959_v32, %v7541_v30  ;;  %v2406_v52 = vrot.slane %v2384_v43, 3  ;;  %v8932_v30 = vld [vmem:[#allocation8 + $0x98c] sm:$0xf]  ;;  %v7443_v32 = vld [vmem:[#allocation8 + $0x99c] sm:$0xf0] }
 0x143   : > { %3909 = vmatpush.bf16.msrb.mxu3 %v7286_v10  ;;  %v7186_v10 = vor.u32 %v8867_v11, %v7183_v39  ;;  %v7446_v23 = vor.u32 %v8932_v30, %v7443_v32  ;;  %v7403_v11 = vld [vmem:[#allocation8 + $0x94c] sm:$0xf0]  ;;  %v7383_v43 = vld [vmem:[#allocation8 + $0x924] sm:$0xf0]  ;;  %v8907_v30 = vld [vmem:[#allocation8 + $0x8c4] sm:$0xf] }
 0x144   : > { %v10005_v21 = vrot.slane %v2516_v48, 3  ;;  %v7343_v32 = vld [vmem:[#allocation8 + $0x8d4] sm:$0xf0] }
 0x145   : > { %3872 = vmatpush.bf16.msrb.mxu0 %v7562_v29 }
 0x146   : > { %3900 = vmatpush.bf16.msrb.mxu2 %v7046_v61  ;;  %v8949_v61 = vld [vmem:[#allocation8 + $0xa10] sm:$0xf0] }
 0x147   : > { %3910 = vmatpush.bf16.msrb.mxu3 %v7266_v53  ;;  %3850 = vmatmul.bf16.vlgmr.msra.gmra.mxu2 %v10005_v21  ;;  %v7502_v6 = vor.u32 %v8949_v61, %v7501_v62  ;;  %v8865_v61 = vld [vmem:[#allocation8 + $0x770] sm:$0xf0] }
 0x149   : > { %v2071_v33 = vpop.f32.mrf.mxu0  ;;  %3873 = vmatpush.bf16.msrb.mxu0 %v7542_v35 }
 0x14a   : > { %3901 = vmatpush.bf16.msrb.mxu2 %v7026_v24  ;;  %v2072_v55 = vadd.f32 %v2071_v33, %v2059_v28  ;;  %v7463_v24 = vld [vmem:[#allocation8 + $0x9c4] sm:$0xf0] }
 0x14b   : > { %3911 = vmatpush.bf16.msrb.mxu3 %v7246_v27  ;;  %v7466_v19 = vor.u32 %v8937_v47, %v7463_v24  ;;  %v8860_v24 = vld [vmem:[#allocation8 + $0x748] sm:$0xf0] }
 0x14d   : > { %3874 = vmatpush.bf16.msrb.mxu0 %v7522_v56 }
 0x14e   : > { %v2084_v8 = vpop.f32.mrf.mxu1 }
 0x14f   : > { %3912 = vmatpush.bf16.msrb.mxu3 %v7226_v34  ;;  %v2085_v40 = vadd.f32 %v2084_v8, %v2072_v55  ;;  %v7423_v55 = vld [vmem:[#allocation8 + $0x974] sm:$0xf0]  ;;  %v844_v8 = vperm.slane %v9949_v0, 3 }
 0x150   : > { %v2097_v63 = vpop.f32.mrf.mxu2 }
 0x151   : > { %v2098_v41 = vadd.f32 %v2097_v63, %v2085_v40  ;;  %v2073_v26 = vpop.f32.mrf.mxu0  ;;  %3875 = vmatpush.bf16.msrb.mxu0 %v7502_v6  ;;  %v7169_v40 = vld [vmem:[#allocation8 + $0x760] sm:$0xf]  ;;  %v7801_v63 = vld [vmem:[#allocation8 + $0xc58] sm:$0xf] }
 0x152   : > { %v2110_v45 = vpop.f32.mrf.mxu3  ;;  %v7802_v1 = vor.u32 %v9024_v9, %v7801_v63  ;;  %v7149_v26 = vld [vmem:[#allocation8 + $0x738] sm:$0xf]  ;;  %v7170_v0 = vor.u32 %v8865_v61, %v7169_v40  ;;  %v7346_v63 = vor.u32 %v8907_v30, %v7343_v32  ;;  %v9002_v9 = vld [vmem:[#allocation8 + $0xbbc] sm:$0xf] }
 0x153   : > { %3913 = vmatpush.bf16.msrb.mxu3 %v7206_v50  ;;  %v2233_v14 = vmax.f32 %v2098_v41, 0.0  ;;  %v7426_v50 = vor.u32 %v8927_v54, %v7423_v55  ;;  %v7803_v41 = vld [vmem:[#allocation8 + $0xc6c] sm:$0xf0]  ;;  %v7109_v55 = vld [vmem:[#allocation8 + $0x6e8] sm:$0xf] }
 0x154   : > { %v7806_v6 = vor.u32 %v9022_v60, %v7803_v41  ;;  %3881 = vmatpush.bf16.msrb.mxu1 %v7802_v1  ;;  %v8994_v32 = vld [vmem:[#allocation8 + $0xb78] sm:$0xf0] }
 0x155   : > { %v2274_v13 = vmul.f32 %v2264_v4, %v2233_v14  ;;  %v2289_v25 = vmul.f32 %v2279_v37, %v2233_v14  ;;  %v2344_v31 = vmul.f32 %v2339_v5, %v2233_v14  ;;  %v2379_v42 = vmul.f32 %v2374_v38, %v2233_v14  ;;  %3920 = vmatpush.bf16.msra.mxu0 %v7486_v12  ;;  %v8922_v38 = vld [vmem:[#allocation8 + $0x93c] sm:$0xf]  ;;  %v9019_v12 = vld [vmem:[#allocation8 + $0xc40] sm:$0xf0] }
 0x156   : > { %v2439_v53 = vmul.f32 %v2434_v7, %v2233_v14  ;;  %v2086_v57 = vpop.f32.mrf.mxu1  ;;  %v7406_v7 = vor.u32 %v8922_v38, %v7403_v11  ;;  %v2111_v4 = vadd.f32 %v2110_v45, %v844_v8  ;;  %v7781_v14 = vld [vmem:[#allocation8 + $0xc30] sm:$0xf]  ;;  %3946 = vmatpush.bf16.msra.mxu2 %v7806_v6  ;;  %v10023_v45 = vld [vmem:[%s10321_s1 + $0x40] sm:$0x1f]  ;;  %v7721_v11 = vld [vmem:[#allocation8 + $0xbb8] sm:$0xf] }
 0x157   : > { %3914 = vmatpush.bf16.msrb.mxu3 %v7186_v10  ;;  %v2309_v59 = vrot.slane %v2289_v25, 1  ;;  %v2354_v16 = vrot.slane %v2344_v31, 2  ;;  %v2399_v17 = vrot.slane %v2379_v42, 3  ;;  %3902 = vmatmul.bf16.vlgmr.msrb.gmra.mxu2 %v9994_v51  ;;  %v8917_v10 = vld [vmem:[#allocation8 + $0x914] sm:$0xf]  ;;  %v2435_v61 = vperm.slane %v10023_v45, 4 }
 0x158   : > { %v2459_v44 = vrot.slane %v2439_v53, 4  ;;  %v2099_v48 = vpop.f32.mrf.mxu2  ;;  %v7783_v25 = vld [vmem:[#allocation8 + $0xc44] sm:$0xf0]  ;;  %v7386_v31 = vor.u32 %v8917_v10, %v7383_v43  ;;  %v7363_v53 = vld [vmem:[#allocation8 + $0x8fc] sm:$0xf0]  ;;  %v2340_v60 = vperm.slane %v10023_v45, 2 }
 0x159   : > { %v2310_v27 = vsel %vm379_vm0, %v2308_v15, %v2309_v59  ;;  %v2334_v29 = vadd.f32 %v2309_v59, %v2274_v13  ;;  %v2407_v49 = vsel %vm475_vm1, %v2399_v17, %v2406_v52  ;;  %3921 = vmatpush.bf16.msra.mxu0 %v7466_v19  ;;  %v9017_v15 = vld [vmem:[#allocation8 + $0xc34] sm:$0xf]  ;;  %v7782_v13 = vor.u32 %v9019_v12, %v7781_v14  ;;  %v8912_v52 = vld [vmem:[#allocation8 + $0x8ec] sm:$0xf]  ;;  %v7761_v57 = vld [vmem:[#allocation8 + $0xc08] sm:$0xf] }
 0x15a   : > { %v2329_v20 = vadd.f32 %v2310_v27, %v2269_v22  ;;  %v2112_v33 = vpop.f32.mrf.mxu3  ;;  %v2467_v35 = vsel %vm536_vm2, %v2459_v44, %v2466_v18  ;;  %v7786_v42 = vor.u32 %v9017_v15, %v7783_v25  ;;  %v7150_v59 = vor.u32 %v8860_v24, %v7149_v26  ;;  %v7763_v19 = vld [vmem:[#allocation8 + $0xc1c] sm:$0xf0]  ;;  %v7129_v18 = vld [vmem:[#allocation8 + $0x710] sm:$0xf]  ;;  %v8855_v48 = vld [vmem:[#allocation8 + $0x720] sm:$0xf0] }
 0x15b   : > { %v2369_v28 = vadd.f32 %v2354_v16, %v2334_v29  ;;  %3882 = vmatpush.bf16.msrb.mxu1 %v7782_v13  ;;  %v7130_v54 = vor.u32 %v8855_v48, %v7129_v18  ;;  %v8845_v26 = vld [vmem:[#allocation8 + $0x6d0] sm:$0xf0]  ;;  %v7701_v14 = vld [vmem:[#allocation8 + $0xb90] sm:$0xf]  ;;  %v8999_v12 = vld [vmem:[#allocation8 + $0xba0] sm:$0xf0] }
 0x15c   : > { %v2364_v34 = vadd.f32 %v2354_v16, %v2329_v20  ;;  %v9014_v16 = vld [vmem:[#allocation8 + $0xc18] sm:$0xf0]  ;;  %3947 = vmatpush.bf16.msra.mxu2 %v7786_v42  ;;  %v8997_v13 = vld [vmem:[#allocation8 + $0xb94] sm:$0xf]  ;;  %v7703_v25 = vld [vmem:[#allocation8 + $0xba4] sm:$0xf0] }
 0x15d   : > { %v2429_v3 = vadd.f32 %v2407_v49, %v2369_v28  ;;  %3922 = vmatpush.bf16.msra.mxu0 %v7446_v23  ;;  %v7762_v27 = vor.u32 %v9014_v16, %v7761_v57  ;;  %v7366_v49 = vor.u32 %v8912_v52, %v7363_v53  ;;  %v7741_v28 = vld [vmem:[#allocation8 + $0xbe0] sm:$0xf]  ;;  %v9009_v23 = vld [vmem:[#allocation8 + $0xbf0] sm:$0xf0]  ;;  %v8840_v16 = vld [vmem:[#allocation8 + $0x6a8] sm:$0xf0] }
 0x15e   : > { %v2424_v36 = vadd.f32 %v2399_v17, %v2364_v34  ;;  %v9012_v17 = vld [vmem:[#allocation8 + $0xc0c] sm:$0xf]  ;;  %v9007_v34 = vld [vmem:[#allocation8 + $0xbe4] sm:$0xf] }
 0x15f   : > { %v2489_v37 = vadd.f32 %v2467_v35, %v2429_v3  ;;  %v7766_v29 = vor.u32 %v9012_v17, %v7763_v19  ;;  %v7743_v35 = vld [vmem:[#allocation8 + $0xbf4] sm:$0xf0]  ;;  %3883 = vmatpush.bf16.msrb.mxu1 %v7762_v27  ;;  %v7702_v19 = vor.u32 %v8999_v12, %v7701_v14  ;;  %v9025_v14 = vld [vmem:[#allocation8 + $0xc70] sm:$0xf0] }
 0x160   : > { %v2484_v56 = vadd.f32 %v2459_v44, %v2424_v36  ;;  %v2280_v44 = vperm.slane %v10023_v45, 1  ;;  %v2375_v36 = vperm.slane %v10023_v45, 3  ;;  %v7746_v38 = vor.u32 %v9007_v34, %v7743_v35  ;;  %v7683_v35 = vld [vmem:[#allocation8 + $0xb7c] sm:$0xf0] }
 0x161   : > { %v2512_v39 = vadd.f32 %v2497_v2, %v2489_v37  ;;  %3923 = vmatpush.bf16.msra.mxu0 %v7426_v50  ;;  %v7742_v37 = vor.u32 %v9009_v23, %v7741_v28  ;;  %3948 = vmatpush.bf16.msra.mxu2 %v7766_v29  ;;  %v7706_v29 = vor.u32 %v8997_v13, %v7703_v25  ;;  %v8992_v28 = vld [vmem:[#allocation8 + $0xb6c] sm:$0xf]  ;;  %v7629_v13 = vld [vmem:[#allocation8 + $0xaf8] sm:$0xf] }
 0x162   : > { %v2507_v62 = vadd.f32 %v2497_v2, %v2484_v56  ;;  %v2265_v2 = vperm.slane %v10023_v45, 0  ;;  %v8850_v56 = vld [vmem:[#allocation8 + $0x6f8] sm:$0xf0]  ;;  %v2385_v41 = vmul.f32 0.0, %v2375_v36 }
 0x163   : > { %3884 = vmatpush.bf16.msrb.mxu1 %v7742_v37  ;;  %v8835_v37 = vld [vmem:[#allocation8 + $0x680] sm:$0xf0] }
 0x164   : > { %v2517_v5 = vpack.c.bf16 %v2512_v39, %v2507_v62  ;;  %v9004_v39 = vld [vmem:[#allocation8 + $0xbc8] sm:$0xf0]  ;;  %v2285_v62 = vmul.f32 0.0, %v2280_v44  ;;  %v2270_v6 = vmul.f32 0.0, %v2265_v2  ;;  %v2408_v52 = vrot.slane %v2385_v41, 3 }
 0x165   : > { %3924 = vmatpush.bf16.msra.mxu0 %v7406_v7  ;;  %v7723_v7 = vld [vmem:[#allocation8 + $0xbcc] sm:$0xf0]  ;;  %v7722_v10 = vor.u32 %v9004_v39, %v7721_v11  ;;  %3949 = vmatpush.bf16.msra.mxu2 %v7746_v38  ;;  %v2498_v39 = vperm.slane %v9978_v58, 3  ;;  %v7809_v58 = vld [vmem:[#allocation8 + $0xc60] sm:$0xf] }
 0x166   : > { %v10018_v46 = vrot.slane %v2517_v5, 3  ;;  %v7089_v5 = vld [vmem:[#allocation8 + $0x6c0] sm:$0xf]  ;;  %v2311_v15 = vrot.slane %v2285_v62, 1  ;;  %v7663_v62 = vld [vmem:[#allocation8 + $0xb54] sm:$0xf0] }
 0x167   : > { %v7090_v57 = vor.u32 %v8845_v26, %v7089_v5  ;;  %3885 = vmatpush.bf16.msrb.mxu1 %v7722_v10  ;;  %v7029_v5 = vld [vmem:[#allocation8 + $0x648] sm:$0xf]  ;;  %v8830_v26 = vld [vmem:[#allocation8 + $0x658] sm:$0xf0] }
 0x168   : > { %3863 = vmatmul.bf16.vlgmr.msra.gmra.mxu3 %v10018_v46  ;;  %v7030_v25 = vor.u32 %v8830_v26, %v7029_v5  ;;  %v8885_v5 = vld [vmem:[#allocation8 + $0x810] sm:$0xf0] }
 0x169   : > { %v2123_v47 = vpop.f32.mrf.mxu0  ;;  %3959 = vmatpush.bf16.msra.mxu3 %v7170_v0  ;;  %3925 = vmatpush.bf16.msra.mxu0 %v7386_v31  ;;  %v7726_v0 = vor.u32 %v9002_v9, %v7723_v7  ;;  %v7643_v9 = vld [vmem:[#allocation8 + $0xb2c] sm:$0xf0]  ;;  %v7649_v7 = vld [vmem:[#allocation8 + $0xb20] sm:$0xf] }
 0x16a   : > { %v2124_v22 = vadd.f32 %v2123_v47, %v2111_v4  ;;  %v7110_v4 = vor.u32 %v8850_v56, %v7109_v55  ;;  %v2445_v47 = vmul.f32 0.0, %v2435_v61  ;;  %v7661_v56 = vld [vmem:[#allocation8 + $0xb40] sm:$0xf] }
 0x16b   : > { %3950 = vmatpush.bf16.msra.mxu2 %v7726_v0  ;;  %3886 = vmatpush.bf16.msrb.mxu1 %v7702_v19 }
 0x16c   : > { %v2468_v30 = vrot.slane %v2445_v47, 4  ;;  %v8977_v47 = vld [vmem:[#allocation8 + $0xaf4] sm:$0xf] }
 0x16d   : > { %3960 = vmatpush.bf16.msra.mxu3 %v7150_v59  ;;  %3926 = vmatpush.bf16.msra.mxu0 %v7366_v49  ;;  %v7069_v59 = vld [vmem:[#allocation8 + $0x698] sm:$0xf] }
 0x16e   : > { %v2136_v20 = vpop.f32.mrf.mxu1  ;;  %v7070_v34 = vor.u32 %v8840_v16, %v7069_v59  ;;  %v7789_v59 = vld [vmem:[#allocation8 + $0xc38] sm:$0xf]  ;;  %v9020_v16 = vld [vmem:[#allocation8 + $0xc48] sm:$0xf0] }
 0x16f   : > { %v2137_v33 = vadd.f32 %v2136_v20, %v2124_v22  ;;  %v7681_v20 = vld [vmem:[#allocation8 + $0xb68] sm:$0xf]  ;;  %3951 = vmatpush.bf16.msra.mxu2 %v7706_v29  ;;  %v8900_v29 = vld [vmem:[#allocation8 + $0x888] sm:$0xf0] }
 0x170   : > { %v2149_v3 = vpop.f32.mrf.mxu2 }
 0x171   : > { %v2150_v50 = vadd.f32 %v2149_v3, %v2137_v33  ;;  %v2125_v8 = vpop.f32.mrf.mxu0  ;;  %3961 = vmatpush.bf16.msra.mxu3 %v7130_v54  ;;  %3927 = vmatpush.bf16.msra.mxu0 %v7346_v63  ;;  %v7682_v54 = vor.u32 %v8994_v32, %v7681_v20  ;;  %v8982_v63 = vld [vmem:[#allocation8 + $0xb1c] sm:$0xf]  ;;  %v7790_v20 = vor.u32 %v9020_v16, %v7789_v59  ;;  %v7289_v32 = vld [vmem:[#allocation8 + $0x850] sm:$0xf]  ;;  %v10049_v16 = vld [vmem:[%s10321_s1 + $0x48] sm:$0x1f] }
 0x172   : > { %v2162_v40 = vpop.f32.mrf.mxu3  ;;  %v8989_v8 = vld [vmem:[#allocation8 + $0xb50] sm:$0xf0] }
 0x173   : > { %v2163_v1 = vadd.f32 %v2162_v40, %v2150_v50  ;;  %v7686_v50 = vor.u32 %v8992_v28, %v7683_v35  ;;  %v8987_v40 = vld [vmem:[#allocation8 + $0xb44] sm:$0xf]  ;;  %3887 = vmatpush.bf16.msrb.mxu1 %v7682_v54  ;;  %v7662_v41 = vor.u32 %v8989_v8, %v7661_v56  ;;  %v9010_v35 = vld [vmem:[#allocation8 + $0xbf8] sm:$0xf0]  ;;  %v7603_v54 = vld [vmem:[#allocation8 + $0xadc] sm:$0xf0] }
 0x174   : > { %v8895_v28 = vld [vmem:[#allocation8 + $0x860] sm:$0xf0] }
 0x175   : > { %v2234_v43 = vmax.f32 %v2163_v1, 0.0  ;;  %3962 = vmatpush.bf16.msra.mxu3 %v7110_v4  ;;  %v8985_v4 = vld [vmem:[#allocation8 + $0xb30] sm:$0xf0]  ;;  %3952 = vmatpush.bf16.msra.mxu2 %v7686_v50  ;;  %v8890_v50 = vld [vmem:[#allocation8 + $0x838] sm:$0xf0] }
 0x176   : > { %v2138_v24 = vpop.f32.mrf.mxu1  ;;  %v7650_v12 = vor.u32 %v8985_v4, %v7649_v7  ;;  %v7249_v4 = vld [vmem:[#allocation8 + $0x800] sm:$0xf] }
 0x177   : > { %v2275_v45 = vmul.f32 %v2265_v2, %v2234_v43  ;;  %v2290_v31 = vmul.f32 %v2280_v44, %v2234_v43  ;;  %v2345_v42 = vmul.f32 %v2340_v60, %v2234_v43  ;;  %v2380_v22 = vmul.f32 %v2375_v36, %v2234_v43  ;;  %v7049_v36 = vld [vmem:[#allocation8 + $0x670] sm:$0xf]  ;;  %v7623_v24 = vld [vmem:[#allocation8 + $0xb04] sm:$0xf0]  ;;  %3888 = vmatpush.bf16.msrb.mxu1 %v7662_v41 }
 0x178   : > { %v2440_v53 = vmul.f32 %v2435_v61, %v2234_v43  ;;  %v2151_v17 = vpop.f32.mrf.mxu2  ;;  %3915 = vmatmul.bf16.vlgmr.msrb.gmra.mxu3 %v10005_v21  ;;  %v7050_v60 = vor.u32 %v8835_v37, %v7049_v36  ;;  %v7666_v43 = vor.u32 %v8987_v40, %v7663_v62  ;;  %v8972_v36 = vld [vmem:[#allocation8 + $0xacc] sm:$0xf]  ;;  %v7269_v37 = vld [vmem:[#allocation8 + $0x828] sm:$0xf]  ;;  %v9312_v62 = vld [vmem:[#allocation9] sm:$0x1f] }
 0x179   : > { %v2312_v18 = vrot.slane %v2290_v31, 1  ;;  %v2355_v48 = vrot.slane %v2345_v42, 2  ;;  %v2400_v27 = vrot.slane %v2380_v22, 3  ;;  %3963 = vmatpush.bf16.msra.mxu3 %v7090_v57  ;;  %v7329_v31 = vld [vmem:[#allocation8 + $0x8a0] sm:$0xf]  ;;  %v7606_v8 = vor.u32 %v8972_v36, %v7603_v54 }
 0x17a   : > { %v2460_v49 = vrot.slane %v2440_v53, 4  ;;  %v2164_v44 = vpop.f32.mrf.mxu3  ;;  %v8905_v42 = vld [vmem:[#allocation8 + $0x8b0] sm:$0xf0]  ;;  %v8980_v22 = vld [vmem:[#allocation8 + $0xb08] sm:$0xf0]  ;;  %3953 = vmatpush.bf16.msra.mxu2 %v7666_v43  ;;  %v7626_v53 = vor.u32 %v8977_v47, %v7623_v24  ;;  %v7270_v7 = vor.u32 %v8890_v50, %v7269_v37  ;;  %v7250_v24 = vor.u32 %v8885_v5, %v7249_v4 }
 0x17b   : > { %v2313_v33 = vsel %vm379_vm0, %v2311_v15, %v2312_v18  ;;  %v2335_v23 = vadd.f32 %v2312_v18, %v2275_v45  ;;  %v2409_v2 = vsel %vm475_vm1, %v2400_v27, %v2408_v52  ;;  %v7810_v52 = vor.u32 %v9025_v14, %v7809_v58  ;;  %v7589_v41 = vld [vmem:[#allocation8 + $0xaa8] sm:$0xf]  ;;  %v8970_v43 = vld [vmem:[#allocation8 + $0xab8] sm:$0xf0]  ;;  %v9000_v14 = vld [vmem:[#allocation8 + $0xba8] sm:$0xf0] }
 0x17c   : > { %v2330_v3 = vadd.f32 %v2313_v33, %v2270_v6  ;;  %v2469_v11 = vsel %vm536_vm2, %v2460_v49, %v2468_v30  ;;  %v7646_v6 = vor.u32 %v8982_v63, %v7643_v9  ;;  %v7630_v17 = vor.u32 %v8980_v22, %v7629_v13  ;;  %v9015_v30 = vld [vmem:[#allocation8 + $0xc20] sm:$0xf0]  ;;  %v7729_v63 = vld [vmem:[#allocation8 + $0xbc0] sm:$0xf]  ;;  %v9005_v9 = vld [vmem:[#allocation8 + $0xbd0] sm:$0xf0] }
 0x17d   : > { %v2370_v55 = vadd.f32 %v2355_v48, %v2335_v23  ;;  %3964 = vmatpush.bf16.msra.mxu3 %v7070_v34  ;;  %v7330_v19 = vor.u32 %v8905_v42, %v7329_v31  ;;  %v7749_v34 = vld [vmem:[#allocation8 + $0xbe8] sm:$0xf]  ;;  %v7590_v58 = vor.u32 %v8970_v43, %v7589_v41  ;;  %v7229_v31 = vld [vmem:[#allocation8 + $0x7d8] sm:$0xf]  ;;  %v8880_v42 = vld [vmem:[#allocation8 + $0x7e8] sm:$0xf0] }
 0x17e   : > { %v2365_v38 = vadd.f32 %v2355_v48, %v2330_v3  ;;  %3933 = vmatpush.bf16.msra.mxu1 %v7646_v6  ;;  %3998 = vmatpush.bf16.msrb.mxu2 %v7650_v12  ;;  %v7290_v3 = vor.u32 %v8895_v28, %v7289_v32  ;;  %v7730_v6 = vor.u32 %v9005_v9, %v7729_v63  ;;  %v8962_v12 = vld [vmem:[#allocation8 + $0xa7c] sm:$0xf]  ;;  %v7669_v32 = vld [vmem:[#allocation8 + $0xb48] sm:$0xf]  ;;  %v8952_v36 = vld [vmem:[#allocation8 + $0xa2c] sm:$0xf] }
 0x17f   : > { %v2430_v61 = vadd.f32 %v2409_v2, %v2370_v55  ;;  %v7609_v55 = vld [vmem:[#allocation8 + $0xad0] sm:$0xf]  ;;  %v8955_v37 = vld [vmem:[#allocation8 + $0xa40] sm:$0xf0]  ;;  %v7503_v9 = vld [vmem:[#allocation8 + $0xa14] sm:$0xf0] }
 0x180   : > { %v2425_v1 = vadd.f32 %v2400_v27, %v2365_v38  ;;  %v7309_v27 = vld [vmem:[#allocation8 + $0x878] sm:$0xf]  ;;  %v8975_v38 = vld [vmem:[#allocation8 + $0xae0] sm:$0xf0]  ;;  %v8950_v41 = vld [vmem:[#allocation8 + $0xa18] sm:$0xf0] }
 0x181   : > { %v2490_v10 = vadd.f32 %v2469_v11, %v2430_v61  ;;  %3965 = vmatpush.bf16.msra.mxu3 %v7050_v60  ;;  %v7310_v44 = vor.u32 %v8900_v29, %v7309_v27  ;;  %v7750_v11 = vor.u32 %v9010_v35, %v7749_v34  ;;  %v7610_v40 = vor.u32 %v8975_v38, %v7609_v55  ;;  %v7583_v60 = vld [vmem:[#allocation8 + $0xab4] sm:$0xf0]  ;;  %v8990_v35 = vld [vmem:[#allocation8 + $0xb58] sm:$0xf0]  ;;  %v7529_v55 = vld [vmem:[#allocation8 + $0xa30] sm:$0xf] }
 0x182   : > { %v2485_v0 = vadd.f32 %v2460_v49, %v2425_v1  ;;  %3934 = vmatpush.bf16.msra.mxu1 %v7626_v53  ;;  %v7769_v49 = vld [vmem:[#allocation8 + $0xc10] sm:$0xf]  ;;  %3999 = vmatpush.bf16.msrb.mxu2 %v7630_v17  ;;  %v845_v61 = vperm.slane %v9312_v62, 4  ;;  %v8967_v1 = vld [vmem:[#allocation8 + $0xaa4] sm:$0xf]  ;;  %v7230_v29 = vor.u32 %v8880_v42, %v7229_v31  ;;  %v7530_v62 = vor.u32 %v8955_v37, %v7529_v55 }
 0x183   : > { %v2513_v15 = vadd.f32 %v2498_v39, %v2490_v10  ;;  %v7770_v23 = vor.u32 %v9015_v30, %v7769_v49  ;;  %v7586_v10 = vor.u32 %v8967_v1, %v7583_v60  ;;  %v8995_v17 = vld [vmem:[#allocation8 + $0xb80] sm:$0xf0]  ;;  %v7543_v49 = vld [vmem:[#allocation8 + $0xa64] sm:$0xf0]  ;;  %v7549_v30 = vld [vmem:[#allocation8 + $0xa58] sm:$0xf] }
 0x184   : > { %v2508_v45 = vadd.f32 %v2498_v39, %v2485_v0  ;;  %v7709_v0 = vld [vmem:[#allocation8 + $0xb98] sm:$0xf]  ;;  %v7189_v38 = vld [vmem:[#allocation8 + $0x788] sm:$0xf]  ;;  %v8947_v63 = vld [vmem:[#allocation8 + $0xa04] sm:$0xf] }
 0x185   : > { %3966 = vmatpush.bf16.msra.mxu3 %v7030_v25  ;;  %v7569_v25 = vld [vmem:[#allocation8 + $0xa80] sm:$0xf]  ;;  %v7710_v53 = vor.u32 %v9000_v14, %v7709_v0  ;;  %v7171_v1 = vld [vmem:[#allocation8 + $0x774] sm:$0xf0]  ;;  %v7509_v60 = vld [vmem:[#allocation8 + $0xa08] sm:$0xf]  ;;  %v7506_v5 = vor.u32 %v8947_v63, %v7503_v9 }
 0x186   : > { %v2518_v57 = vpack.c.bf16 %v2513_v15, %v2508_v45  ;;  %3935 = vmatpush.bf16.msra.mxu1 %v7606_v8  ;;  %4000 = vmatpush.bf16.msrb.mxu2 %v7610_v40  ;;  %v7563_v15 = vld [vmem:[#allocation8 + $0xa8c] sm:$0xf0]  ;;  %v8965_v45 = vld [vmem:[#allocation8 + $0xa90] sm:$0xf0]  ;;  %v7651_v8 = vld [vmem:[#allocation8 + $0xb34] sm:$0xf0] }
 0x187   : > { %v7566_v13 = vor.u32 %v8962_v12, %v7563_v15  ;;  %v7631_v43 = vld [vmem:[#allocation8 + $0xb0c] sm:$0xf0]  ;;  %v2266_v31 = vperm.slane %v10049_v16, 0  ;;  %v8973_v42 = vld [vmem:[#allocation8 + $0xad4] sm:$0xf] }
 0x188   : > { %v10036_v48 = vrot.slane %v2518_v57, 3  ;;  %3967 = vmatmul.bf16.vlgmr.msra.gmra.mxu3 %v9994_v51  ;;  %v7689_v57 = vld [vmem:[#allocation8 + $0xb70] sm:$0xf]  ;;  %v7111_v55 = vld [vmem:[#allocation8 + $0x6fc] sm:$0xf0] }
 0x189   : > { %v2175_v18 = vpop.f32.mrf.mxu0  ;;  %4011 = vmatpush.bf16.msrb.mxu3 %v7810_v52  ;;  %v7570_v52 = vor.u32 %v8965_v45, %v7569_v25  ;;  %v7690_v34 = vor.u32 %v8995_v17, %v7689_v57 }
 0x18a   : > { %3876 = vmatmul.bf16.vlgmr.msrb.gmra.mxu0 %v10036_v48  ;;  %3936 = vmatpush.bf16.msra.mxu1 %v7586_v10  ;;  %v2176_v47 = vadd.f32 %v2175_v18, %v845_v61  ;;  %v8875_v18 = vld [vmem:[#allocation8 + $0x7c0] sm:$0xf0]  ;;  %v8978_v10 = vld [vmem:[#allocation8 + $0xafc] sm:$0xf] }
 0x18b   : > { %3972 = vmatpush.bf16.msrb.mxu0 %v7330_v19  ;;  %4001 = vmatpush.bf16.msrb.mxu2 %v7590_v58  ;;  %v7209_v19 = vld [vmem:[#allocation8 + $0x7b0] sm:$0xf]  ;;  %v8863_v61 = vld [vmem:[#allocation8 + $0x764] sm:$0xf]  ;;  %v2376_v58 = vperm.slane %v10049_v16, 3  ;;  %v7634_v25 = vor.u32 %v8978_v10, %v7631_v43 }
 0x18c   : > { %v7210_v54 = vor.u32 %v8875_v18, %v7209_v19  ;;  %v7174_v14 = vor.u32 %v8863_v61, %v7171_v1  ;;  %v8853_v18 = vld [vmem:[#allocation8 + $0x714] sm:$0xf]  ;;  %v8843_v1 = vld [vmem:[#allocation8 + $0x6c4] sm:$0xf]  ;;  %v8958_v43 = vld [vmem:[#allocation8 + $0xa5c] sm:$0xf] }
 0x18d   : > { %4012 = vmatpush.bf16.msrb.mxu3 %v7790_v20  ;;  %v8957_v20 = vld [vmem:[#allocation8 + $0xa54] sm:$0xf] }
 0x18e   : > { %v10040_v33 = vpop.f32.mrf.mxu1  ;;  %3937 = vmatpush.bf16.msra.mxu1 %v7566_v13  ;;  %v7546_v28 = vor.u32 %v8957_v20, %v7543_v49  ;;  %v7151_v13 = vld [vmem:[#allocation8 + $0x74c] sm:$0xf0] }
 0x18f   : > { %3973 = vmatpush.bf16.msrb.mxu0 %v7310_v44  ;;  %v2189_v27 = vadd.f32 %v10040_v33, %v2176_v47  ;;  %4002 = vmatpush.bf16.msrb.mxu2 %v7570_v52  ;;  %v2281_v44 = vperm.slane %v10049_v16, 1  ;;  %v7523_v33 = vld [vmem:[#allocation8 + $0xa3c] sm:$0xf0]  ;;  %v2341_v47 = vperm.slane %v10049_v16, 2  ;;  %v2386_v52 = vmul.f32 0.0, %v2376_v58 }
 0x190   : > { %v10042_v56 = vpop.f32.mrf.mxu2  ;;  %v7526_v40 = vor.u32 %v8952_v36, %v7523_v33  ;;  %v8848_v33 = vld [vmem:[#allocation8 + $0x6ec] sm:$0xf] }
 0x191   : > { %v2177_v2 = vpop.f32.mrf.mxu0  ;;  %4013 = vmatpush.bf16.msrb.mxu3 %v7770_v23  ;;  %v8960_v23 = vld [vmem:[#allocation8 + $0xa68] sm:$0xf0]  ;;  %v2202_v50 = vadd.f32 %v10042_v56, %v2189_v27  ;;  %v2286_v15 = vmul.f32 0.0, %v2281_v44  ;;  %v7131_v27 = vld [vmem:[#allocation8 + $0x724] sm:$0xf0]  ;;  %v7114_v9 = vor.u32 %v8848_v33, %v7111_v55 }
 0x192   : > { %v10044_v39 = vpop.f32.mrf.mxu3  ;;  %v7550_v2 = vor.u32 %v8960_v23, %v7549_v30  ;;  %3938 = vmatpush.bf16.msra.mxu1 %v7546_v28  ;;  %v8968_v23 = vld [vmem:[#allocation8 + $0xaac] sm:$0xf]  ;;  %v8935_v33 = vld [vmem:[#allocation8 + $0x9a0] sm:$0xf0] }
 0x193   : > { %3974 = vmatpush.bf16.msrb.mxu0 %v7290_v3  ;;  %v8983_v3 = vld [vmem:[#allocation8 + $0xb24] sm:$0xf]  ;;  %v2215_v56 = vadd.f32 %v10044_v39, %v2202_v50  ;;  %v2436_v39 = vperm.slane %v10049_v16, 4 }
 0x194   : > { %4003 = vmatpush.bf16.msrb.mxu2 %v7550_v2  ;;  %v7654_v4 = vor.u32 %v8983_v3, %v7651_v8  ;;  %v2410_v3 = vrot.slane %v2386_v52, 3  ;;  %v8953_v52 = vld [vmem:[#allocation8 + $0xa34] sm:$0xf]  ;;  %v9023_v55 = vld [vmem:[#allocation8 + $0xc64] sm:$0xf] }
 0x195   : > { %4014 = vmatpush.bf16.msrb.mxu3 %v7750_v11  ;;  %v8870_v11 = vld [vmem:[#allocation8 + $0x798] sm:$0xf0]  ;;  %v2446_v49 = vmul.f32 0.0, %v2436_v39 }
 0x196   : > { %v2190_v26 = vpop.f32.mrf.mxu1  ;;  %3939 = vmatpush.bf16.msra.mxu1 %v7526_v40  ;;  %v8963_v40 = vld [vmem:[#allocation8 + $0xa84] sm:$0xf] }
 0x197   : > { %3975 = vmatpush.bf16.msrb.mxu0 %v7270_v7  ;;  %v7670_v7 = vor.u32 %v8990_v35, %v7669_v32  ;;  %v7190_v26 = vor.u32 %v8870_v11, %v7189_v38  ;;  %v2470_v8 = vrot.slane %v2446_v49, 4 }
 0x198   : > { %v2203_v22 = vpop.f32.mrf.mxu2  ;;  %4004 = vmatpush.bf16.msrb.mxu2 %v7530_v62  ;;  %v7571_v62 = vld [vmem:[#allocation8 + $0xa94] sm:$0xf0] }
 0x199   : > { %4015 = vmatpush.bf16.msrb.mxu3 %v7730_v6  ;;  %v7510_v6 = vor.u32 %v8950_v41, %v7509_v60  ;;  %v7611_v22 = vld [vmem:[#allocation8 + $0xae4] sm:$0xf0]  ;;  %v7091_v60 = vld [vmem:[#allocation8 + $0x6d4] sm:$0xf0] }
 0x19a   : > { %v2216_v59 = vpop.f32.mrf.mxu3  ;;  %3928 = vmatmul.bf16.vlgmr.msra.gmra.mxu0 %v10018_v46  ;;  %3940 = vmatpush.bf16.msra.mxu1 %v7506_v5  ;;  %v7614_v30 = vor.u32 %v8973_v42, %v7611_v22  ;;  %v9313_v41 = vld [vmem:[#allocation6 + $0x5] sm:$0x1f] }
 0x19b   : > { %3976 = vmatpush.bf16.msrb.mxu0 %v7250_v24  ;;  %v8858_v24 = vld [vmem:[#allocation8 + $0x73c] sm:$0xf]  ;;  %v2314_v59 = vrot.slane %v2286_v15, 1  ;;  %v7071_v15 = vld [vmem:[#allocation8 + $0x6ac] sm:$0xf0] }
 0x19c   : > { %4005 = vmatpush.bf16.msrb.mxu2 %v7510_v6  ;;  %v7551_v6 = vld [vmem:[#allocation8 + $0xa6c] sm:$0xf0] }
 0x19d   : > { %4016 = vmatpush.bf16.msrb.mxu3 %v7710_v53  ;;  %v7154_v53 = vor.u32 %v8858_v24, %v7151_v13  ;;  %v7554_v24 = vor.u32 %v8958_v43, %v7551_v6 }
 0x19f   : > { %3977 = vmatpush.bf16.msrb.mxu0 %v7230_v29  ;;  %v2271_v29 = vmul.f32 0.0, %v2266_v31 }
 0x1a1   : > { %4017 = vmatpush.bf16.msrb.mxu3 %v7690_v34  ;;  %v7591_v34 = vld [vmem:[#allocation8 + $0xabc] sm:$0xf0] }
 0x1a2   : > { %v7594_v38 = vor.u32 %v8968_v23, %v7591_v34  ;;  %v7511_v34 = vld [vmem:[#allocation8 + $0xa1c] sm:$0xf0] }
 0x1a3   : > { %3978 = vmatpush.bf16.msrb.mxu0 %v7210_v54 }
 0x1a5   : > { %4018 = vmatpush.bf16.msrb.mxu3 %v7670_v7 }
 0x1a7   : > { %3979 = vmatpush.bf16.msrb.mxu0 %v7190_v26 }
 0x1a9   : > { %v2227_v0 = vpop.f32.mrf.mxu0  ;;  %4063 = vmatpush.bf16.msra.mxu3 %v7654_v4  ;;  %v2499_v4 = vperm.slane %v9313_v41, 4  ;;  %v9018_v41 = vld [vmem:[#allocation8 + $0xc3c] sm:$0xf] }
 0x1aa   : > { %v2228_v12 = vadd.f32 %v2227_v0, %v2215_v56  ;;  %3980 = vmatmul.bf16.vlgmr.msrb.gmra.mxu0 %v10005_v21  ;;  %v7574_v56 = vor.u32 %v8963_v40, %v7571_v62 }
 0x1ab   : > { %4024 = vmatpush.bf16.msra.mxu0 %v7174_v14  ;;  %v7094_v14 = vor.u32 %v8843_v1, %v7091_v60  ;;  %v8930_v60 = vld [vmem:[#allocation8 + $0x978] sm:$0xf0] }
 0x1ac   : > { %v2235_v45 = vmax.f32 %v2228_v12, 0.0  ;;  %v8838_v12 = vld [vmem:[#allocation8 + $0x69c] sm:$0xf] }
 0x1ad   : > { %4064 = vmatpush.bf16.msra.mxu3 %v7634_v25  ;;  %v8945_v25 = vld [vmem:[#allocation8 + $0x9f0] sm:$0xf0]  ;;  %v7074_v42 = vor.u32 %v8838_v12, %v7071_v15  ;;  %v7409_v15 = vld [vmem:[#allocation8 + $0x940] sm:$0xf] }
 0x1ae   : > { %v2291_v57 = vmul.f32 %v2281_v44, %v2235_v45  ;;  %v2346_v17 = vmul.f32 %v2341_v47, %v2235_v45  ;;  %v2381_v19 = vmul.f32 %v2376_v58, %v2235_v45  ;;  %v2441_v20 = vmul.f32 %v2436_v39, %v2235_v45  ;;  %v7489_v39 = vld [vmem:[#allocation8 + $0x9e0] sm:$0xf] }
 0x1af   : > { %v2276_v32 = vmul.f32 %v2266_v31, %v2235_v45  ;;  %4025 = vmatpush.bf16.msra.mxu0 %v7154_v53  ;;  %v7134_v44 = vor.u32 %v8853_v18, %v7131_v27  ;;  %v8943_v45 = vld [vmem:[#allocation8 + $0x9e4] sm:$0xf]  ;;  %v7491_v31 = vld [vmem:[#allocation8 + $0x9f4] sm:$0xf0]  ;;  %v7531_v53 = vld [vmem:[#allocation8 + $0xa44] sm:$0xf0] }
 0x1b0   : > { %v2315_v28 = vrot.slane %v2291_v57, 1  ;;  %v2401_v35 = vrot.slane %v2381_v19, 3  ;;  %v2356_v54 = vrot.slane %v2346_v17, 2  ;;  %v2461_v50 = vrot.slane %v2441_v20, 4  ;;  %v7051_v17 = vld [vmem:[#allocation8 + $0x684] sm:$0xf0] }
 0x1b1   : > { %v2229_v16 = vpop.f32.mrf.mxu0  ;;  %4065 = vmatpush.bf16.msra.mxu3 %v7614_v30  ;;  %v7490_v57 = vor.u32 %v8945_v25, %v7489_v39  ;;  %v7494_v18 = vor.u32 %v8943_v45, %v7491_v31  ;;  %v7469_v27 = vld [vmem:[#allocation8 + $0x9b8] sm:$0xf]  ;;  %v7534_v49 = vor.u32 %v8953_v52, %v7531_v53  ;;  %v8938_v30 = vld [vmem:[#allocation8 + $0x9bc] sm:$0xf]  ;;  %v9013_v25 = vld [vmem:[#allocation8 + $0xc14] sm:$0xf] }
 0x1b2   : > { %v2316_v2 = vsel %vm379_vm0, %v2314_v59, %v2315_v28  ;;  %v2336_v36 = vadd.f32 %v2315_v28, %v2276_v32  ;;  %v2411_v63 = vsel %vm475_vm1, %v2401_v35, %v2410_v3  ;;  %v2471_v26 = vsel %vm536_vm2, %v2461_v50, %v2470_v8  ;;  %v10068_v10 = vpop.f32.mrf.mxu1  ;;  %v8833_v59 = vld [vmem:[#allocation8 + $0x674] sm:$0xf]  ;;  %v7471_v32 = vld [vmem:[#allocation8 + $0x9cc] sm:$0xf0]  ;;  %v8948_v28 = vld [vmem:[#allocation8 + $0xa0c] sm:$0xf] }
 0x1b3   : > { %v2331_v37 = vadd.f32 %v2316_v2, %v2271_v29  ;;  %4026 = vmatpush.bf16.msra.mxu0 %v7134_v44  ;;  %v8940_v29 = vld [vmem:[#allocation8 + $0x9c8] sm:$0xf0]  ;;  %v7054_v23 = vor.u32 %v8833_v59, %v7051_v17  ;;  %v8946_v3 = vld [vmem:[#allocation8 + $0x9f8] sm:$0xf0]  ;;  %v7031_v2 = vld [vmem:[#allocation8 + $0x65c] sm:$0xf0] }
 0x1b4   : > { %v2371_v11 = vadd.f32 %v2356_v54, %v2336_v36  ;;  %v7470_v16 = vor.u32 %v8940_v29, %v7469_v27  ;;  %v8828_v44 = vld [vmem:[#allocation8 + $0x64c] sm:$0xf]  ;;  %v7449_v36 = vld [vmem:[#allocation8 + $0x990] sm:$0xf]  ;;  %v8933_v8 = vld [vmem:[#allocation8 + $0x994] sm:$0xf] }
 0x1b5   : > { %v2366_v61 = vadd.f32 %v2356_v54, %v2331_v37  ;;  %4066 = vmatpush.bf16.msra.mxu3 %v7594_v38  ;;  %v7474_v54 = vor.u32 %v8938_v30, %v7471_v32  ;;  %v7811_v37 = vld [vmem:[#allocation8 + $0xc74] sm:$0xf0]  ;;  %v7451_v38 = vld [vmem:[#allocation8 + $0x9a4] sm:$0xf0]  ;;  %v7034_v40 = vor.u32 %v8828_v44, %v7031_v2  ;;  %v7450_v62 = vor.u32 %v8935_v33, %v7449_v36  ;;  %v8931_v52 = vld [vmem:[#allocation8 + $0x980] sm:$0xf0] }
 0x1b6   : > { %v2431_v7 = vadd.f32 %v2411_v63, %v2371_v11  ;;  %v7477_v63 = vld [vmem:[#allocation8 + $0x9c0] sm:$0xf]  ;;  %v7454_v1 = vor.u32 %v8933_v8, %v7451_v38  ;;  %v7771_v45 = vld [vmem:[#allocation8 + $0xc24] sm:$0xf0]  ;;  %v8920_v59 = vld [vmem:[#allocation8 + $0x928] sm:$0xf0] }
 0x1b7   : > { %v2426_v5 = vadd.f32 %v2401_v35, %v2366_v61  ;;  %4027 = vmatpush.bf16.msra.mxu0 %v7114_v9  ;;  %v7497_v35 = vld [vmem:[#allocation8 + $0x9e8] sm:$0xf]  ;;  %v7814_v61 = vor.u32 %v9023_v55, %v7811_v37  ;;  %v8941_v9 = vld [vmem:[#allocation8 + $0x9d0] sm:$0xf0]  ;;  %v7774_v17 = vor.u32 %v9013_v25, %v7771_v45  ;;  %v7391_v27 = vld [vmem:[#allocation8 + $0x92c] sm:$0xf0] }
 0x1b8   : > { %v2491_v0 = vadd.f32 %v2471_v26, %v2431_v7  ;;  %v7498_v11 = vor.u32 %v8946_v3, %v7497_v35  ;;  %v7429_v7 = vld [vmem:[#allocation8 + $0x968] sm:$0xf]  ;;  %v7478_v26 = vor.u32 %v8941_v9, %v7477_v63  ;;  %v7369_v3 = vld [vmem:[#allocation8 + $0x8f0] sm:$0xf]  ;;  %v8913_v36 = vld [vmem:[#allocation8 + $0x8f4] sm:$0xf] }
 0x1b9   : > { %v2486_v58 = vadd.f32 %v2461_v50, %v2426_v5  ;;  %4067 = vmatpush.bf16.msra.mxu3 %v7574_v56  ;;  %v7514_v50 = vor.u32 %v8948_v28, %v7511_v34  ;;  %v8928_v5 = vld [vmem:[#allocation8 + $0x96c] sm:$0xf]  ;;  %v7431_v56 = vld [vmem:[#allocation8 + $0x97c] sm:$0xf0]  ;;  %v7430_v43 = vor.u32 %v8930_v60, %v7429_v7  ;;  %v7417_v28 = vld [vmem:[#allocation8 + $0x948] sm:$0xf] }
 0x1ba   : > { %v2514_v47 = vadd.f32 %v2499_v4, %v2491_v0  ;;  %v3840_v20 = vpop.f32.mrf.mxu1  ;;  %v7457_v0 = vld [vmem:[#allocation8 + $0x998] sm:$0xf]  ;;  %v7434_v12 = vor.u32 %v8928_v5, %v7431_v56  ;;  %v9003_v33 = vld [vmem:[#allocation8 + $0xbc4] sm:$0xf]  ;;  %v8921_v8 = vld [vmem:[#allocation8 + $0x930] sm:$0xf0] }
 0x1bb   : > { %v2509_v13 = vadd.f32 %v2499_v4, %v2486_v58  ;;  %4028 = vmatpush.bf16.msra.mxu0 %v7094_v14  ;;  %v7791_v4 = vld [vmem:[#allocation8 + $0xc4c] sm:$0xf0]  ;;  %v8936_v58 = vld [vmem:[#allocation8 + $0x9a8] sm:$0xf0]  ;;  %v10075_v14 = vld [vmem:[#allocation9 + $0x5] sm:$0x1f] }
 0x1bc   : > { %v7794_v6 = vor.u32 %v9018_v41, %v7791_v4  ;;  %v7458_v39 = vor.u32 %v8936_v58, %v7457_v0  ;;  %v2764_v31 = vperm.slane %v10075_v14, 0  ;;  %v9008_v20 = vld [vmem:[#allocation8 + $0xbec] sm:$0xf]  ;;  %v7731_v55 = vld [vmem:[#allocation8 + $0xbd4] sm:$0xf0] }
 0x1bd   : > { %v2519_v22 = vpack.c.bf16 %v2514_v47, %v2509_v13  ;;  %4068 = vmatpush.bf16.msra.mxu3 %v7554_v24  ;;  %v8925_v47 = vld [vmem:[#allocation8 + $0x950] sm:$0xf0]  ;;  %v8923_v24 = vld [vmem:[#allocation8 + $0x944] sm:$0xf]  ;;  %v7411_v13 = vld [vmem:[#allocation8 + $0x954] sm:$0xf0]  ;;  %v7734_v63 = vor.u32 %v9003_v33, %v7731_v55 }
 0x1be   : > { %v7414_v53 = vor.u32 %v8923_v24, %v7411_v13  ;;  %v3839_v30 = vadd.f32 %v10068_v10, %v2764_v31  ;;  %v7349_v38 = vld [vmem:[#allocation8 + $0x8c8] sm:$0xf]  ;;  %v8998_v9 = vld [vmem:[#allocation8 + $0xb9c] sm:$0xf]  ;;  %v8903_v7 = vld [vmem:[#allocation8 + $0x8a4] sm:$0xf] }
 0x1bf   : > { %v10070_v19 = vrot.slane %v2519_v22, 3  ;;  %4029 = vmatpush.bf16.msra.mxu0 %v7074_v42  ;;  %v7410_v42 = vor.u32 %v8925_v47, %v7409_v15  ;;  %v7437_v22 = vld [vmem:[#allocation8 + $0x970] sm:$0xf]  ;;  %v7337_v4 = vld [vmem:[#allocation8 + $0x8a8] sm:$0xf] }
 0x1c0   : > { %v7438_v29 = vor.u32 %v8931_v52, %v7437_v22  ;;  %v7711_v41 = vld [vmem:[#allocation8 + $0xbac] sm:$0xf0]  ;;  %v8906_v5 = vld [vmem:[#allocation8 + $0x8b8] sm:$0xf0]  ;;  %v8993_v47 = vld [vmem:[#allocation8 + $0xb74] sm:$0xf] }
 0x1c1   : > { %3889 = vmatmul.bf16.vlgmr.msrb.gmra.mxu1 %v10070_v19  ;;  %3954 = vmatmul.bf16.vlgmr.msra.gmra.mxu2 %v10070_v19  ;;  %v7338_v15 = vor.u32 %v8906_v5, %v7337_v4  ;;  %v8898_v24 = vld [vmem:[#allocation8 + $0x87c] sm:$0xf]  ;;  %v7311_v13 = vld [vmem:[#allocation8 + $0x88c] sm:$0xf0]  ;;  %v7691_v25 = vld [vmem:[#allocation8 + $0xb84] sm:$0xf0] }
 0x1c2   : > { %3985 = vmatpush.bf16.msrb.mxu1 %v7490_v57  ;;  %4019 = vmatmul.bf16.vlgmr.msrb.gmra.mxu3 %v10070_v19  ;;  %v7389_v57 = vld [vmem:[#allocation8 + $0x918] sm:$0xf]  ;;  %v7317_v45 = vld [vmem:[#allocation8 + $0x880] sm:$0xf]  ;;  %v8901_v31 = vld [vmem:[#allocation8 + $0x890] sm:$0xf0]  ;;  %v7314_v52 = vor.u32 %v8898_v24, %v7311_v13 }
 0x1c3   : > { %4050 = vmatpush.bf16.msra.mxu2 %v7494_v18  ;;  %4069 = vmatpush.bf16.msra.mxu3 %v7534_v49  ;;  %v8918_v18 = vld [vmem:[#allocation8 + $0x91c] sm:$0xf]  ;;  %v7751_v49 = vld [vmem:[#allocation8 + $0xbfc] sm:$0xf0]  ;;  %v7390_v32 = vor.u32 %v8920_v59, %v7389_v57  ;;  %v8911_v22 = vld [vmem:[#allocation8 + $0x8e0] sm:$0xf0]  ;;  %v7318_v57 = vor.u32 %v8901_v31, %v7317_v45 }
 0x1c4   : > { %4030 = vmatpush.bf16.msra.mxu0 %v7054_v23  ;;  %v8926_v23 = vld [vmem:[#allocation8 + $0x958] sm:$0xf0]  ;;  %v7394_v35 = vor.u32 %v8918_v18, %v7391_v27  ;;  %v7754_v2 = vor.u32 %v9008_v20, %v7751_v49  ;;  %v8988_v59 = vld [vmem:[#allocation8 + $0xb4c] sm:$0xf]  ;;  %v7291_v18 = vld [vmem:[#allocation8 + $0x864] sm:$0xf0] }
 0x1c5   : > { %v7418_v10 = vor.u32 %v8926_v23, %v7417_v28  ;;  %v7297_v20 = vld [vmem:[#allocation8 + $0x858] sm:$0xf]  ;;  %v8896_v49 = vld [vmem:[#allocation8 + $0x868] sm:$0xf0]  ;;  %v8981_v33 = vld [vmem:[#allocation8 + $0xb10] sm:$0xf0] }
 0x1c6   : > { %3986 = vmatpush.bf16.msrb.mxu1 %v7470_v16  ;;  %v8915_v16 = vld [vmem:[#allocation8 + $0x900] sm:$0xf0]  ;;  %v7237_v4 = vld [vmem:[#allocation8 + $0x7e0] sm:$0xf]  ;;  %v8881_v5 = vld [vmem:[#allocation8 + $0x7f0] sm:$0xf0] }
 0x1c7   : > { %4051 = vmatpush.bf16.msra.mxu2 %v7474_v54  ;;  %4070 = vmatpush.bf16.msra.mxu3 %v7514_v50  ;;  %v7371_v54 = vld [vmem:[#allocation8 + $0x904] sm:$0xf0]  ;;  %v7370_v37 = vor.u32 %v8915_v16, %v7369_v3  ;;  %v7397_v50 = vld [vmem:[#allocation8 + $0x920] sm:$0xf]  ;;  %v8888_v3 = vld [vmem:[#allocation8 + $0x82c] sm:$0xf] }
 0x1c8   : > { %4031 = vmatpush.bf16.msra.mxu0 %v7034_v40  ;;  %v8910_v40 = vld [vmem:[#allocation8 + $0x8d8] sm:$0xf0]  ;;  %v7398_v60 = vor.u32 %v8921_v8, %v7397_v50  ;;  %v7271_v16 = vld [vmem:[#allocation8 + $0x83c] sm:$0xf0]  ;;  %v8883_v50 = vld [vmem:[#allocation8 + $0x804] sm:$0xf] }
 0x1c9   : > { %v7350_v56 = vor.u32 %v8910_v40, %v7349_v38  ;;  %v7274_v55 = vor.u32 %v8888_v3, %v7271_v16  ;;  %v7251_v8 = vld [vmem:[#allocation8 + $0x814] sm:$0xf0]  ;;  %v8886_v40 = vld [vmem:[#allocation8 + $0x818] sm:$0xf0]  ;;  %v8868_v31 = vld [vmem:[#allocation8 + $0x78c] sm:$0xf] }
 0x1ca   : > { %3987 = vmatpush.bf16.msrb.mxu1 %v7450_v62  ;;  %v3851_v34 = vpop.f32.mrf.mxu2  ;;  %v8908_v62 = vld [vmem:[#allocation8 + $0x8cc] sm:$0xf]  ;;  %v8966_v24 = vld [vmem:[#allocation8 + $0xa98] sm:$0xf0]  ;;  %v7137_v16 = vld [vmem:[#allocation8 + $0x718] sm:$0xf] }
 0x1cb   : > { %4115 = vmatpush.bf16.msrb.mxu3 %v7498_v11  ;;  %4052 = vmatpush.bf16.msra.mxu2 %v7454_v1  ;;  %v10083_v44 = vadd.f32 %v3851_v34, %v3839_v30  ;;  %v7374_v11 = vor.u32 %v8913_v36, %v7371_v54  ;;  %v7331_v1 = vld [vmem:[#allocation8 + $0x8b4] sm:$0xf0]  ;;  %v7657_v30 = vld [vmem:[#allocation8 + $0xb28] sm:$0xf]  ;;  %v7277_v36 = vld [vmem:[#allocation8 + $0x830] sm:$0xf] }
 0x1cc   : > { %4076 = vmatpush.bf16.msrb.mxu0 %v7814_v61  ;;  %v7351_v61 = vld [vmem:[#allocation8 + $0x8dc] sm:$0xf0]  ;;  %v7334_v58 = vor.u32 %v8903_v7, %v7331_v1  ;;  %v8891_v54 = vld [vmem:[#allocation8 + $0x840] sm:$0xf0]  ;;  %v8878_v1 = vld [vmem:[#allocation8 + $0x7dc] sm:$0xf] }
 0x1cd   : > { %4032 = vmatmul.bf16.vlgmr.msra.gmra.mxu0 %v9994_v51  ;;  %v7354_v0 = vor.u32 %v8908_v62, %v7351_v61  ;;  %v7617_v62 = vld [vmem:[#allocation8 + $0xad8] sm:$0xf]  ;;  %v8976_v61 = vld [vmem:[#allocation8 + $0xae8] sm:$0xf0] }
 0x1ce   : > { %3988 = vmatpush.bf16.msrb.mxu1 %v7430_v43  ;;  %v8916_v43 = vld [vmem:[#allocation8 + $0x908] sm:$0xf0] }
 0x1cf   : > { %4116 = vmatpush.bf16.msrb.mxu3 %v7478_v26  ;;  %4053 = vmatpush.bf16.msra.mxu2 %v7434_v12  ;;  %v7377_v26 = vld [vmem:[#allocation8 + $0x8f8] sm:$0xf]  ;;  %v7714_v12 = vor.u32 %v8998_v9, %v7711_v41  ;;  %v7254_v9 = vor.u32 %v8883_v50, %v7251_v8  ;;  %v7618_v41 = vor.u32 %v8976_v61, %v7617_v62  ;;  %v8851_v50 = vld [vmem:[#allocation8 + $0x700] sm:$0xf0]  ;;  %v8846_v62 = vld [vmem:[#allocation8 + $0x6d8] sm:$0xf0] }
 0x1d0   : > { %4077 = vmatpush.bf16.msrb.mxu0 %v7794_v6  ;;  %v7077_v61 = vld [vmem:[#allocation8 + $0x6a0] sm:$0xf] }
 0x1d1   : > { %3941 = vmatmul.bf16.vlgmr.msra.gmra.mxu1 %v10036_v48  ;;  %4006 = vmatmul.bf16.vlgmr.msrb.gmra.mxu2 %v10036_v48 }
 0x1d2   : > { %3989 = vmatpush.bf16.msrb.mxu1 %v7410_v42  ;;  %4071 = vmatmul.bf16.vlgmr.msra.gmra.mxu3 %v10036_v48  ;;  %v3853_v6 = vpop.f32.mrf.mxu2  ;;  %v7357_v42 = vld [vmem:[#allocation8 + $0x8d0] sm:$0xf] }
 0x1d3   : > { %4117 = vmatpush.bf16.msrb.mxu3 %v7458_v39  ;;  %4054 = vmatpush.bf16.msra.mxu2 %v7414_v53  ;;  %v7378_v39 = vor.u32 %v8916_v43, %v7377_v26  ;;  %v7694_v53 = vor.u32 %v8993_v47, %v7691_v25  ;;  %v7358_v27 = vor.u32 %v8911_v22, %v7357_v42  ;;  %v8873_v6 = vld [vmem:[#allocation8 + $0x7b4] sm:$0xf]  ;;  %v7577_v47 = vld [vmem:[#allocation8 + $0xa88] sm:$0xf]  ;;  %v7191_v42 = vld [vmem:[#allocation8 + $0x79c] sm:$0xf0] }
 0x1d4   : > { %4078 = vmatpush.bf16.msrb.mxu0 %v7774_v17  ;;  %v8893_v17 = vld [vmem:[#allocation8 + $0x854] sm:$0xf]  ;;  %v7238_v43 = vor.u32 %v8881_v5, %v7237_v4  ;;  %v7197_v22 = vld [vmem:[#allocation8 + $0x790] sm:$0xf]  ;;  %v8831_v5 = vld [vmem:[#allocation8 + $0x660] sm:$0xf0] }
 0x1d5   : > { %v7294_v23 = vor.u32 %v8893_v17, %v7291_v18  ;;  %v7557_v17 = vld [vmem:[#allocation8 + $0xa60] sm:$0xf]  ;;  %v8961_v18 = vld [vmem:[#allocation8 + $0xa70] sm:$0xf0]  ;;  %v7037_v4 = vld [vmem:[#allocation8 + $0x650] sm:$0xf] }
 0x1d6   : > { %3990 = vmatpush.bf16.msrb.mxu1 %v7390_v32  ;;  %v8986_v32 = vld [vmem:[#allocation8 + $0xb38] sm:$0xf0] }
 0x1d7   : > { %4118 = vmatpush.bf16.msrb.mxu3 %v7438_v29  ;;  %4055 = vmatpush.bf16.msra.mxu2 %v7394_v35  ;;  %v7671_v29 = vld [vmem:[#allocation8 + $0xb5c] sm:$0xf0]  ;;  %v7298_v35 = vor.u32 %v8896_v49, %v7297_v20  ;;  %v7558_v49 = vor.u32 %v8961_v18, %v7557_v17  ;;  %v7757_v18 = vld [vmem:[#allocation8 + $0xbf0] sm:$0xf] }
 0x1d8   : > { %4079 = vmatpush.bf16.msrb.mxu0 %v7754_v2  ;;  %v7674_v34 = vor.u32 %v8988_v59, %v7671_v29  ;;  %v7658_v2 = vor.u32 %v8986_v32, %v7657_v30  ;;  %v8866_v59 = vld [vmem:[#allocation8 + $0x778] sm:$0xf0]  ;;  %v8861_v30 = vld [vmem:[#allocation8 + $0x750] sm:$0xf0]  ;;  %v7537_v32 = vld [vmem:[#allocation8 + $0xa38] sm:$0xf] }
 0x1da   : > { %3991 = vmatpush.bf16.msrb.mxu1 %v7370_v37  ;;  %v10087_v28 = vpop.f32.mrf.mxu2  ;;  %v7278_v37 = vor.u32 %v8891_v54, %v7277_v36  ;;  %v2765_v36 = vperm.slane %v10075_v14, 1  ;;  %v7517_v54 = vld [vmem:[#allocation8 + $0xa10] sm:$0xf]  ;;  %v7097_v14 = vld [vmem:[#allocation8 + $0x6c8] sm:$0xf] }
 0x1db   : > { %4119 = vmatpush.bf16.msrb.mxu3 %v7418_v10  ;;  %4056 = vmatpush.bf16.msra.mxu2 %v7374_v11  ;;  %v7637_v10 = vld [vmem:[#allocation8 + $0xb00] sm:$0xf]  ;;  %v7257_v11 = vld [vmem:[#allocation8 + $0x808] sm:$0xf] }
 0x1dc   : > { %4080 = vmatpush.bf16.msrb.mxu0 %v7734_v63  ;;  %v7638_v38 = vor.u32 %v8981_v33, %v7637_v10  ;;  %v7258_v7 = vor.u32 %v8886_v40, %v7257_v11  ;;  %v8951_v10 = vld [vmem:[#allocation8 + $0xa20] sm:$0xf0]  ;;  %v3904_v8 = vadd.f32 %v10087_v28, %v2765_v36  ;;  %v7057_v28 = vld [vmem:[#allocation8 + $0x678] sm:$0xf] }
 0x1de   : > { %3992 = vmatpush.bf16.msrb.mxu1 %v7350_v56  ;;  %v8971_v56 = vld [vmem:[#allocation8 + $0xac0] sm:$0xf0] }
 0x1df   : > { %4120 = vmatpush.bf16.msrb.mxu3 %v7398_v60  ;;  %4057 = vmatpush.bf16.msra.mxu2 %v7354_v0  ;;  %v7231_v60 = vld [vmem:[#allocation8 + $0x7ec] sm:$0xf0]  ;;  %v7211_v0 = vld [vmem:[#allocation8 + $0x7c4] sm:$0xf0] }
 0x1e0   : > { %4081 = vmatpush.bf16.msrb.mxu0 %v7714_v12  ;;  %v7234_v26 = vor.u32 %v8878_v1, %v7231_v60  ;;  %v7217_v12 = vld [vmem:[#allocation8 + $0x7b8] sm:$0xf]  ;;  %v8836_v60 = vld [vmem:[#allocation8 + $0x688] sm:$0xf0] }
 0x1e1   : > { %3993 = vmatmul.bf16.vlgmr.msrb.gmra.mxu1 %v10018_v46 }
 0x1e2   : > { %4037 = vmatpush.bf16.msra.mxu1 %v7334_v58  ;;  %4058 = vmatmul.bf16.vlgmr.msra.gmra.mxu2 %v10018_v46  ;;  %v3905_v63 = vpop.f32.mrf.mxu2 }
 0x1e3   : > { %4102 = vmatpush.bf16.msrb.mxu2 %v7338_v15  ;;  %4121 = vmatpush.bf16.msrb.mxu3 %v7378_v39  ;;  %v8876_v15 = vld [vmem:[#allocation8 + $0x7c8] sm:$0xf0]  ;;  %v7214_v39 = vor.u32 %v8873_v6, %v7211_v0  ;;  %v8841_v63 = vld [vmem:[#allocation8 + $0x6b0] sm:$0xf0]  ;;  %v7797_v0 = vld [vmem:[#allocation8 + $0xc40] sm:$0xf] }
 0x1e4   : > { %4082 = vmatpush.bf16.msrb.mxu0 %v7694_v53  ;;  %v7218_v45 = vor.u32 %v8876_v15, %v7217_v12  ;;  %v8871_v53 = vld [vmem:[#allocation8 + $0x7a0] sm:$0xf0]  ;;  %v7078_v1 = vor.u32 %v8841_v63, %v7077_v61  ;;  %v7966_v12 = vld [vmem:[#allocation8 + $0xd98] sm:$0xf]  ;;  %v9064_v15 = vld [vmem:[#allocation8 + $0xda8] sm:$0xf0] }
 0x1e5   : > { %v7198_v29 = vor.u32 %v8871_v53, %v7197_v22  ;;  %v9016_v22 = vld [vmem:[#allocation8 + $0xc28] sm:$0xf0]  ;;  %v7677_v61 = vld [vmem:[#allocation8 + $0xb50] sm:$0xf] }
 0x1e6   : > { %4038 = vmatpush.bf16.msra.mxu1 %v7314_v52  ;;  %v7578_v52 = vor.u32 %v8966_v24, %v7577_v47  ;;  %v7946_v47 = vld [vmem:[#allocation8 + $0xd70] sm:$0xf] }
 0x1e7   : > { %4103 = vmatpush.bf16.msrb.mxu2 %v7318_v57  ;;  %4122 = vmatpush.bf16.msrb.mxu3 %v7358_v27  ;;  %v7177_v57 = vld [vmem:[#allocation8 + $0x768] sm:$0xf]  ;;  %v7194_v27 = vor.u32 %v8868_v31, %v7191_v42  ;;  %v9104_v31 = vld [vmem:[#allocation8 + $0xee8] sm:$0xf0]  ;;  %v7777_v42 = vld [vmem:[#allocation8 + $0xc18] sm:$0xf] }
 0x1e8   : > { %4083 = vmatpush.bf16.msrb.mxu0 %v7674_v34  ;;  %v7178_v20 = vor.u32 %v8866_v59, %v7177_v57  ;;  %v7778_v17 = vor.u32 %v9016_v22, %v7777_v42 }
 0x1ea   : > { %4039 = vmatpush.bf16.msra.mxu1 %v7294_v23  ;;  %4123 = vmatmul.bf16.vlgmr.msrb.gmra.mxu3 %v10018_v46  ;;  %v7597_v46 = vld [vmem:[#allocation8 + $0xab0] sm:$0xf]  ;;  %v8956_v23 = vld [vmem:[#allocation8 + $0xa48] sm:$0xf0] }
 0x1eb   : > { %4104 = vmatpush.bf16.msrb.mxu2 %v7298_v35  ;;  %4084 = vmatmul.bf16.vlgmr.msrb.gmra.mxu0 %v10070_v19  ;;  %v7598_v58 = vor.u32 %v8971_v56, %v7597_v46  ;;  %v3864_v13 = vpop.f32.mrf.mxu3  ;;  %v7538_v3 = vor.u32 %v8956_v23, %v7537_v32  ;;  %v7817_v46 = vld [vmem:[#allocation8 + $0xc68] sm:$0xf]  ;;  %v9026_v56 = vld [vmem:[#allocation8 + $0xc78] sm:$0xf0]  ;;  %v7717_v32 = vld [vmem:[#allocation8 + $0xba0] sm:$0xf] }
 0x1ec   : > { %4128 = vmatpush.bf16.msra.mxu0 %v7658_v2  ;;  %v10092_v25 = vadd.f32 %v3864_v13, %v10083_v44  ;;  %v7157_v44 = vld [vmem:[#allocation8 + $0x740] sm:$0xf]  ;;  %v8856_v2 = vld [vmem:[#allocation8 + $0x728] sm:$0xf0]  ;;  %v7818_v6 = vor.u32 %v9026_v56, %v7817_v46  ;;  %v7967_v13 = vor.u32 %v9064_v15, %v7966_v12  ;;  %v7926_v23 = vld [vmem:[#allocation8 + $0xd48] sm:$0xf] }
 0x1ed   : > { %v7158_v35 = vor.u32 %v8861_v30, %v7157_v44  ;;  %v7138_v33 = vor.u32 %v8856_v2, %v7137_v16  ;;  %v9099_v16 = vld [vmem:[#allocation8 + $0xec0] sm:$0xf0]  ;;  %v8066_v46 = vld [vmem:[#allocation8 + $0xe60] sm:$0xf]  ;;  %v9089_v56 = vld [vmem:[#allocation8 + $0xe70] sm:$0xf0] }
 0x1ee   : > { %4040 = vmatpush.bf16.msra.mxu1 %v7274_v55  ;;  %v7518_v55 = vor.u32 %v8951_v10, %v7517_v54  ;;  %v8286_v54 = vld [vmem:[#allocation8 + $0x1018] sm:$0xf]  ;;  %v9144_v10 = vld [vmem:[#allocation8 + $0x1028] sm:$0xf0]  ;;  %v7866_v12 = vld [vmem:[#allocation8 + $0xcd0] sm:$0xf] }
 0x1ef   : > { %4105 = vmatpush.bf16.msrb.mxu2 %v7278_v37  ;;  %v7117_v37 = vld [vmem:[#allocation8 + $0x6f0] sm:$0xf]  ;;  %v9039_v15 = vld [vmem:[#allocation8 + $0xce0] sm:$0xf0] }
 0x1f0   : > { %4129 = vmatpush.bf16.msra.mxu0 %v7638_v38  ;;  %v7118_v40 = vor.u32 %v8851_v50, %v7117_v37  ;;  %v8287_v37 = vor.u32 %v9144_v10, %v8286_v54  ;;  %v7906_v50 = vld [vmem:[#allocation8 + $0xd20] sm:$0xf] }
 0x1f2   : > { %4041 = vmatpush.bf16.msra.mxu1 %v7254_v9 }
 0x1f3   : > { %4106 = vmatpush.bf16.msrb.mxu2 %v7258_v7  ;;  %v3866_v34 = vpop.f32.mrf.mxu3 }
 0x1f4   : > { %4130 = vmatpush.bf16.msra.mxu0 %v7618_v41  ;;  %v7058_v41 = vor.u32 %v8836_v60, %v7057_v28  ;;  %v9054_v34 = vld [vmem:[#allocation8 + $0xd58] sm:$0xf0]  ;;  %v8991_v28 = vld [vmem:[#allocation8 + $0xb60] sm:$0xf0] }
 0x1f6   : > { %4042 = vmatpush.bf16.msra.mxu1 %v7234_v26 }
 0x1f7   : > { %4107 = vmatpush.bf16.msrb.mxu2 %v7238_v43  ;;  %v7038_v43 = vor.u32 %v8831_v5, %v7037_v4  ;;  %v9044_v4 = vld [vmem:[#allocation8 + $0xd08] sm:$0xf0] }
 0x1f8   : > { %4131 = vmatpush.bf16.msra.mxu0 %v7598_v58  ;;  %v9021_v58 = vld [vmem:[#allocation8 + $0xc50] sm:$0xf0] }
 0x1f9   : > { %v7798_v24 = vor.u32 %v9021_v58, %v7797_v0  ;;  %v7678_v0 = vor.u32 %v8991_v28, %v7677_v61 }
 0x1fa   : > { %4043 = vmatpush.bf16.msra.mxu1 %v7214_v39  ;;  %v9059_v39 = vld [vmem:[#allocation8 + $0xd80] sm:$0xf0] }
 0x1fb   : > { %4108 = vmatpush.bf16.msrb.mxu2 %v7218_v45  ;;  %v3916_v38 = vpop.f32.mrf.mxu3  ;;  %v8126_v45 = vld [vmem:[#allocation8 + $0xed8] sm:$0xf]  ;;  %v7947_v57 = vor.u32 %v9059_v39, %v7946_v47  ;;  %v8226_v39 = vld [vmem:[#allocation8 + $0xfa0] sm:$0xf] }
 0x1fc   : > { %4132 = vmatpush.bf16.msra.mxu0 %v7578_v52  ;;  %v10098_v11 = vadd.f32 %v3916_v38, %v3904_v8  ;;  %v8127_v52 = vor.u32 %v9104_v31, %v8126_v45  ;;  %v9049_v8 = vld [vmem:[#allocation8 + $0xd30] sm:$0xf0]  ;;  %v8046_v47 = vld [vmem:[#allocation8 + $0xe38] sm:$0xf] }
 0x1fd   : > { %v9129_v45 = vld [vmem:[#allocation8 + $0xfb0] sm:$0xf0] }
 0x1fe   : > { %4044 = vmatpush.bf16.msra.mxu1 %v7194_v27  ;;  %5765 = vmatpush.bf16.msra.mxu3 %v8127_v52  ;;  %v9011_v27 = vld [vmem:[#allocation8 + $0xc00] sm:$0xf0]  ;;  %v8227_v22 = vor.u32 %v9129_v45, %v8226_v39  ;;  %v10113_v52 = vld [vmem:[%s10321_s1 + $0x50] sm:$0x1f] }
 0x1ff   : > { %4109 = vmatpush.bf16.msrb.mxu2 %v7198_v29  ;;  %v7758_v29 = vor.u32 %v9011_v27, %v7757_v18  ;;  %v8026_v18 = vld [vmem:[#allocation8 + $0xe10] sm:$0xf]  ;;  %v9079_v27 = vld [vmem:[#allocation8 + $0xe20] sm:$0xf0]  ;;  %v4260_v10 = vperm.slane %v10113_v52, 2 }
 0x200   : > { %4133 = vmatpush.bf16.msra.mxu0 %v7558_v49  ;;  %v9006_v49 = vld [vmem:[#allocation8 + $0xbd8] sm:$0xf0] }
 0x201   : > { %4045 = vmatmul.bf16.vlgmr.msra.gmra.mxu1 %v10005_v21 }
 0x202   : > { %4089 = vmatpush.bf16.msrb.mxu1 %v7178_v20  ;;  %4110 = vmatmul.bf16.vlgmr.msrb.gmra.mxu2 %v10005_v21  ;;  %v7098_v21 = vor.u32 %v8846_v62, %v7097_v14  ;;  %v7737_v20 = vld [vmem:[#allocation8 + $0xbc8] sm:$0xf]  ;;  %v9094_v62 = vld [vmem:[#allocation8 + $0xe98] sm:$0xf0] }
 0x203   : > { %v3918_v9 = vpop.f32.mrf.mxu3  ;;  %5752 = vmatpush.bf16.msra.mxu2 %v7967_v13  ;;  %v7738_v30 = vor.u32 %v9006_v49, %v7737_v20  ;;  %v8086_v14 = vld [vmem:[#allocation8 + $0xe88] sm:$0xf]  ;;  %v9084_v13 = vld [vmem:[#allocation8 + $0xe48] sm:$0xf0]  ;;  %v4200_v20 = vperm.slane %v10113_v52, 1  ;;  %v8027_v49 = vor.u32 %v9079_v27, %v8026_v18 }
 0x204   : > { %4134 = vmatpush.bf16.msra.mxu0 %v7538_v3  ;;  %v8106_v3 = vld [vmem:[#allocation8 + $0xeb0] sm:$0xf]  ;;  %v8087_v63 = vor.u32 %v9094_v62, %v8086_v14  ;;  %v8047_v31 = vor.u32 %v9084_v13, %v8046_v47  ;;  %v8166_v14 = vld [vmem:[#allocation8 + $0xf28] sm:$0xf]  ;;  %v9114_v62 = vld [vmem:[#allocation8 + $0xf38] sm:$0xf0] }
 0x205   : > { %v8107_v36 = vor.u32 %v9099_v16, %v8106_v3  ;;  %v8266_v9 = vld [vmem:[#allocation8 + $0xff0] sm:$0xf]  ;;  %v4205_v3 = vmul.f32 0.0, %v4200_v20  ;;  %v8167_v61 = vor.u32 %v9114_v62, %v8166_v14  ;;  %v9184_v18 = vld [vmem:[#allocation8 + $0x1168] sm:$0xf0] }
 0x206   : > { %4090 = vmatpush.bf16.msrb.mxu1 %v7158_v35  ;;  %v7927_v35 = vor.u32 %v9054_v34, %v7926_v23  ;;  %v8006_v34 = vld [vmem:[#allocation8 + $0xde8] sm:$0xf] }
 0x207   : > { %v10101_v7 = vpop.f32.mrf.mxu0  ;;  %5753 = vmatpush.bf16.msra.mxu2 %v7947_v57  ;;  %5766 = vmatpush.bf16.msra.mxu3 %v8107_v36  ;;  %v9034_v57 = vld [vmem:[#allocation8 + $0xcb8] sm:$0xf0]  ;;  %v9119_v36 = vld [vmem:[#allocation8 + $0xf60] sm:$0xf0] }
 0x208   : > { %4135 = vmatpush.bf16.msra.mxu0 %v7518_v55  ;;  %v8996_v55 = vld [vmem:[#allocation8 + $0xb88] sm:$0xf0] }
 0x20a   : > { %4091 = vmatpush.bf16.msrb.mxu1 %v7138_v33  ;;  %v7697_v33 = vld [vmem:[#allocation8 + $0xb78] sm:$0xf] }
 0x20b   : > { %4136 = vmatmul.bf16.vlgmr.msra.gmra.mxu0 %v10036_v48  ;;  %v10103_v26 = vpop.f32.mrf.mxu3  ;;  %5754 = vmatpush.bf16.msra.mxu2 %v7927_v35  ;;  %v9074_v35 = vld [vmem:[#allocation8 + $0xdf8] sm:$0xf0] }
 0x20c   : > { %5778 = vmatpush.bf16.msrb.mxu0 %v8287_v37  ;;  %5767 = vmatpush.bf16.msra.mxu3 %v8087_v63  ;;  %v8007_v16 = vor.u32 %v9074_v35, %v8006_v34  ;;  %v7986_v37 = vld [vmem:[#allocation8 + $0xdc0] sm:$0xf]  ;;  %v7968_v63 = vld [vmem:[#allocation8 + $0xdac] sm:$0xf0] }
 0x20e   : > { %4092 = vmatpush.bf16.msrb.mxu1 %v7118_v40  ;;  %v7907_v40 = vor.u32 %v9049_v8, %v7906_v50  ;;  %v9069_v50 = vld [vmem:[#allocation8 + $0xdd0] sm:$0xf0] }
 0x20f   : > { %v3879_v48 = vpop.f32.mrf.mxu0 }
 0x210   : > { %5755 = vmatpush.bf16.msra.mxu2 %v7907_v40  ;;  %v8067_v48 = vor.u32 %v9089_v56, %v8066_v46  ;;  %v7987_v40 = vor.u32 %v9069_v50, %v7986_v37  ;;  %v7948_v46 = vld [vmem:[#allocation8 + $0xd84] sm:$0xf0]  ;;  %v9102_v56 = vld [vmem:[#allocation8 + $0xedc] sm:$0xf] }
 0x212   : > { %4093 = vmatpush.bf16.msrb.mxu1 %v7098_v21  ;;  %v7698_v21 = vor.u32 %v8996_v55, %v7697_v33  ;;  %5768 = vmatpush.bf16.msra.mxu3 %v8067_v48  ;;  %v4295_v33 = vperm.slane %v10113_v52, 3 }
 0x213   : > { %v3970_v53 = vpop.f32.mrf.mxu3 }
 0x214   : > { %v7846_v53 = vld [vmem:[#allocation8 + $0xca8] sm:$0xf] }
 0x216   : > { %4094 = vmatpush.bf16.msrb.mxu1 %v7078_v1  ;;  %v9139_v1 = vld [vmem:[#allocation8 + $0x1000] sm:$0xf0]  ;;  %5769 = vmatpush.bf16.msra.mxu3 %v8047_v31  ;;  %v10128_v31 = vld [vmem:[%s10321_s1 + $0x58] sm:$0x1f] }
 0x217   : > { %v10106_v59 = vpop.f32.mrf.mxu0  ;;  %v8267_v60 = vor.u32 %v9139_v1, %v8266_v9  ;;  %v8146_v9 = vld [vmem:[#allocation8 + $0xf00] sm:$0xf]  ;;  %v4201_v35 = vperm.slane %v10128_v31, 1 }
 0x219   : > { %5779 = vmatpush.bf16.msrb.mxu0 %v8267_v60  ;;  %v9109_v60 = vld [vmem:[#allocation8 + $0xf10] sm:$0xf0] }
 0x21a   : > { %4095 = vmatpush.bf16.msrb.mxu1 %v7058_v41  ;;  %v7886_v41 = vld [vmem:[#allocation8 + $0xcf8] sm:$0xf]  ;;  %5770 = vmatpush.bf16.msra.mxu3 %v8027_v49  ;;  %v8147_v47 = vor.u32 %v9109_v60, %v8146_v9  ;;  %v9092_v9 = vld [vmem:[#allocation8 + $0xe8c] sm:$0xf] }
 0x21b   : > { %v7887_v5 = vor.u32 %v9044_v4, %v7886_v41  ;;  %v9057_v41 = vld [vmem:[#allocation8 + $0xd74] sm:$0xf] }
 0x21d   : > { %5756 = vmatpush.bf16.msra.mxu2 %v7887_v5  ;;  %v4305_v5 = vmul.f32 0.0, %v4295_v33 }
 0x21e   : > { %4096 = vmatpush.bf16.msrb.mxu1 %v7038_v43  ;;  %v8246_v43 = vld [vmem:[#allocation8 + $0xfc8] sm:$0xf]  ;;  %5771 = vmatpush.bf16.msra.mxu3 %v8007_v16 }
 0x21f   : > { %v3931_v44 = vpop.f32.mrf.mxu0 }
 0x220   : > { %v9124_v44 = vld [vmem:[#allocation8 + $0xf88] sm:$0xf0] }
 0x221   : > { %4097 = vmatmul.bf16.vlgmr.msrb.gmra.mxu1 %v9994_v51  ;;  %v9001_v51 = vld [vmem:[#allocation8 + $0xbb0] sm:$0xf0] }
 0x222   : > { %4141 = vmatpush.bf16.msra.mxu1 %v7818_v6  ;;  %v7718_v2 = vor.u32 %v9001_v51, %v7717_v32  ;;  %v9134_v6 = vld [vmem:[#allocation8 + $0xfd8] sm:$0xf0]  ;;  %v7826_v32 = vld [vmem:[#allocation8 + $0xc80] sm:$0xf]  ;;  %v9029_v51 = vld [vmem:[#allocation8 + $0xc90] sm:$0xf0]  ;;  %5772 = vmatpush.bf16.msra.mxu3 %v7987_v40 }
 0x223   : > { %v8247_v58 = vor.u32 %v9134_v6, %v8246_v43  ;;  %v7827_v23 = vor.u32 %v9029_v51, %v7826_v32  ;;  %v4225_v43 = vrot.slane %v4205_v3, 1  ;;  %v10133_v32 = vld [vmem:[#allocation6 + $0xa] sm:$0x1f]  ;;  %v7928_v3 = vld [vmem:[#allocation8 + $0xd5c] sm:$0xf0] }
 0x224   : > { %v4418_v37 = vperm.slane %v10133_v32, 0 }
 0x225   : > { %5780 = vmatpush.bf16.msrb.mxu0 %v8247_v58  ;;  %v8128_v58 = vld [vmem:[#allocation8 + $0xeec] sm:$0xf0] }
 0x226   : > { %4142 = vmatpush.bf16.msra.mxu1 %v7798_v24  ;;  %v7867_v24 = vor.u32 %v9039_v15, %v7866_v12 }
 0x227   : > { %v10108_v38 = vpop.f32.mrf.mxu0 }
 0x228   : > { %5757 = vmatpush.bf16.msra.mxu2 %v7867_v24  ;;  %v7951_v24 = vor.u32 %v9057_v41, %v7948_v46  ;;  %v10145_v41 = vmul.f32 0.0, %v4201_v35  ;;  %v8406_v46 = vld [vmem:[#allocation8 + $0x1108] sm:$0xf] }
 0x229   : > { %5781 = vmatpush.bf16.msrb.mxu0 %v8227_v22 }
 0x22a   : > { %4143 = vmatpush.bf16.msra.mxu1 %v7778_v17  ;;  %v7847_v17 = vor.u32 %v9034_v57, %v7846_v53 }
 0x22c   : > { %5758 = vmatpush.bf16.msra.mxu2 %v7847_v17  ;;  %v8446_v17 = vld [vmem:[#allocation8 + $0x1158] sm:$0xf] }
 0x22d   : > { %v8447_v51 = vor.u32 %v9184_v18, %v8446_v17  ;;  %v9037_v17 = vld [vmem:[#allocation8 + $0xcd4] sm:$0xf]  ;;  %v4356_v18 = vperm.slane %v10128_v31, 4 }
 0x22e   : > { %4144 = vmatpush.bf16.msra.mxu1 %v7758_v29  ;;  %v8206_v29 = vld [vmem:[#allocation8 + $0xf78] sm:$0xf] }
 0x22f   : > { %v3983_v42 = vpop.f32.mrf.mxu0 }
 0x230   : > { %5759 = vmatpush.bf16.msra.mxu2 %v7827_v23  ;;  %v8131_v42 = vor.u32 %v9102_v56, %v8128_v58  ;;  %v4296_v58 = vperm.slane %v10128_v31, 3 }
 0x232   : > { %4145 = vmatpush.bf16.msra.mxu1 %v7738_v30  ;;  %v8207_v30 = vor.u32 %v9124_v44, %v8206_v29 }
 0x234   : > { %5782 = vmatpush.bf16.msrb.mxu0 %v8207_v30 }
 0x236   : > { %4146 = vmatpush.bf16.msra.mxu1 %v7718_v2  ;;  %v8186_v2 = vld [vmem:[#allocation8 + $0xf50] sm:$0xf] }
 0x237   : > { %v8187_v55 = vor.u32 %v9119_v36, %v8186_v2 }
 0x239   : > { %5783 = vmatpush.bf16.msrb.mxu0 %v8187_v55 }
 0x23a   : > { %4147 = vmatpush.bf16.msra.mxu1 %v7698_v21  ;;  %v9062_v21 = vld [vmem:[#allocation8 + $0xd9c] sm:$0xf] }
 0x23b   : > { %v7971_v28 = vor.u32 %v9062_v21, %v7968_v63  ;;  %v3930_v21 = vadd.f32 %v10106_v59, %v10098_v11  ;;  %v7908_v63 = vld [vmem:[#allocation8 + $0xd34] sm:$0xf0]  ;;  %v9174_v59 = vld [vmem:[#allocation8 + $0x1118] sm:$0xf0] }
 0x23d   : > { %5784 = vmatpush.bf16.msrb.mxu0 %v8167_v61  ;;  %5817 = vmatpush.bf16.msrb.mxu3 %v7971_v28  ;;  %v9047_v61 = vld [vmem:[#allocation8 + $0xd24] sm:$0xf] }
 0x23e   : > { %4148 = vmatpush.bf16.msra.mxu1 %v7678_v0  ;;  %v3890_v54 = vpop.f32.mrf.mxu1 }
 0x241   : > { %4149 = vmatmul.bf16.vlgmr.msra.gmra.mxu1 %v10070_v19  ;;  %v3878_v19 = vadd.f32 %v10101_v7, %v10092_v25  ;;  %v4185_v25 = vperm.slane %v10113_v52, 0  ;;  %v4355_v7 = vperm.slane %v10113_v52, 4  ;;  %v4325_v52 = vrot.slane %v4305_v5, 3  ;;  %5785 = vmatpush.bf16.msrb.mxu0 %v8147_v47  ;;  %v8088_v5 = vld [vmem:[#allocation8 + $0xe9c] sm:$0xf0] }
 0x242   : > { %5818 = vmatpush.bf16.msrb.mxu3 %v7951_v24  ;;  %5791 = vmatpush.bf16.msrb.mxu1 %v8447_v51  ;;  %v8091_v11 = vor.u32 %v9092_v9, %v8088_v5  ;;  %v9087_v47 = vld [vmem:[#allocation8 + $0xe64] sm:$0xf]  ;;  %v8068_v24 = vld [vmem:[#allocation8 + $0xe74] sm:$0xf0]  ;;  %v8048_v51 = vld [vmem:[#allocation8 + $0xe4c] sm:$0xf0] }
 0x243   : > { %v3891_v8 = vadd.f32 %v3890_v54, %v3878_v19  ;;  %v4190_v4 = vmul.f32 0.0, %v4185_v25  ;;  %v4365_v15 = vmul.f32 0.0, %v4355_v7  ;;  %v9052_v19 = vld [vmem:[#allocation8 + $0xd4c] sm:$0xf]  ;;  %v9097_v54 = vld [vmem:[#allocation8 + $0xeb4] sm:$0xf] }
 0x244   : > { %v10123_v45 = vpop.f32.mrf.mxu2  ;;  %v7931_v36 = vor.u32 %v9052_v19, %v7928_v3  ;;  %v4306_v19 = vmul.f32 0.0, %v4296_v58 }
 0x245   : > { %v4154_v1 = vmax.f32 %v3891_v8, 0.0  ;;  %v10130_v53 = vpop.f32.mrf.mxu3  ;;  %v4385_v30 = vrot.slane %v4365_v15, 4  ;;  %5830 = vmatpush.bf16.msra.mxu0 %v8131_v42  ;;  %v9179_v8 = vld [vmem:[#allocation8 + $0x1140] sm:$0xf0]  ;;  %v8407_v15 = vor.u32 %v9174_v59, %v8406_v46  ;;  %v7828_v59 = vld [vmem:[#allocation8 + $0xc94] sm:$0xf0] }
 0x246   : > { %v3892_v57 = vpop.f32.mrf.mxu1  ;;  %5819 = vmatpush.bf16.msrb.mxu3 %v7931_v36 }
 0x247   : > { %v4210_v48 = vmul.f32 %v4200_v20, %v4154_v1  ;;  %v4265_v6 = vmul.f32 %v4260_v10, %v4154_v1  ;;  %v4300_v0 = vmul.f32 %v4295_v33, %v4154_v1  ;;  %v4360_v12 = vmul.f32 %v4355_v7, %v4154_v1  ;;  %v8108_v10 = vld [vmem:[#allocation8 + $0xec4] sm:$0xf0]  ;;  %v8426_v33 = vld [vmem:[#allocation8 + $0x1130] sm:$0xf]  ;;  %v9169_v57 = vld [vmem:[#allocation8 + $0x10f0] sm:$0xf0] }
 0x248   : > { %v4195_v13 = vmul.f32 %v4185_v25, %v4154_v1  ;;  %v8111_v50 = vor.u32 %v9097_v54, %v8108_v10  ;;  %v8427_v62 = vor.u32 %v9179_v8, %v8426_v33 }
 0x249   : > { %v4226_v39 = vrot.slane %v4210_v48, 1  ;;  %v4320_v22 = vrot.slane %v4300_v0, 3  ;;  %v4275_v20 = vrot.slane %v4265_v6, 2  ;;  %v4380_v44 = vrot.slane %v4360_v12, 4  ;;  %v7888_v6 = vld [vmem:[#allocation8 + $0xd0c] sm:$0xf0] }
 0x24a   : > { %v10135_v34 = vpop.f32.mrf.mxu0  ;;  %5831 = vmatpush.bf16.msra.mxu0 %v8111_v50  ;;  %5792 = vmatpush.bf16.msrb.mxu1 %v8427_v62  ;;  %v4261_v0 = vperm.slane %v10128_v31, 2  ;;  %v7848_v50 = vld [vmem:[#allocation8 + $0xcbc] sm:$0xf0] }
 0x24b   : > { %v4227_v27 = vsel %vm379_vm0, %v4225_v43, %v4226_v39  ;;  %v4255_v29 = vadd.f32 %v4226_v39, %v4195_v13  ;;  %v4326_v2 = vsel %vm475_vm1, %v4320_v22, %v4325_v52  ;;  %v4386_v14 = vsel %vm536_vm2, %v4380_v44, %v4385_v30  ;;  %v9042_v43 = vld [vmem:[#allocation8 + $0xcfc] sm:$0xf]  ;;  %v8386_v52 = vld [vmem:[#allocation8 + $0x10e0] sm:$0xf] }
 0x24c   : > { %v4250_v49 = vadd.f32 %v4227_v27, %v4190_v4  ;;  %v3957_v25 = vpop.f32.mrf.mxu2  ;;  %v7911_v4 = vor.u32 %v9047_v61, %v7908_v63  ;;  %v7891_v42 = vor.u32 %v9042_v43, %v7888_v6  ;;  %v4186_v30 = vperm.slane %v10128_v31, 0  ;;  %v9077_v31 = vld [vmem:[#allocation8 + $0xe14] sm:$0xf] }
 0x24d   : > { %v4290_v23 = vadd.f32 %v4275_v20, %v4255_v29  ;;  %v4022_v28 = vpop.f32.mrf.mxu3  ;;  %v8387_v29 = vor.u32 %v9169_v57, %v8386_v52 }
 0x24e   : > { %v4285_v16 = vadd.f32 %v4275_v20, %v4250_v49  ;;  %v3942_v60 = vpop.f32.mrf.mxu1  ;;  %5820 = vmatpush.bf16.msrb.mxu3 %v7911_v4  ;;  %5832 = vmatpush.bf16.msra.mxu0 %v8091_v11  ;;  %v7868_v20 = vld [vmem:[#allocation8 + $0xce4] sm:$0xf0]  ;;  %v9082_v49 = vld [vmem:[#allocation8 + $0xe3c] sm:$0xf]  ;;  %v4191_v8 = vmul.f32 0.0, %v4186_v30 }
 0x24f   : > { %v4350_v55 = vadd.f32 %v4326_v2, %v4290_v23  ;;  %v3943_v56 = vadd.f32 %v3942_v60, %v3930_v21  ;;  %5793 = vmatpush.bf16.msrb.mxu1 %v8407_v15  ;;  %v8366_v23 = vld [vmem:[#allocation8 + $0x10b8] sm:$0xf]  ;;  %v9164_v2 = vld [vmem:[#allocation8 + $0x10c8] sm:$0xf0]  ;;  %v9159_v28 = vld [vmem:[#allocation8 + $0x10a0] sm:$0xf0] }
 0x250   : > { %v4345_v40 = vadd.f32 %v4320_v22, %v4285_v16  ;;  %v8071_v22 = vor.u32 %v9087_v47, %v8068_v24  ;;  %v7871_v16 = vor.u32 %v9037_v17, %v7868_v20  ;;  %v8367_v25 = vor.u32 %v9164_v2, %v8366_v23  ;;  %v9027_v11 = vld [vmem:[#allocation8 + $0xc84] sm:$0xf]  ;;  %v8008_v15 = vld [vmem:[#allocation8 + $0xdfc] sm:$0xf0] }
 0x251   : > { %v4410_v7 = vadd.f32 %v4386_v14, %v4350_v55  ;;  %v3956_v13 = vadd.f32 %v10123_v45, %v3943_v56  ;;  %v4228_v45 = vrot.slane %v10145_v41, 1  ;;  %v8051_v55 = vor.u32 %v9082_v49, %v8048_v51  ;;  %v9067_v23 = vld [vmem:[#allocation8 + $0xdc4] sm:$0xf] }
 0x252   : > { %v4405_v1 = vadd.f32 %v4380_v44, %v4345_v40  ;;  %v4035_v39 = vpop.f32.mrf.mxu0  ;;  %5821 = vmatpush.bf16.msrb.mxu3 %v7891_v42  ;;  %5833 = vmatpush.bf16.msra.mxu0 %v8071_v22  ;;  %v4366_v14 = vmul.f32 0.0, %v4356_v18  ;;  %v4327_v41 = vrot.slane %v4306_v19, 3  ;;  %v7821_v22 = vld [vmem:[%s10321_s1 + $0x60] sm:$0x1f]  ;;  %v7831_v57 = vor.u32 %v9027_v11, %v7828_v59  ;;  %v8268_v11 = vld [vmem:[#allocation8 + $0x1004] sm:$0xf0] }
 0x253   : > { %v4433_v48 = vadd.f32 %v4418_v37, %v4410_v7  ;;  %v4155_v44 = vmax.f32 %v3956_v13, 0.0  ;;  %5794 = vmatpush.bf16.msrb.mxu1 %v8387_v29  ;;  %v10162_v7 = vld [vmem:[#allocation9 + $0x5] sm:$0x1f]  ;;  %v9154_v39 = vld [vmem:[#allocation8 + $0x1078] sm:$0xf0]  ;;  %v4419_v29 = vperm.slane %v10133_v32, 1 }
 0x254   : > { %v4428_v12 = vadd.f32 %v4418_v37, %v4405_v1  ;;  %v10157_v33 = vpop.f32.mrf.mxu2  ;;  %v9032_v37 = vld [vmem:[#allocation8 + $0xcac] sm:$0xf]  ;;  %v2766_v61 = vperm.slane %v10162_v7, 2  ;;  %v8346_v1 = vld [vmem:[#allocation8 + $0x1090] sm:$0xf] }
 0x255   : > { %v4211_v36 = vmul.f32 %v4201_v35, %v4155_v44  ;;  %v4266_v54 = vmul.f32 %v4261_v0, %v4155_v44  ;;  %v4301_v10 = vmul.f32 %v4296_v58, %v4155_v44  ;;  %v4361_v40 = vmul.f32 %v4356_v18, %v4155_v44  ;;  %v10159_v62 = vpop.f32.mrf.mxu3  ;;  %v8028_v35 = vld [vmem:[#allocation8 + $0xe24] sm:$0xf0] }
 0x256   : > { %v4438_v27 = vpack.c.bf16 %v4433_v48, %v4428_v12  ;;  %v3944_v21 = vpop.f32.mrf.mxu1  ;;  %v4196_v63 = vmul.f32 %v4186_v30, %v4155_v44  ;;  %5822 = vmatpush.bf16.msrb.mxu3 %v7871_v16  ;;  %v7851_v4 = vor.u32 %v9032_v37, %v7848_v50  ;;  %5834 = vmatpush.bf16.msra.mxu0 %v8051_v55  ;;  %v4387_v0 = vrot.slane %v4366_v14, 4  ;;  %v9072_v12 = vld [vmem:[#allocation8 + $0xdec] sm:$0xf]  ;;  %v8326_v13 = vld [vmem:[#allocation8 + $0x1068] sm:$0xf] }
 0x257   : > { %v4229_v9 = vrot.slane %v4211_v36, 1  ;;  %v4321_v60 = vrot.slane %v4301_v10, 3  ;;  %v4276_v56 = vrot.slane %v4266_v54, 2  ;;  %v8031_v48 = vor.u32 %v9077_v31, %v8028_v35  ;;  %5795 = vmatpush.bf16.msrb.mxu1 %v8367_v25  ;;  %v8306_v50 = vld [vmem:[#allocation8 + $0x1040] sm:$0xf] }
 0x258   : > { %v10153_v3 = vrot.slane %v4438_v27, 3  ;;  %v4381_v6 = vrot.slane %v4361_v40, 4  ;;  %v8347_v58 = vor.u32 %v9159_v28, %v8346_v1  ;;  %v3969_v47 = vadd.f32 %v10103_v26, %v2766_v61  ;;  %v9142_v31 = vld [vmem:[#allocation8 + $0x101c] sm:$0xf]  ;;  %v8288_v35 = vld [vmem:[#allocation8 + $0x102c] sm:$0xf0] }
 0x259   : > { %v4230_v5 = vsel %vm379_vm0, %v4228_v45, %v4229_v9  ;;  %v4256_v46 = vadd.f32 %v4229_v9, %v4196_v63  ;;  %v4328_v52 = vsel %vm475_vm1, %v4321_v60, %v4327_v41  ;;  %v8011_v26 = vor.u32 %v9072_v12, %v8008_v15  ;;  %v7988_v45 = vld [vmem:[#allocation8 + $0xdd4] sm:$0xf0] }
 0x25a   : > { %5760 = vmatmul.bf16.vlgmr.msra.gmra.mxu2 %v10153_v3  ;;  %v4251_v43 = vadd.f32 %v4230_v5, %v4191_v8  ;;  %5823 = vmatpush.bf16.msrb.mxu3 %v7851_v4  ;;  %v3982_v17 = vadd.f32 %v10108_v38, %v3969_v47  ;;  %v4388_v30 = vsel %vm536_vm2, %v4381_v6, %v4387_v0  ;;  %v4202_v16 = vperm.slane %v7821_v22, 1  ;;  %v9149_v8 = vld [vmem:[#allocation8 + $0x1050] sm:$0xf0] }
 0x25b   : > { %v4291_v24 = vadd.f32 %v4276_v56, %v4256_v46  ;;  %5835 = vmatpush.bf16.msra.mxu0 %v8031_v48  ;;  %5796 = vmatpush.bf16.msrb.mxu1 %v8347_v58  ;;  %v8327_v51 = vor.u32 %v9154_v39, %v8326_v13  ;;  %v7991_v10 = vor.u32 %v9067_v23, %v7988_v45  ;;  %v4297_v55 = vperm.slane %v7821_v22, 3  ;;  %v9137_v48 = vld [vmem:[#allocation8 + $0xff4] sm:$0xf] }
 0x25c   : > { %v4286_v42 = vadd.f32 %v4276_v56, %v4251_v43  ;;  %v4009_v18 = vpop.f32.mrf.mxu2  ;;  %v4207_v14 = vmul.f32 0.0, %v4202_v16  ;;  %v4262_v21 = vperm.slane %v7821_v22, 2  ;;  %v8307_v25 = vor.u32 %v9149_v8, %v8306_v50  ;;  %v9222_v8 = vld [vmem:[#allocation8 + $0x129c] sm:$0xf] }
 0x25d   : > { %v4351_v27 = vadd.f32 %v4328_v52, %v4291_v24  ;;  %v4074_v49 = vpop.f32.mrf.mxu3  ;;  %v4357_v61 = vperm.slane %v7821_v22, 4  ;;  %v8291_v9 = vor.u32 %v9142_v31, %v8288_v35  ;;  %v8271_v15 = vor.u32 %v9137_v48, %v8268_v11  ;;  %v8248_v52 = vld [vmem:[#allocation8 + $0xfdc] sm:$0xf0] }
 0x25e   : > { %v4346_v20 = vadd.f32 %v4321_v60, %v4286_v42  ;;  %v3994_v44 = vpop.f32.mrf.mxu1  ;;  %5824 = vmatpush.bf16.msrb.mxu3 %v7831_v57  ;;  %v4307_v60 = vmul.f32 0.0, %v4297_v55  ;;  %v9127_v49 = vld [vmem:[#allocation8 + $0xfa4] sm:$0xf]  ;;  %v4420_v45 = vperm.slane %v10133_v32, 2  ;;  %v2767_v48 = vperm.slane %v10162_v7, 3 }
 0x25f   : > { %v3995_v19 = vadd.f32 %v3994_v44, %v3982_v17  ;;  %v4411_v2 = vadd.f32 %v4388_v30, %v4351_v27  ;;  %5836 = vmatpush.bf16.msra.mxu0 %v8011_v26  ;;  %5797 = vmatpush.bf16.msrb.mxu1 %v8327_v51  ;;  %v8228_v44 = vld [vmem:[#allocation8 + $0xfb4] sm:$0xf0] }
 0x260   : > { %v4406_v36 = vadd.f32 %v4381_v6, %v4346_v20  ;;  %v4367_v6 = vmul.f32 0.0, %v4357_v61  ;;  %v4329_v24 = vrot.slane %v4307_v60, 3 }
 0x261   : > { %v4008_v38 = vadd.f32 %v10157_v33, %v3995_v19  ;;  %v4434_v54 = vadd.f32 %v4419_v29, %v4411_v2  ;;  %v4187_v33 = vperm.slane %v7821_v22, 0  ;;  %v9132_v22 = vld [vmem:[#allocation8 + $0xfcc] sm:$0xf]  ;;  %v8231_v19 = vor.u32 %v9127_v49, %v8228_v44  ;;  %v9214_v49 = vld [vmem:[#allocation8 + $0x1258] sm:$0xf0] }
 0x262   : > { %v4429_v37 = vadd.f32 %v4419_v29, %v4406_v36  ;;  %v4389_v27 = vrot.slane %v4367_v6, 4  ;;  %v8251_v20 = vor.u32 %v9132_v22, %v8248_v52  ;;  %v7954_v6 = vld [vmem:[#allocation8 + $0xd78] sm:$0xf]  ;;  %v7934_v52 = vld [vmem:[#allocation8 + $0xd50] sm:$0xf] }
 0x263   : > { %v4021_v40 = vadd.f32 %v10130_v53, %v4008_v38  ;;  %5837 = vmatpush.bf16.msra.mxu0 %v7991_v10  ;;  %5798 = vmatpush.bf16.msrb.mxu1 %v8307_v25  ;;  %v4231_v53 = vrot.slane %v4207_v14, 1  ;;  %v4192_v59 = vmul.f32 0.0, %v4187_v33  ;;  %v8606_v10 = vld [vmem:[#allocation8 + $0x1298] sm:$0xf]  ;;  %v9065_v25 = vld [vmem:[#allocation8 + $0xdb0] sm:$0xf0] }
 0x264   : > { %v4439_v63 = vpack.c.bf16 %v4434_v54, %v4429_v37  ;;  %v8208_v54 = vld [vmem:[#allocation8 + $0xf8c] sm:$0xf0]  ;;  %v9212_v44 = vld [vmem:[#allocation8 + $0x124c] sm:$0xf] }
 0x265   : > { %v4156_v1 = vmax.f32 %v4021_v40, 0.0  ;;  %v10176_v28 = vpop.f32.mrf.mxu2  ;;  %v8608_v40 = vld [vmem:[#allocation8 + $0x12ac] sm:$0xf0] }
 0x266   : > { %v3996_v41 = vpop.f32.mrf.mxu1  ;;  %v10178_v4 = vrot.slane %v4439_v63, 3  ;;  %v8611_v31 = vor.u32 %v9222_v8, %v8608_v40  ;;  %v9117_v63 = vld [vmem:[#allocation8 + $0xf54] sm:$0xf] }
 0x267   : > { %v4212_v5 = vmul.f32 %v4202_v16, %v4156_v1  ;;  %v4267_v46 = vmul.f32 %v4262_v21, %v4156_v1  ;;  %v4302_v56 = vmul.f32 %v4297_v55, %v4156_v1  ;;  %5843 = vmatpush.bf16.msra.mxu1 %v8291_v9  ;;  %v4362_v43 = vmul.f32 %v4357_v61, %v4156_v1  ;;  %v9122_v16 = vld [vmem:[#allocation8 + $0xf7c] sm:$0xf]  ;;  %v9224_v55 = vld [vmem:[#allocation8 + $0x12a8] sm:$0xf0]  ;;  %v7974_v21 = vld [vmem:[#allocation8 + $0xda0] sm:$0xf] }
 0x268   : > { %v10180_v0 = vpop.f32.mrf.mxu0  ;;  %5773 = vmatmul.bf16.vlgmr.msra.gmra.mxu3 %v10178_v4  ;;  %v4197_v58 = vmul.f32 %v4187_v33, %v4156_v1  ;;  %v8607_v50 = vor.u32 %v9224_v55, %v8606_v10  ;;  %v8211_v61 = vor.u32 %v9122_v16, %v8208_v54  ;;  %v8188_v9 = vld [vmem:[#allocation8 + $0xf64] sm:$0xf0]  ;;  %v8586_v1 = vld [vmem:[#allocation8 + $0x1270] sm:$0xf]  ;;  %v9219_v41 = vld [vmem:[#allocation8 + $0x1280] sm:$0xf0] }
 0x269   : > { %v4232_v12 = vrot.slane %v4212_v5, 1  ;;  %v4322_v47 = vrot.slane %v4302_v56, 3  ;;  %v4277_v42 = vrot.slane %v4267_v46, 2  ;;  %v4382_v17 = vrot.slane %v4362_v43, 4  ;;  %5869 = vmatpush.bf16.msra.mxu3 %v8611_v31  ;;  %v9217_v5 = vld [vmem:[#allocation8 + $0x1274] sm:$0xf] }
 0x26a   : > { %5804 = vmatpush.bf16.msrb.mxu2 %v8607_v50  ;;  %v8587_v46 = vor.u32 %v9219_v41, %v8586_v1  ;;  %v7975_v43 = vor.u32 %v9065_v25, %v7974_v21  ;;  %v9209_v54 = vld [vmem:[#allocation8 + $0x1230] sm:$0xf0]  ;;  %v9207_v10 = vld [vmem:[#allocation8 + $0x1224] sm:$0xf]  ;;  %v8548_v55 = vld [vmem:[#allocation8 + $0x1234] sm:$0xf0] }
 0x26b   : > { %v4233_v13 = vsel %vm379_vm0, %v4231_v53, %v4232_v12  ;;  %v4257_v39 = vadd.f32 %v4232_v12, %v4197_v58  ;;  %5844 = vmatpush.bf16.msra.mxu1 %v8271_v15  ;;  %v4330_v51 = vsel %vm475_vm1, %v4322_v47, %v4329_v24  ;;  %v4390_v38 = vsel %vm536_vm2, %v4382_v17, %v4389_v27  ;;  %v8588_v53 = vld [vmem:[#allocation8 + $0x1284] sm:$0xf0]  ;;  %v9060_v58 = vld [vmem:[#allocation8 + $0xd88] sm:$0xf0]  ;;  %v8168_v24 = vld [vmem:[#allocation8 + $0xf3c] sm:$0xf0] }
 0x26c   : > { %v4252_v57 = vadd.f32 %v4233_v13, %v4192_v59  ;;  %v8591_v56 = vor.u32 %v9217_v5, %v8588_v53  ;;  %v10193_v59 = vld [vmem:[%s10321_s1 + $0x68] sm:$0x1f]  ;;  %v8191_v12 = vor.u32 %v9117_v63, %v8188_v9  ;;  %v4034_v13 = vadd.f32 %v10135_v34, %v2767_v48  ;;  %v9055_v27 = vld [vmem:[#allocation8 + $0xd60] sm:$0xf0]  ;;  %v8526_v25 = vld [vmem:[#allocation8 + $0x11f8] sm:$0xf] }
 0x26d   : > { %v10184_v18 = vpop.f32.mrf.mxu3  ;;  %v4292_v29 = vadd.f32 %v4277_v42, %v4257_v39  ;;  %v4061_v26 = vpop.f32.mrf.mxu2  ;;  %v7955_v22 = vor.u32 %v9060_v58, %v7954_v6  ;;  %v4298_v50 = vperm.slane %v10193_v59, 3  ;;  %v8551_v8 = vor.u32 %v9207_v10, %v8548_v55  ;;  %v9204_v31 = vld [vmem:[#allocation8 + $0x1208] sm:$0xf0]  ;;  %v9202_v63 = vld [vmem:[#allocation8 + $0x11fc] sm:$0xf] }
 0x26e   : > { %v4287_v30 = vadd.f32 %v4277_v42, %v4252_v57  ;;  %5805 = vmatpush.bf16.msrb.mxu2 %v8587_v46  ;;  %5870 = vmatpush.bf16.msra.mxu3 %v8591_v56  ;;  %v4203_v42 = vperm.slane %v10193_v59, 1  ;;  %v8148_v26 = vld [vmem:[#allocation8 + $0xf14] sm:$0xf0]  ;;  %v8528_v9 = vld [vmem:[#allocation8 + $0x120c] sm:$0xf0] }
 0x26f   : > { %v4352_v23 = vadd.f32 %v4330_v51, %v4292_v29  ;;  %5845 = vmatpush.bf16.msra.mxu1 %v8251_v20  ;;  %v9107_v29 = vld [vmem:[#allocation8 + $0xf04] sm:$0xf]  ;;  %v8566_v20 = vld [vmem:[#allocation8 + $0x1248] sm:$0xf]  ;;  %v8568_v51 = vld [vmem:[#allocation8 + $0x125c] sm:$0xf0]  ;;  %v8531_v56 = vor.u32 %v9202_v63, %v8528_v9 }
 0x270   : > { %v4087_v2 = vpop.f32.mrf.mxu0  ;;  %v4347_v36 = vadd.f32 %v4322_v47, %v4287_v30  ;;  %v9112_v47 = vld [vmem:[#allocation8 + $0xf2c] sm:$0xf]  ;;  %v8567_v34 = vor.u32 %v9214_v49, %v8566_v20  ;;  %v8151_v16 = vor.u32 %v9107_v29, %v8148_v26  ;;  %v9045_v41 = vld [vmem:[#allocation8 + $0xd10] sm:$0xf0]  ;;  %v4308_v53 = vmul.f32 0.0, %v4298_v50 }
 0x271   : > { %v4412_v37 = vadd.f32 %v4390_v38, %v4352_v23  ;;  %v8171_v57 = vor.u32 %v9112_v47, %v8168_v24  ;;  %v7935_v23 = vor.u32 %v9055_v27, %v7934_v52  ;;  %v8571_v2 = vor.u32 %v9212_v44, %v8568_v51  ;;  %v8506_v6 = vld [vmem:[#allocation8 + $0x11d0] sm:$0xf]  ;;  %v9199_v58 = vld [vmem:[#allocation8 + $0x11e0] sm:$0xf0]  ;;  %v9194_v51 = vld [vmem:[#allocation8 + $0x11b8] sm:$0xf0] }
 0x272   : > { %v4407_v14 = vadd.f32 %v4382_v17, %v4347_v36  ;;  %v8546_v36 = vld [vmem:[#allocation8 + $0x1220] sm:$0xf]  ;;  %5806 = vmatpush.bf16.msrb.mxu2 %v8567_v34  ;;  %v8507_v27 = vor.u32 %v9199_v58, %v8506_v6  ;;  %v8486_v34 = vld [vmem:[#allocation8 + $0x11a8] sm:$0xf] }
 0x273   : > { %v4435_v35 = vadd.f32 %v4420_v45, %v4412_v37  ;;  %5846 = vmatpush.bf16.msra.mxu1 %v8231_v19  ;;  %v9050_v19 = vld [vmem:[#allocation8 + $0xd38] sm:$0xf0]  ;;  %v4208_v37 = vmul.f32 0.0, %v4203_v42  ;;  %5871 = vmatpush.bf16.msra.mxu3 %v8571_v2  ;;  %v8487_v55 = vor.u32 %v9194_v51, %v8486_v34 }
 0x274   : > { %v4430_v60 = vadd.f32 %v4420_v45, %v4407_v14  ;;  %v7914_v45 = vld [vmem:[#allocation8 + $0xd28] sm:$0xf]  ;;  %v4263_v14 = vperm.slane %v10193_v59, 2 }
 0x275   : > { %v4126_v33 = vpop.f32.mrf.mxu3  ;;  %v4234_v5 = vrot.slane %v4208_v37, 1 }
 0x276   : > { %v4440_v11 = vpack.c.bf16 %v4435_v35, %v4430_v60  ;;  %v4188_v33 = vperm.slane %v10193_v59, 0  ;;  %v7894_v60 = vld [vmem:[#allocation8 + $0xd00] sm:$0xf] }
 0x277   : > { %5847 = vmatpush.bf16.msra.mxu1 %v8211_v61  ;;  %v4358_v61 = vperm.slane %v10193_v59, 4  ;;  %5872 = vmatpush.bf16.msra.mxu3 %v8551_v8  ;;  %v7895_v24 = vor.u32 %v9045_v41, %v7894_v60  ;;  %v4421_v8 = vperm.slane %v10133_v32, 3  ;;  %v8448_v60 = vld [vmem:[#allocation8 + $0x116c] sm:$0xf0]  ;;  %v9030_v41 = vld [vmem:[#allocation8 + $0xc98] sm:$0xf0] }
 0x278   : > { %5825 = vmatmul.bf16.vlgmr.msrb.gmra.mxu3 %v10153_v3  ;;  %v10196_v15 = vrot.slane %v4440_v11, 3  ;;  %v4193_v47 = vmul.f32 0.0, %v4188_v33  ;;  %v8454_v32 = vld [vmem:[#allocation8 + $0x1160] sm:$0xf] }
 0x27a   : > { %5786 = vmatmul.bf16.vlgmr.msrb.gmra.mxu0 %v10196_v15 }
 0x27b   : > { %5882 = vmatpush.bf16.msrb.mxu0 %v7975_v43  ;;  %5848 = vmatpush.bf16.msra.mxu1 %v8191_v12  ;;  %v9197_v12 = vld [vmem:[#allocation8 + $0x11d4] sm:$0xf] }
 0x27c   : > { %5873 = vmatpush.bf16.msra.mxu3 %v8531_v56  ;;  %v8614_v56 = vld [vmem:[#allocation8 + $0x12a0] sm:$0xf] }
 0x27e   : > { %v4046_v39 = vpop.f32.mrf.mxu1 }
 0x27f   : > { %v4047_v17 = vadd.f32 %v4046_v39, %v4034_v13  ;;  %5883 = vmatpush.bf16.msrb.mxu0 %v7955_v22  ;;  %5849 = vmatpush.bf16.msra.mxu1 %v8171_v57  ;;  %v4368_v13 = vmul.f32 0.0, %v4358_v61  ;;  %v8508_v39 = vld [vmem:[#allocation8 + $0x11e4] sm:$0xf0]  ;;  %v7874_v57 = vld [vmem:[#allocation8 + $0xcd8] sm:$0xf] }
 0x280   : > { %v8511_v20 = vor.u32 %v9197_v12, %v8508_v39  ;;  %v8134_v39 = vld [vmem:[#allocation8 + $0xee0] sm:$0xf] }
 0x281   : > { %v4060_v30 = vadd.f32 %v10176_v28, %v4047_v17  ;;  %v8547_v28 = vor.u32 %v9209_v54, %v8546_v36  ;;  %v9040_v17 = vld [vmem:[#allocation8 + $0xce8] sm:$0xf0]  ;;  %v4391_v2 = vrot.slane %v4368_v13, 4  ;;  %v8488_v36 = vld [vmem:[#allocation8 + $0x11bc] sm:$0xf0] }
 0x282   : > { %v9035_v54 = vld [vmem:[#allocation8 + $0xcc0] sm:$0xf0]  ;;  %5874 = vmatpush.bf16.msra.mxu3 %v8511_v20 }
 0x283   : > { %v4073_v38 = vadd.f32 %v10159_v62, %v4060_v30  ;;  %5884 = vmatpush.bf16.msrb.mxu0 %v7935_v23  ;;  %v7915_v62 = vor.u32 %v9050_v19, %v7914_v45  ;;  %5850 = vmatpush.bf16.msra.mxu1 %v8151_v16  ;;  %v9192_v23 = vld [vmem:[#allocation8 + $0x11ac] sm:$0xf]  ;;  %v7875_v45 = vor.u32 %v9040_v17, %v7874_v57  ;;  %v8434_v57 = vld [vmem:[#allocation8 + $0x1138] sm:$0xf] }
 0x284   : > { %5807 = vmatpush.bf16.msrb.mxu2 %v8547_v28  ;;  %v9180_v17 = vld [vmem:[#allocation8 + $0x1148] sm:$0xf0] }
 0x285   : > { %v4086_v40 = vadd.f32 %v10180_v0, %v4073_v38  ;;  %v10206_v21 = vpop.f32.mrf.mxu2  ;;  %v8527_v0 = vor.u32 %v9204_v31, %v8526_v25  ;;  %v7854_v38 = vld [vmem:[#allocation8 + $0xcb0] sm:$0xf]  ;;  %v8466_v31 = vld [vmem:[#allocation8 + $0x1180] sm:$0xf]  ;;  %v8435_v34 = vor.u32 %v9180_v17, %v8434_v57  ;;  %v9195_v57 = vld [vmem:[#allocation8 + $0x11c0] sm:$0xf0] }
 0x286   : > { %v4048_v35 = vpop.f32.mrf.mxu1 }
 0x287   : > { %v4157_v1 = vmax.f32 %v4086_v40, 0.0  ;;  %5885 = vmatpush.bf16.msrb.mxu0 %v7915_v62  ;;  %v8491_v40 = vor.u32 %v9192_v23, %v8488_v36  ;;  %v9189_v35 = vld [vmem:[#allocation8 + $0x1190] sm:$0xf0]  ;;  %v9187_v62 = vld [vmem:[#allocation8 + $0x1184] sm:$0xf] }
 0x288   : > { %v10210_v46 = vpop.f32.mrf.mxu0  ;;  %5808 = vmatpush.bf16.msrb.mxu2 %v8527_v0  ;;  %v9095_v36 = vld [vmem:[#allocation8 + $0xea0] sm:$0xf0] }
 0x289   : > { %v4213_v48 = vmul.f32 %v4203_v42, %v4157_v1  ;;  %v4268_v11 = vmul.f32 %v4263_v14, %v4157_v1  ;;  %v4303_v43 = vmul.f32 %v4298_v50, %v4157_v1  ;;  %v4363_v59 = vmul.f32 %v4358_v61, %v4157_v1  ;;  %v7834_v14 = vld [vmem:[#allocation8 + $0xc88] sm:$0xf]  ;;  %5875 = vmatpush.bf16.msra.mxu3 %v8491_v40 }
 0x28a   : > { %v4198_v22 = vmul.f32 %v4188_v33, %v4157_v1  ;;  %v4331_v42 = vrot.slane %v4308_v53, 3  ;;  %5838 = vmatmul.bf16.vlgmr.msra.gmra.mxu0 %v10178_v4  ;;  %v7855_v61 = vor.u32 %v9035_v54, %v7854_v38  ;;  %v8468_v1 = vld [vmem:[#allocation8 + $0x1194] sm:$0xf0]  ;;  %v9182_v33 = vld [vmem:[#allocation8 + $0x115c] sm:$0xf] }
 0x28b   : > { %v4235_v52 = vrot.slane %v4213_v48, 1  ;;  %v4278_v29 = vrot.slane %v4268_v11, 2  ;;  %v4323_v26 = vrot.slane %v4303_v43, 3  ;;  %5886 = vmatpush.bf16.msrb.mxu0 %v7895_v24  ;;  %v4383_v16 = vrot.slane %v4363_v59, 4  ;;  %v9185_v53 = vld [vmem:[#allocation8 + $0x1170] sm:$0xf0] }
 0x28c   : > { %5809 = vmatpush.bf16.msrb.mxu2 %v8507_v27  ;;  %v9225_v48 = vld [vmem:[#allocation8 + $0x12b0] sm:$0xf0]  ;;  %v8471_v43 = vor.u32 %v9187_v62, %v8468_v1  ;;  %v8451_v6 = vor.u32 %v9182_v33, %v8448_v60  ;;  %v8455_v12 = vor.u32 %v9185_v53, %v8454_v32  ;;  %v8428_v24 = vld [vmem:[#allocation8 + $0x1144] sm:$0xf0]  ;;  %v7835_v59 = vor.u32 %v9030_v41, %v7834_v14  ;;  %v8534_v62 = vld [vmem:[#allocation8 + $0x1200] sm:$0xf] }
 0x28d   : > { %v4258_v49 = vadd.f32 %v4235_v52, %v4198_v22  ;;  %v4113_v44 = vpop.f32.mrf.mxu2  ;;  %v4236_v30 = vsel %vm379_vm0, %v4234_v5, %v4235_v52  ;;  %v4332_v28 = vsel %vm475_vm1, %v4323_v26, %v4331_v42  ;;  %v4392_v9 = vsel %vm536_vm2, %v4383_v16, %v4391_v2  ;;  %v9105_v22 = vld [vmem:[#allocation8 + $0xef0] sm:$0xf0]  ;;  %v8094_v2 = vld [vmem:[#allocation8 + $0xe90] sm:$0xf]  ;;  %v8554_v54 = vld [vmem:[#allocation8 + $0x1228] sm:$0xf] }
 0x28e   : > { %v4253_v19 = vadd.f32 %v4236_v30, %v4193_v47  ;;  %v8467_v5 = vor.u32 %v9189_v35, %v8466_v31  ;;  %v9177_v47 = vld [vmem:[#allocation8 + $0x1134] sm:$0xf]  ;;  %v8615_v52 = vor.u32 %v9225_v48, %v8614_v56  ;;  %5876 = vmatpush.bf16.msra.mxu3 %v8471_v43  ;;  %v8135_v20 = vor.u32 %v9105_v22, %v8134_v39  ;;  %v8114_v44 = vld [vmem:[#allocation8 + $0xeb8] sm:$0xf]  ;;  %v9100_v30 = vld [vmem:[#allocation8 + $0xec8] sm:$0xf0] }
 0x28f   : > { %v4293_v10 = vadd.f32 %v4278_v29, %v4258_v49  ;;  %5887 = vmatpush.bf16.msrb.mxu0 %v7875_v45  ;;  %v8431_v42 = vor.u32 %v9177_v47, %v8428_v24  ;;  %v8574_v45 = vld [vmem:[#allocation8 + $0x1250] sm:$0xf]  ;;  %v9175_v35 = vld [vmem:[#allocation8 + $0x1120] sm:$0xf0]  ;;  %v8054_v1 = vld [vmem:[#allocation8 + $0xe40] sm:$0xf] }
 0x290   : > { %v4139_v37 = vpop.f32.mrf.mxu0  ;;  %v4288_v50 = vadd.f32 %v4278_v29, %v4253_v19  ;;  %5810 = vmatpush.bf16.msrb.mxu2 %v8487_v55  ;;  %v8594_v29 = vld [vmem:[#allocation8 + $0x1278] sm:$0xf]  ;;  %v9215_v19 = vld [vmem:[#allocation8 + $0x1260] sm:$0xf0]  ;;  %v8095_v55 = vor.u32 %v9095_v36, %v8094_v2  ;;  %v8414_v31 = vld [vmem:[#allocation8 + $0x1110] sm:$0xf] }
 0x291   : > { %v4353_v25 = vadd.f32 %v4332_v28, %v4293_v10  ;;  %v8575_v38 = vor.u32 %v9215_v19, %v8574_v45  ;;  %v9210_v10 = vld [vmem:[#allocation8 + $0x1238] sm:$0xf0]  ;;  %v8074_v37 = vld [vmem:[#allocation8 + $0xe68] sm:$0xf]  ;;  %v9172_v28 = vld [vmem:[#allocation8 + $0x110c] sm:$0xf] }
 0x292   : > { %v4348_v63 = vadd.f32 %v4323_v26, %v4288_v50  ;;  %v9220_v26 = vld [vmem:[#allocation8 + $0x1288] sm:$0xf0]  ;;  %5921 = vmatpush.bf16.msrb.mxu3 %v8455_v12  ;;  %v9090_v50 = vld [vmem:[#allocation8 + $0xe78] sm:$0xf0]  ;;  %v8555_v14 = vor.u32 %v9210_v10, %v8554_v54  ;;  %v9085_v33 = vld [vmem:[#allocation8 + $0xe50] sm:$0xf0] }
 0x293   : > { %v4413_v0 = vadd.f32 %v4392_v9, %v4353_v25  ;;  %5888 = vmatpush.bf16.msrb.mxu0 %v7855_v61  ;;  %v8595_v23 = vor.u32 %v9220_v26, %v8594_v29  ;;  %v9205_v61 = vld [vmem:[#allocation8 + $0x1210] sm:$0xf0]  ;;  %v8075_v9 = vor.u32 %v9090_v50, %v8074_v37  ;;  %v9167_v60 = vld [vmem:[#allocation8 + $0x10e4] sm:$0xf]  ;;  %v8388_v41 = vld [vmem:[#allocation8 + $0x10f4] sm:$0xf0] }
 0x294   : > { %v4408_v11 = vadd.f32 %v4383_v16, %v4348_v63  ;;  %5811 = vmatpush.bf16.msrb.mxu2 %v8467_v5  ;;  %v8115_v16 = vor.u32 %v9100_v30, %v8114_v44  ;;  %v8415_v63 = vor.u32 %v9175_v35, %v8414_v31  ;;  %v8535_v5 = vor.u32 %v9205_v61, %v8534_v62  ;;  %v8394_v53 = vld [vmem:[#allocation8 + $0x10e8] sm:$0xf]  ;;  %v9170_v56 = vld [vmem:[#allocation8 + $0x10f8] sm:$0xf0]  ;;  %v8514_v48 = vld [vmem:[#allocation8 + $0x11d8] sm:$0xf] }
 0x295   : > { %v4436_v58 = vadd.f32 %v4421_v8, %v4413_v0  ;;  %v2768_v0 = vperm.slane %v10162_v7, 4  ;;  %v8391_v32 = vor.u32 %v9167_v60, %v8388_v41  ;;  %v8395_v43 = vor.u32 %v9170_v56, %v8394_v53  ;;  %v9080_v12 = vld [vmem:[#allocation8 + $0xe28] sm:$0xf0]  ;;  %v9162_v47 = vld [vmem:[#allocation8 + $0x10bc] sm:$0xf] }
 0x296   : > { %v4431_v13 = vadd.f32 %v4421_v8, %v4408_v11  ;;  %5922 = vmatpush.bf16.msrb.mxu3 %v8435_v34  ;;  %v8408_v8 = vld [vmem:[#allocation8 + $0x111c] sm:$0xf0]  ;;  %v9200_v11 = vld [vmem:[#allocation8 + $0x11e8] sm:$0xf0]  ;;  %v8368_v24 = vld [vmem:[#allocation8 + $0x10cc] sm:$0xf0] }
 0x297   : > { %5889 = vmatpush.bf16.msrb.mxu0 %v7835_v59  ;;  %v8411_v25 = vor.u32 %v9172_v28, %v8408_v8  ;;  %v8374_v59 = vld [vmem:[#allocation8 + $0x10c0] sm:$0xf]  ;;  %v8515_v7 = vor.u32 %v9200_v11, %v8514_v48  ;;  %v8371_v39 = vor.u32 %v9162_v47, %v8368_v24  ;;  %v9165_v22 = vld [vmem:[#allocation8 + $0x10d0] sm:$0xf0]  ;;  %v8348_v26 = vld [vmem:[#allocation8 + $0x10a4] sm:$0xf0] }
 0x298   : > { %v4441_v27 = vpack.c.bf16 %v4436_v58, %v4431_v13  ;;  %5856 = vmatpush.bf16.msra.mxu2 %v8451_v6  ;;  %v8055_v6 = vor.u32 %v9085_v33, %v8054_v1  ;;  %v8034_v58 = vld [vmem:[#allocation8 + $0xe18] sm:$0xf]  ;;  %v8375_v17 = vor.u32 %v9165_v22, %v8374_v59  ;;  %v8014_v44 = vld [vmem:[#allocation8 + $0xdf0] sm:$0xf]  ;;  %v9075_v30 = vld [vmem:[#allocation8 + $0xe00] sm:$0xf0] }
 0x299   : > { %v8035_v29 = vor.u32 %v9080_v12, %v8034_v58  ;;  %v8474_v34 = vld [vmem:[#allocation8 + $0x1188] sm:$0xf]  ;;  %v9152_v2 = vld [vmem:[#allocation8 + $0x106c] sm:$0xf]  ;;  %v8328_v36 = vld [vmem:[#allocation8 + $0x107c] sm:$0xf0]  ;;  %v8015_v37 = vor.u32 %v9075_v30, %v8014_v44 }
 0x29a   : > { %v10217_v49 = vrot.slane %v4441_v27, 3  ;;  %5890 = vmatmul.bf16.vlgmr.msrb.gmra.mxu0 %v10153_v3  ;;  %5923 = vmatpush.bf16.msrb.mxu3 %v8415_v63  ;;  %v9157_v27 = vld [vmem:[#allocation8 + $0x1094] sm:$0xf]  ;;  %v7994_v54 = vld [vmem:[#allocation8 + $0xdc8] sm:$0xf] }
 0x29b   : > { %5934 = vmatpush.bf16.msra.mxu0 %v8615_v52  ;;  %v8494_v52 = vld [vmem:[#allocation8 + $0x11b0] sm:$0xf]  ;;  %v9070_v50 = vld [vmem:[#allocation8 + $0xdd8] sm:$0xf0]  ;;  %v9183_v28 = vld [vmem:[#allocation8 + $0x1164] sm:$0xf] }
 0x29c   : > { %5799 = vmatmul.bf16.vlgmr.msrb.gmra.mxu1 %v10217_v49  ;;  %5857 = vmatpush.bf16.msra.mxu2 %v8431_v42  ;;  %v8354_v42 = vld [vmem:[#allocation8 + $0x1098] sm:$0xf]  ;;  %v8495_v19 = vor.u32 %v9195_v57, %v8494_v52  ;;  %v8334_v10 = vld [vmem:[#allocation8 + $0x1070] sm:$0xf]  ;;  %v8314_v63 = vld [vmem:[#allocation8 + $0x1048] sm:$0xf]  ;;  %v7995_v60 = vor.u32 %v9070_v50, %v7994_v54 }
 0x29d   : > { %5895 = vmatpush.bf16.msrb.mxu1 %v8135_v20  ;;  %v9160_v20 = vld [vmem:[#allocation8 + $0x10a8] sm:$0xf0]  ;;  %v8456_v8 = vld [vmem:[#allocation8 + $0x1174] sm:$0xf0]  ;;  %v9178_v41 = vld [vmem:[#allocation8 + $0x113c] sm:$0xf] }
 0x29e   : > { %v4098_v51 = vpop.f32.mrf.mxu1  ;;  %5924 = vmatpush.bf16.msrb.mxu3 %v8395_v43  ;;  %v8308_v31 = vld [vmem:[#allocation8 + $0x1054] sm:$0xf0]  ;;  %v8459_v1 = vor.u32 %v9183_v28, %v8456_v8  ;;  %v9058_v48 = vld [vmem:[#allocation8 + $0xd7c] sm:$0xf]  ;;  %v9173_v24 = vld [vmem:[#allocation8 + $0x1114] sm:$0xf] }
 0x29f   : > { %5935 = vmatpush.bf16.msra.mxu0 %v8595_v23  ;;  %v4099_v13 = vadd.f32 %v4098_v51, %v2768_v0  ;;  %v8351_v51 = vor.u32 %v9157_v27, %v8348_v26  ;;  %v8355_v23 = vor.u32 %v9160_v20, %v8354_v42  ;;  %v7976_v61 = vld [vmem:[#allocation8 + $0xdb4] sm:$0xf0]  ;;  %v8436_v0 = vld [vmem:[#allocation8 + $0x114c] sm:$0xf0]  ;;  %v8416_v59 = vld [vmem:[#allocation8 + $0x1124] sm:$0xf0] }
 0x2a0   : > { %5858 = vmatpush.bf16.msra.mxu2 %v8411_v25  ;;  %v9147_v25 = vld [vmem:[#allocation8 + $0x1044] sm:$0xf]  ;;  %v9053_v22 = vld [vmem:[#allocation8 + $0xd54] sm:$0xf]  ;;  %v7936_v52 = vld [vmem:[#allocation8 + $0xd64] sm:$0xf0] }
 0x2a1   : > { %5896 = vmatpush.bf16.msrb.mxu1 %v8115_v16  ;;  %v4112_v45 = vadd.f32 %v10206_v21, %v4099_v13  ;;  %v9190_v16 = vld [vmem:[#allocation8 + $0x1198] sm:$0xf0]  ;;  %v8331_v21 = vor.u32 %v9152_v2, %v8328_v36  ;;  %v9168_v20 = vld [vmem:[#allocation8 + $0x10ec] sm:$0xf]  ;;  %v8396_v44 = vld [vmem:[#allocation8 + $0x10fc] sm:$0xf0] }
 0x2a2   : > { %5925 = vmatpush.bf16.msrb.mxu3 %v8375_v17  ;;  %v8475_v35 = vor.u32 %v9190_v16, %v8474_v34  ;;  %v8419_v17 = vor.u32 %v9173_v24, %v8416_v59  ;;  %v9048_v16 = vld [vmem:[#allocation8 + $0xd2c] sm:$0xf]  ;;  %v7916_v2 = vld [vmem:[#allocation8 + $0xd3c] sm:$0xf0]  ;;  %v9163_v28 = vld [vmem:[#allocation8 + $0x10c4] sm:$0xf] }
 0x2a3   : > { %5936 = vmatpush.bf16.msra.mxu0 %v8575_v38  ;;  %v10227_v38 = vld [vmem:[%s10321_s1 + $0x70] sm:$0x1f]  ;;  %v4125_v62 = vadd.f32 %v10184_v18, %v4112_v45  ;;  %v8376_v8 = vld [vmem:[#allocation8 + $0x10d4] sm:$0xf0]  ;;  %v9143_v59 = vld [vmem:[#allocation8 + $0x1024] sm:$0xf] }
 0x2a4   : > { %5859 = vmatpush.bf16.msra.mxu2 %v8391_v32  ;;  %v4204_v33 = vperm.slane %v10227_v38, 1  ;;  %v7956_v18 = vld [vmem:[#allocation8 + $0xd8c] sm:$0xf0]  ;;  %v4299_v43 = vperm.slane %v10227_v38, 3  ;;  %v4264_v47 = vperm.slane %v10227_v38, 2  ;;  %v4359_v13 = vperm.slane %v10227_v38, 4 }
 0x2a5   : > { %5897 = vmatpush.bf16.msrb.mxu1 %v8095_v55  ;;  %v9155_v55 = vld [vmem:[#allocation8 + $0x1080] sm:$0xf0]  ;;  %v4138_v56 = vadd.f32 %v10210_v46, %v4125_v62  ;;  %v7896_v62 = vld [vmem:[#allocation8 + $0xd14] sm:$0xf0]  ;;  %v9145_v24 = vld [vmem:[#allocation8 + $0x1030] sm:$0xf0] }
 0x2a6   : > { %v4100_v40 = vpop.f32.mrf.mxu1  ;;  %5926 = vmatpush.bf16.msrb.mxu3 %v8355_v23  ;;  %v4209_v12 = vmul.f32 0.0, %v4204_v33  ;;  %v4309_v57 = vmul.f32 0.0, %v4299_v43  ;;  %v7939_v23 = vor.u32 %v9053_v22, %v7936_v52  ;;  %v9033_v22 = vld [vmem:[#allocation8 + $0xcb4] sm:$0xf]  ;;  %v7856_v52 = vld [vmem:[#allocation8 + $0xcc4] sm:$0xf0] }
 0x2a7   : > { %5937 = vmatpush.bf16.msra.mxu0 %v8555_v14  ;;  %v9063_v40 = vld [vmem:[#allocation8 + $0xda4] sm:$0xf]  ;;  %v8335_v14 = vor.u32 %v9155_v55, %v8334_v10  ;;  %v8399_v10 = vor.u32 %v9168_v20, %v8396_v44  ;;  %v9138_v20 = vld [vmem:[#allocation8 + $0xffc] sm:$0xf]  ;;  %v8276_v44 = vld [vmem:[#allocation8 + $0x100c] sm:$0xf0] }
 0x2a8   : > { %5860 = vmatpush.bf16.msra.mxu2 %v8371_v39  ;;  %v7979_v32 = vor.u32 %v9063_v40, %v7976_v61  ;;  %v4189_v39 = vperm.slane %v10227_v38, 0  ;;  %v4333_v38 = vrot.slane %v4309_v57, 3 }
 0x2a9   : > { %5898 = vmatpush.bf16.msrb.mxu1 %v8075_v9  ;;  %v9150_v9 = vld [vmem:[#allocation8 + $0x1058] sm:$0xf0] }
 0x2aa   : > { %5927 = vmatpush.bf16.msrb.mxu3 %v8335_v14  ;;  %v8315_v53 = vor.u32 %v9150_v9, %v8314_v63  ;;  %v4194_v30 = vmul.f32 0.0, %v4189_v39  ;;  %v8379_v9 = vor.u32 %v9163_v28, %v8376_v8  ;;  %v9133_v8 = vld [vmem:[#allocation8 + $0xfd4] sm:$0xf] }
 0x2ab   : > { %5938 = vmatpush.bf16.msra.mxu0 %v8535_v5  ;;  %v8311_v5 = vor.u32 %v9147_v25, %v8308_v31  ;;  %v7919_v25 = vor.u32 %v9048_v16, %v7916_v2  ;;  %v9146_v16 = vld [vmem:[#allocation8 + $0x1038] sm:$0xf0] }
 0x2ac   : > { %5851 = vmatmul.bf16.vlgmr.msra.gmra.mxu1 %v10196_v15  ;;  %5861 = vmatpush.bf16.msra.mxu2 %v8351_v51  ;;  %v4369_v51 = vmul.f32 0.0, %v4359_v13 }
 0x2ad   : > { %5899 = vmatpush.bf16.msrb.mxu1 %v8055_v6  ;;  %v8439_v6 = vor.u32 %v9178_v41, %v8436_v0  ;;  %v9315_v41 = vld [vmem:[#allocation6 + $0xa] sm:$0x1f] }
 0x2ae   : > { %5928 = vmatpush.bf16.msrb.mxu3 %v8315_v53  ;;  %v4393_v14 = vrot.slane %v4369_v51, 4  ;;  %v4422_v0 = vperm.slane %v9315_v41, 4  ;;  %v8316_v51 = vld [vmem:[#allocation8 + $0x105c] sm:$0xf0] }
 0x2af   : > { %5939 = vmatpush.bf16.msra.mxu0 %v8515_v7  ;;  %v7959_v7 = vor.u32 %v9058_v48, %v7956_v18  ;;  %v7876_v48 = vld [vmem:[#allocation8 + $0xcec] sm:$0xf0] }
 0x2b0   : > { %5862 = vmatpush.bf16.msra.mxu2 %v8331_v21 }
 0x2b1   : > { %5900 = vmatpush.bf16.msrb.mxu1 %v8035_v29  ;;  %v4237_v29 = vrot.slane %v4209_v12, 1 }
 0x2b3   : > { %5940 = vmatpush.bf16.msra.mxu0 %v8495_v19 }
 0x2b4   : > { %5863 = vmatpush.bf16.msra.mxu2 %v8311_v5 }
 0x2b5   : > { %5901 = vmatpush.bf16.msrb.mxu1 %v8015_v37 }
 0x2b7   : > { %5941 = vmatpush.bf16.msra.mxu0 %v8475_v35  ;;  %v9043_v35 = vld [vmem:[#allocation8 + $0xd04] sm:$0xf] }
 0x2b9   : > { %5902 = vmatpush.bf16.msrb.mxu1 %v7995_v60  ;;  %v8356_v60 = vld [vmem:[#allocation8 + $0x10ac] sm:$0xf0] }
 0x2bb   : > { %5986 = vmatpush.bf16.msrb.mxu0 %v8459_v1 }
 0x2bc   : > { %5903 = vmatmul.bf16.vlgmr.msrb.gmra.mxu1 %v10178_v4 }
 0x2bd   : > { %5947 = vmatpush.bf16.msra.mxu1 %v7979_v32  ;;  %v7899_v32 = vor.u32 %v9043_v35, %v7896_v62  ;;  %v9218_v35 = vld [vmem:[#allocation8 + $0x127c] sm:$0xf]  ;;  %v8596_v62 = vld [vmem:[#allocation8 + $0x128c] sm:$0xf0] }
 0x2be   : > { %v4150_v11 = vpop.f32.mrf.mxu1  ;;  %v8599_v41 = vor.u32 %v9218_v35, %v8596_v62  ;;  %v9103_v35 = vld [vmem:[#allocation8 + $0xee4] sm:$0xf]  ;;  %v8136_v62 = vld [vmem:[#allocation8 + $0xef4] sm:$0xf0] }
 0x2bf   : > { %v4151_v58 = vadd.f32 %v4150_v11, %v4138_v56  ;;  %5987 = vmatpush.bf16.msrb.mxu0 %v8439_v6  ;;  %v9038_v56 = vld [vmem:[#allocation8 + $0xcdc] sm:$0xf] }
 0x2c1   : > { %v4158_v46 = vmax.f32 %v4151_v58, 0.0  ;;  %5948 = vmatpush.bf16.msra.mxu1 %v7959_v7  ;;  %v7879_v58 = vor.u32 %v9038_v56, %v7876_v48  ;;  %v9153_v7 = vld [vmem:[#allocation8 + $0x1074] sm:$0xf]  ;;  %v8576_v56 = vld [vmem:[#allocation8 + $0x1264] sm:$0xf0] }
 0x2c3   : > { %v4214_v27 = vmul.f32 %v4204_v33, %v4158_v46  ;;  %v4269_v26 = vmul.f32 %v4264_v47, %v4158_v46  ;;  %v4304_v42 = vmul.f32 %v4299_v43, %v4158_v46  ;;  %v4364_v34 = vmul.f32 %v4359_v13, %v4158_v46  ;;  %5988 = vmatpush.bf16.msrb.mxu0 %v8419_v17  ;;  %v9158_v33 = vld [vmem:[#allocation8 + $0x109c] sm:$0xf]  ;;  %v8294_v47 = vld [vmem:[#allocation8 + $0x1020] sm:$0xf]  ;;  %v8296_v13 = vld [vmem:[#allocation8 + $0x1034] sm:$0xf0] }
 0x2c4   : > { %v4199_v45 = vmul.f32 %v4189_v39, %v4158_v46  ;;  %v8359_v43 = vor.u32 %v9158_v33, %v8356_v60  ;;  %v8336_v46 = vld [vmem:[#allocation8 + $0x1084] sm:$0xf0]  ;;  %v8295_v57 = vor.u32 %v9145_v24, %v8294_v47  ;;  %v8274_v17 = vld [vmem:[#allocation8 + $0xff8] sm:$0xf]  ;;  %v9128_v33 = vld [vmem:[#allocation8 + $0xfac] sm:$0xf] }
 0x2c5   : > { %v4238_v19 = vrot.slane %v4214_v27, 1  ;;  %v4324_v36 = vrot.slane %v4304_v42, 3  ;;  %v4279_v50 = vrot.slane %v4269_v26, 2  ;;  %v4384_v40 = vrot.slane %v4364_v34, 4  ;;  %5949 = vmatpush.bf16.msra.mxu1 %v7939_v23  ;;  %v9140_v27 = vld [vmem:[#allocation8 + $0x1008] sm:$0xf0] }
 0x2c6   : > { %v4152_v54 = vpop.f32.mrf.mxu1  ;;  %v8299_v26 = vor.u32 %v9143_v59, %v8296_v13  ;;  %v8339_v42 = vor.u32 %v9153_v7, %v8336_v46  ;;  %v9148_v34 = vld [vmem:[#allocation8 + $0x104c] sm:$0xf]  ;;  %v8275_v2 = vor.u32 %v9140_v27, %v8274_v17  ;;  %v8236_v60 = vld [vmem:[#allocation8 + $0xfbc] sm:$0xf0]  ;;  %v8242_v24 = vld [vmem:[#allocation8 + $0xfb0] sm:$0xf] }
 0x2c7   : > { %v4239_v55 = vsel %vm379_vm0, %v4237_v29, %v4238_v19  ;;  %v4259_v37 = vadd.f32 %v4238_v19, %v4199_v45  ;;  %v4334_v63 = vsel %vm475_vm1, %v4324_v36, %v4333_v38  ;;  %5989 = vmatpush.bf16.msrb.mxu0 %v8399_v10  ;;  %v4394_v53 = vsel %vm536_vm2, %v4384_v40, %v4393_v14  ;;  %v9028_v23 = vld [vmem:[#allocation8 + $0xc8c] sm:$0xf]  ;;  %v7836_v45 = vld [vmem:[#allocation8 + $0xc9c] sm:$0xf0]  ;;  %v8302_v19 = vld [vmem:[#allocation8 + $0x1028] sm:$0xf] }
 0x2c8   : > { %v4254_v21 = vadd.f32 %v4239_v55, %v4194_v30  ;;  %v7859_v30 = vor.u32 %v9033_v22, %v7856_v52  ;;  %v8616_v38 = vld [vmem:[#allocation8 + $0x12b4] sm:$0xf0]  ;;  %v8279_v54 = vor.u32 %v9138_v20, %v8276_v44  ;;  %v8319_v10 = vor.u32 %v9148_v34, %v8316_v51  ;;  %v8254_v55 = vld [vmem:[#allocation8 + $0xfd0] sm:$0xf]  ;;  %v8282_v14 = vld [vmem:[#allocation8 + $0x1000] sm:$0xf] }
 0x2c9   : > { %v4294_v31 = vadd.f32 %v4279_v50, %v4259_v37  ;;  %5950 = vmatpush.bf16.msra.mxu1 %v7919_v25  ;;  %v9135_v37 = vld [vmem:[#allocation8 + $0xfe0] sm:$0xf0]  ;;  %v8303_v28 = vor.u32 %v9146_v16, %v8302_v19  ;;  %v9141_v25 = vld [vmem:[#allocation8 + $0x1010] sm:$0xf0]  ;;  %v8239_v48 = vor.u32 %v9128_v33, %v8236_v60  ;;  %v9208_v7 = vld [vmem:[#allocation8 + $0x122c] sm:$0xf] }
 0x2ca   : > { %v4289_v61 = vadd.f32 %v4279_v50, %v4254_v21  ;;  %v7839_v50 = vor.u32 %v9028_v23, %v7836_v45  ;;  %v8256_v21 = vld [vmem:[#allocation8 + $0xfe4] sm:$0xf0]  ;;  %v9131_v59 = vld [vmem:[#allocation8 + $0xfc0] sm:$0xf0]  ;;  %v8556_v46 = vld [vmem:[#allocation8 + $0x123c] sm:$0xf0] }
 0x2cb   : > { %v4354_v1 = vadd.f32 %v4334_v63, %v4294_v31  ;;  %5990 = vmatpush.bf16.msrb.mxu0 %v8379_v9  ;;  %v8255_v31 = vor.u32 %v9135_v37, %v8254_v55  ;;  %v8234_v63 = vld [vmem:[#allocation8 + $0xfa8] sm:$0xf]  ;;  %v9130_v9 = vld [vmem:[#allocation8 + $0xfb8] sm:$0xf0]  ;;  %v8194_v22 = vld [vmem:[#allocation8 + $0xf58] sm:$0xf] }
 0x2cc   : > { %v4349_v5 = vadd.f32 %v4324_v36, %v4289_v61  ;;  %v9223_v36 = vld [vmem:[#allocation8 + $0x12a4] sm:$0xf]  ;;  %v8259_v61 = vor.u32 %v9133_v8, %v8256_v21  ;;  %v9120_v52 = vld [vmem:[#allocation8 + $0xf68] sm:$0xf0]  ;;  %v9118_v17 = vld [vmem:[#allocation8 + $0xf5c] sm:$0xf] }
 0x2cd   : > { %v4414_v18 = vadd.f32 %v4394_v53, %v4354_v1  ;;  %5951 = vmatpush.bf16.msra.mxu1 %v7899_v32  ;;  %v8283_v1 = vor.u32 %v9141_v25, %v8282_v14  ;;  %v8235_v32 = vor.u32 %v9130_v9, %v8234_v63  ;;  %v9213_v53 = vld [vmem:[#allocation8 + $0x1254] sm:$0xf]  ;;  %v8196_v27 = vld [vmem:[#allocation8 + $0xf6c] sm:$0xf0]  ;;  %v9126_v20 = vld [vmem:[#allocation8 + $0xf98] sm:$0xf0]  ;;  %v8195_v44 = vor.u32 %v9120_v52, %v8194_v22 }
 0x2ce   : > { %v4409_v11 = vadd.f32 %v4384_v40, %v4349_v5  ;;  %v8619_v40 = vor.u32 %v9223_v36, %v8616_v38  ;;  %v9136_v5 = vld [vmem:[#allocation8 + $0xfe8] sm:$0xf0]  ;;  %v8579_v47 = vor.u32 %v9213_v53, %v8576_v56  ;;  %v8536_v34 = vld [vmem:[#allocation8 + $0x1214] sm:$0xf0]  ;;  %v8199_v51 = vor.u32 %v9118_v17, %v8196_v27  ;;  %v8174_v23 = vld [vmem:[#allocation8 + $0xf30] sm:$0xf] }
 0x2cf   : > { %v4437_v6 = vadd.f32 %v4422_v0, %v4414_v18  ;;  %5991 = vmatpush.bf16.msrb.mxu0 %v8359_v43  ;;  %v8214_v18 = vld [vmem:[#allocation8 + $0xf80] sm:$0xf]  ;;  %v9115_v45 = vld [vmem:[#allocation8 + $0xf40] sm:$0xf0]  ;;  %v9113_v16 = vld [vmem:[#allocation8 + $0xf34] sm:$0xf]  ;;  %v8139_v53 = vor.u32 %v9103_v35, %v8136_v62 }
 0x2d0   : > { %v4432_v12 = vadd.f32 %v4422_v0, %v4409_v11  ;;  %v8262_v0 = vld [vmem:[#allocation8 + $0xfd8] sm:$0xf]  ;;  %v9125_v11 = vld [vmem:[#allocation8 + $0xf90] sm:$0xf0]  ;;  %v10251_v36 = vld [vmem:[#allocation9 + $0xa] sm:$0x1f]  ;;  %v8175_v37 = vor.u32 %v9115_v45, %v8174_v23 }
 0x2d1   : > { %5952 = vmatpush.bf16.msra.mxu1 %v7879_v58  ;;  %v8263_v43 = vor.u32 %v9136_v5, %v8262_v0  ;;  %v8216_v58 = vld [vmem:[#allocation8 + $0xf94] sm:$0xf0]  ;;  %v8215_v13 = vor.u32 %v9125_v11, %v8214_v18  ;;  %v9121_v55 = vld [vmem:[#allocation8 + $0xf70] sm:$0xf0]  ;;  %v8154_v8 = vld [vmem:[#allocation8 + $0xf08] sm:$0xf] }
 0x2d2   : > { %v4442_v39 = vpack.c.bf16 %v4437_v6, %v4432_v12  ;;  %v9123_v6 = vld [vmem:[#allocation8 + $0xf84] sm:$0xf]  ;;  %v9108_v14 = vld [vmem:[#allocation8 + $0xf0c] sm:$0xf]  ;;  %v8156_v25 = vld [vmem:[#allocation8 + $0xf1c] sm:$0xf0] }
 0x2d3   : > { %5992 = vmatpush.bf16.msrb.mxu0 %v8339_v42  ;;  %v8222_v42 = vld [vmem:[#allocation8 + $0xf88] sm:$0xf]  ;;  %v9106_v9 = vld [vmem:[#allocation8 + $0xef8] sm:$0xf0]  ;;  %v9116_v33 = vld [vmem:[#allocation8 + $0xf48] sm:$0xf0] }
 0x2d4   : > { %v10240_v29 = vrot.slane %v4442_v39, 3  ;;  %v8219_v39 = vor.u32 %v9123_v6, %v8216_v58  ;;  %v8223_v19 = vor.u32 %v9126_v20, %v8222_v42  ;;  %v4687_v60 = vperm.slane %v10251_v36, 0  ;;  %v9193_v0 = vld [vmem:[#allocation8 + $0x11b4] sm:$0xf]  ;;  %v8496_v5 = vld [vmem:[#allocation8 + $0x11c4] sm:$0xf0] }
 0x2d5   : > { %5953 = vmatpush.bf16.msra.mxu1 %v7859_v30  ;;  %v9203_v30 = vld [vmem:[#allocation8 + $0x1204] sm:$0xf]  ;;  %v9098_v18 = vld [vmem:[#allocation8 + $0xebc] sm:$0xf]  ;;  %v8116_v11 = vld [vmem:[#allocation8 + $0xecc] sm:$0xf0]  ;;  %v8499_v6 = vor.u32 %v9193_v0, %v8496_v5 }
 0x2d6   : > { %5812 = vmatmul.bf16.vlgmr.msrb.gmra.mxu2 %v10240_v29  ;;  %5877 = vmatmul.bf16.vlgmr.msra.gmra.mxu3 %v10240_v29  ;;  %v9101_v58 = vld [vmem:[#allocation8 + $0xed0] sm:$0xf0]  ;;  %v8462_v22 = vld [vmem:[#allocation8 + $0x1168] sm:$0xf]  ;;  %v9186_v52 = vld [vmem:[#allocation8 + $0x1178] sm:$0xf0] }
 0x2d7   : > { %5908 = vmatpush.bf16.msrb.mxu2 %v8295_v57  ;;  %5942 = vmatmul.bf16.vlgmr.msra.gmra.mxu0 %v10240_v29  ;;  %v8243_v57 = vor.u32 %v9131_v59, %v8242_v24  ;;  %v9111_v24 = vld [vmem:[#allocation8 + $0xf20] sm:$0xf0]  ;;  %v8096_v42 = vld [vmem:[#allocation8 + $0xea4] sm:$0xf0]  ;;  %v8102_v20 = vld [vmem:[#allocation8 + $0xe98] sm:$0xf] }
 0x2d8   : > { %5973 = vmatpush.bf16.msra.mxu3 %v8299_v26  ;;  %5993 = vmatpush.bf16.msrb.mxu0 %v8319_v10  ;;  %v8559_v26 = vor.u32 %v9208_v7, %v8556_v46  ;;  %v8202_v10 = vld [vmem:[#allocation8 + $0xf60] sm:$0xf]  ;;  %v9181_v23 = vld [vmem:[#allocation8 + $0x1150] sm:$0xf0]  ;;  %v8402_v62 = vld [vmem:[#allocation8 + $0x10f0] sm:$0xf] }
 0x2d9   : > { %5954 = vmatpush.bf16.msra.mxu1 %v7839_v50  ;;  %v9198_v50 = vld [vmem:[#allocation8 + $0x11dc] sm:$0xf]  ;;  %v8476_v7 = vld [vmem:[#allocation8 + $0x119c] sm:$0xf0] }
 0x2db   : > { %5909 = vmatpush.bf16.msrb.mxu2 %v8275_v2  ;;  %v8176_v2 = vld [vmem:[#allocation8 + $0xf44] sm:$0xf0] }
 0x2dc   : > { %5974 = vmatpush.bf16.msra.mxu3 %v8279_v54  ;;  %6038 = vmatpush.bf16.msra.mxu0 %v8303_v28  ;;  %v8539_v54 = vor.u32 %v9203_v30, %v8536_v34  ;;  %v8516_v28 = vld [vmem:[#allocation8 + $0x11ec] sm:$0xf0]  ;;  %v8179_v21 = vor.u32 %v9113_v16, %v8176_v2  ;;  %v8463_v30 = vor.u32 %v9186_v52, %v8462_v22  ;;  %v8076_v16 = vld [vmem:[#allocation8 + $0xe7c] sm:$0xf0]  ;;  %v9071_v22 = vld [vmem:[#allocation8 + $0xde0] sm:$0xf0] }
 0x2dd   : > { %5999 = vmatpush.bf16.msrb.mxu1 %v8619_v40  ;;  %v10246_v12 = vpop.f32.mrf.mxu2  ;;  %v9110_v40 = vld [vmem:[#allocation8 + $0xf18] sm:$0xf0]  ;;  %v8519_v63 = vor.u32 %v9198_v50, %v8516_v28  ;;  %v8082_v2 = vld [vmem:[#allocation8 + $0xe70] sm:$0xf]  ;;  %v9176_v50 = vld [vmem:[#allocation8 + $0x1128] sm:$0xf0] }
 0x2de   : > { %5955 = vmatmul.bf16.vlgmr.msra.gmra.mxu1 %v10153_v3  ;;  %v5762_v59 = vadd.f32 %v10246_v12, %v4687_v60  ;;  %v9081_v60 = vld [vmem:[#allocation8 + $0xe30] sm:$0xf0]  ;;  %v7982_v52 = vld [vmem:[#allocation8 + $0xda8] sm:$0xf] }
 0x2df   : > { %5910 = vmatpush.bf16.msrb.mxu2 %v8255_v31  ;;  %v8203_v31 = vor.u32 %v9121_v55, %v8202_v10 }
 0x2e0   : > { %5975 = vmatpush.bf16.msra.mxu3 %v8259_v61  ;;  %6039 = vmatpush.bf16.msra.mxu0 %v8283_v1  ;;  %v8142_v61 = vld [vmem:[#allocation8 + $0xee8] sm:$0xf]  ;;  %v8182_v1 = vld [vmem:[#allocation8 + $0xf38] sm:$0xf] }
 0x2e1   : > { %6000 = vmatpush.bf16.msrb.mxu1 %v8599_v41  ;;  %v8155_v41 = vor.u32 %v9110_v40, %v8154_v8  ;;  %v8143_v56 = vor.u32 %v9106_v9, %v8142_v61  ;;  %v9083_v8 = vld [vmem:[#allocation8 + $0xe44] sm:$0xf]  ;;  %v8062_v40 = vld [vmem:[#allocation8 + $0xe48] sm:$0xf]  ;;  %v9078_v9 = vld [vmem:[#allocation8 + $0xe1c] sm:$0xf] }
 0x2e3   : > { %5911 = vmatpush.bf16.msrb.mxu2 %v8235_v32  ;;  %v8159_v32 = vor.u32 %v9108_v14, %v8156_v25  ;;  %v9086_v14 = vld [vmem:[#allocation8 + $0xe58] sm:$0xf0] }
 0x2e4   : > { %5976 = vmatpush.bf16.msra.mxu3 %v8239_v48  ;;  %6040 = vmatpush.bf16.msra.mxu0 %v8263_v43  ;;  %v8183_v48 = vor.u32 %v9116_v33, %v8182_v1  ;;  %v8122_v43 = vld [vmem:[#allocation8 + $0xec0] sm:$0xf]  ;;  %v8036_v1 = vld [vmem:[#allocation8 + $0xe2c] sm:$0xf0] }
 0x2e5   : > { %6001 = vmatpush.bf16.msrb.mxu1 %v8579_v47  ;;  %v5763_v38 = vpop.f32.mrf.mxu2  ;;  %v8162_v47 = vld [vmem:[#allocation8 + $0xf10] sm:$0xf]  ;;  %v8123_v17 = vor.u32 %v9101_v58, %v8122_v43  ;;  %v8042_v33 = vld [vmem:[#allocation8 + $0xe20] sm:$0xf]  ;;  %v8039_v5 = vor.u32 %v9078_v9, %v8036_v1  ;;  %v9076_v43 = vld [vmem:[#allocation8 + $0xe08] sm:$0xf0] }
 0x2e6   : > { %5864 = vmatmul.bf16.vlgmr.msra.gmra.mxu2 %v10217_v49  ;;  %5929 = vmatmul.bf16.vlgmr.msrb.gmra.mxu3 %v10217_v49  ;;  %v8163_v27 = vor.u32 %v9111_v24, %v8162_v47  ;;  %v9091_v38 = vld [vmem:[#allocation8 + $0xe80] sm:$0xf0]  ;;  %v8362_v24 = vld [vmem:[#allocation8 + $0x10a0] sm:$0xf]  ;;  %v7862_v9 = vld [vmem:[#allocation8 + $0xcb8] sm:$0xf] }
 0x2e7   : > { %5912 = vmatpush.bf16.msrb.mxu2 %v8215_v13  ;;  %5994 = vmatmul.bf16.vlgmr.msrb.gmra.mxu0 %v10217_v49  ;;  %v9188_v13 = vld [vmem:[#allocation8 + $0x118c] sm:$0xf]  ;;  %v8083_v28 = vor.u32 %v9091_v38, %v8082_v2  ;;  %v9151_v2 = vld [vmem:[#allocation8 + $0x1060] sm:$0xf0] }
 0x2e8   : > { %5977 = vmatpush.bf16.msra.mxu3 %v8219_v39  ;;  %6041 = vmatpush.bf16.msra.mxu0 %v8243_v57  ;;  %v8119_v39 = vor.u32 %v9098_v18, %v8116_v11  ;;  %v8479_v12 = vor.u32 %v9188_v13, %v8476_v7  ;;  %v8016_v18 = vld [vmem:[#allocation8 + $0xe04] sm:$0xf0]  ;;  %v8022_v11 = vld [vmem:[#allocation8 + $0xdf8] sm:$0xf]  ;;  %v9068_v7 = vld [vmem:[#allocation8 + $0xdcc] sm:$0xf] }
 0x2e9   : > { %6002 = vmatpush.bf16.msrb.mxu1 %v8559_v26  ;;  %v9093_v26 = vld [vmem:[#allocation8 + $0xe94] sm:$0xf]  ;;  %v8023_v13 = vor.u32 %v9076_v43, %v8022_v11  ;;  %v9036_v1 = vld [vmem:[#allocation8 + $0xcc8] sm:$0xf0] }
 0x2ea   : > { %v8099_v34 = vor.u32 %v9093_v26, %v8096_v42 }
 0x2eb   : > { %5913 = vmatpush.bf16.msrb.mxu2 %v8195_v44  ;;  %v5774_v46 = vpop.f32.mrf.mxu3  ;;  %v9096_v44 = vld [vmem:[#allocation8 + $0xea8] sm:$0xf0] }
 0x2ec   : > { %5978 = vmatpush.bf16.msra.mxu3 %v8199_v51  ;;  %6042 = vmatpush.bf16.msra.mxu0 %v8223_v19  ;;  %v5775_v57 = vadd.f32 %v5774_v46, %v5762_v59  ;;  %v8442_v51 = vld [vmem:[#allocation8 + $0x1140] sm:$0xf]  ;;  %v8103_v45 = vor.u32 %v9096_v44, %v8102_v20  ;;  %v9088_v19 = vld [vmem:[#allocation8 + $0xe6c] sm:$0xf]  ;;  %v9161_v59 = vld [vmem:[#allocation8 + $0x10b0] sm:$0xf0] }
 0x2ed   : > { %6003 = vmatpush.bf16.msrb.mxu1 %v8539_v54  ;;  %v8443_v54 = vor.u32 %v9181_v23, %v8442_v51  ;;  %v8079_v55 = vor.u32 %v9088_v19, %v8076_v16  ;;  %v7996_v46 = vld [vmem:[#allocation8 + $0xddc] sm:$0xf0]  ;;  %v9156_v20 = vld [vmem:[#allocation8 + $0x1088] sm:$0xf0]  ;;  %v9061_v51 = vld [vmem:[#allocation8 + $0xd90] sm:$0xf0] }
 0x2ee   : > { %v7999_v42 = vor.u32 %v9068_v7, %v7996_v46  ;;  %v8322_v16 = vld [vmem:[#allocation8 + $0x1050] sm:$0xf]  ;;  %v8542_v46 = vld [vmem:[#allocation8 + $0x1208] sm:$0xf] }
 0x2ef   : > { %5914 = vmatpush.bf16.msrb.mxu2 %v8175_v37  ;;  %v8422_v37 = vld [vmem:[#allocation8 + $0x1118] sm:$0xf] }
 0x2f0   : > { %5979 = vmatpush.bf16.msra.mxu3 %v8179_v21  ;;  %6043 = vmatpush.bf16.msra.mxu0 %v8203_v31  ;;  %v8056_v21 = vld [vmem:[#allocation8 + $0xe54] sm:$0xf0]  ;;  %v8423_v25 = vor.u32 %v9176_v50, %v8422_v37  ;;  %v8323_v37 = vor.u32 %v9151_v2, %v8322_v16 }
 0x2f1   : > { %6004 = vmatpush.bf16.msrb.mxu1 %v8519_v63  ;;  %v8059_v35 = vor.u32 %v9083_v8, %v8056_v21  ;;  %v8063_v63 = vor.u32 %v9086_v14, %v8062_v40  ;;  %v9051_v8 = vld [vmem:[#allocation8 + $0xd40] sm:$0xf0]  ;;  %v7902_v14 = vld [vmem:[#allocation8 + $0xd08] sm:$0xf] }
 0x2f3   : > { %5915 = vmatpush.bf16.msrb.mxu2 %v8155_v41  ;;  %v5776_v10 = vpop.f32.mrf.mxu3 }
 0x2f4   : > { %5980 = vmatpush.bf16.msra.mxu3 %v8159_v32  ;;  %6044 = vmatpush.bf16.msra.mxu0 %v8183_v48  ;;  %v8382_v32 = vld [vmem:[#allocation8 + $0x10c8] sm:$0xf]  ;;  %v9073_v48 = vld [vmem:[#allocation8 + $0xdf4] sm:$0xf]  ;;  %v7942_v10 = vld [vmem:[#allocation8 + $0xd58] sm:$0xf] }
 0x2f5   : > { %6005 = vmatpush.bf16.msrb.mxu1 %v8499_v6  ;;  %v8019_v47 = vor.u32 %v9073_v48, %v8016_v18  ;;  %v8602_v48 = vld [vmem:[#allocation8 + $0x1280] sm:$0xf]  ;;  %v9221_v18 = vld [vmem:[#allocation8 + $0x1290] sm:$0xf0] }
 0x2f6   : > { %5916 = vmatmul.bf16.vlgmr.msrb.gmra.mxu2 %v10196_v15  ;;  %v8603_v11 = vor.u32 %v9221_v18, %v8602_v48 }
 0x2f7   : > { %5960 = vmatpush.bf16.msra.mxu2 %v8139_v53  ;;  %5981 = vmatmul.bf16.vlgmr.msra.gmra.mxu3 %v10196_v15  ;;  %v5787_v31 = vpop.f32.mrf.mxu0  ;;  %v9166_v53 = vld [vmem:[#allocation8 + $0x10d8] sm:$0xf0] }
 0x2f8   : > { %6025 = vmatpush.bf16.msrb.mxu3 %v8143_v56  ;;  %6045 = vmatpush.bf16.msra.mxu0 %v8163_v27  ;;  %v10259_v61 = vadd.f32 %v5787_v31, %v5775_v57  ;;  %v8043_v56 = vor.u32 %v9081_v60, %v8042_v33  ;;  %v8383_v6 = vor.u32 %v9166_v53, %v8382_v32  ;;  %v9066_v57 = vld [vmem:[#allocation8 + $0xdb8] sm:$0xf0]  ;;  %v7842_v60 = vld [vmem:[#allocation8 + $0xc90] sm:$0xf] }
 0x2f9   : > { %6006 = vmatpush.bf16.msrb.mxu1 %v8479_v12  ;;  %v8363_v27 = vor.u32 %v9161_v59, %v8362_v24  ;;  %v8342_v12 = vld [vmem:[#allocation8 + $0x1078] sm:$0xf]  ;;  %v7863_v33 = vor.u32 %v9036_v1, %v7862_v9  ;;  %v8562_v24 = vld [vmem:[#allocation8 + $0x1230] sm:$0xf]  ;;  %v9211_v59 = vld [vmem:[#allocation8 + $0x1240] sm:$0xf0] }
 0x2fb   : > { %5961 = vmatpush.bf16.msra.mxu2 %v8119_v39  ;;  %6046 = vmatmul.bf16.vlgmr.msra.gmra.mxu0 %v10196_v15  ;;  %v9171_v15 = vld [vmem:[#allocation8 + $0x1100] sm:$0xf0]  ;;  %v5826_v0 = vpop.f32.mrf.mxu3  ;;  %v8002_v39 = vld [vmem:[#allocation8 + $0xdd0] sm:$0xf] }
 0x2fc   : > { %6026 = vmatpush.bf16.msrb.mxu3 %v8123_v17  ;;  %6007 = vmatmul.bf16.vlgmr.msrb.gmra.mxu1 %v10240_v29  ;;  %v8403_v41 = vor.u32 %v9171_v15, %v8402_v62  ;;  %v4688_v17 = vperm.slane %v10251_v36, 1  ;;  %v8003_v44 = vor.u32 %v9071_v22, %v8002_v39  ;;  %v9041_v62 = vld [vmem:[#allocation8 + $0xcf0] sm:$0xf0]  ;;  %v9206_v39 = vld [vmem:[#allocation8 + $0x1218] sm:$0xf0] }
 0x2fd   : > { %6051 = vmatpush.bf16.msra.mxu1 %v8463_v30  ;;  %v7983_v30 = vor.u32 %v9066_v57, %v7982_v52  ;;  %v8543_v22 = vor.u32 %v9206_v39, %v8542_v46  ;;  %v8522_v52 = vld [vmem:[#allocation8 + $0x11e0] sm:$0xf]  ;;  %v9201_v57 = vld [vmem:[#allocation8 + $0x11f0] sm:$0xf0] }
 0x2fe   : > { %v5827_v23 = vadd.f32 %v5826_v0, %v4688_v17  ;;  %v8523_v17 = vor.u32 %v9201_v57, %v8522_v52 }
 0x2ff   : > { %5962 = vmatpush.bf16.msra.mxu2 %v8099_v34  ;;  %v5789_v58 = vpop.f32.mrf.mxu0  ;;  %v7962_v34 = vld [vmem:[#allocation8 + $0xd80] sm:$0xf] }
 0x300   : > { %6027 = vmatpush.bf16.msrb.mxu3 %v8103_v45  ;;  %v8343_v45 = vor.u32 %v9156_v20, %v8342_v12  ;;  %v9216_v58 = vld [vmem:[#allocation8 + $0x1268] sm:$0xf0]  ;;  %v8482_v12 = vld [vmem:[#allocation8 + $0x1190] sm:$0xf]  ;;  %v9191_v20 = vld [vmem:[#allocation8 + $0x11a0] sm:$0xf0] }
 0x301   : > { %6052 = vmatpush.bf16.msra.mxu1 %v8443_v54  ;;  %v7963_v54 = vor.u32 %v9061_v51, %v7962_v34 }
 0x303   : > { %5963 = vmatpush.bf16.msra.mxu2 %v8079_v55  ;;  %v5828_v26 = vpop.f32.mrf.mxu3  ;;  %v9056_v55 = vld [vmem:[#allocation8 + $0xd68] sm:$0xf0] }
 0x304   : > { %6028 = vmatpush.bf16.msrb.mxu3 %v8083_v28  ;;  %v7943_v50 = vor.u32 %v9056_v55, %v7942_v10  ;;  %v7922_v28 = vld [vmem:[#allocation8 + $0xd30] sm:$0xf]  ;;  %v8502_v26 = vld [vmem:[#allocation8 + $0x11b8] sm:$0xf] }
 0x305   : > { %6053 = vmatpush.bf16.msra.mxu1 %v8423_v25  ;;  %v7923_v40 = vor.u32 %v9051_v8, %v7922_v28  ;;  %v9046_v25 = vld [vmem:[#allocation8 + $0xd18] sm:$0xf0] }
 0x306   : > { %v7903_v31 = vor.u32 %v9046_v25, %v7902_v14 }
 0x307   : > { %5964 = vmatpush.bf16.msra.mxu2 %v8059_v35  ;;  %v5839_v19 = vpop.f32.mrf.mxu0  ;;  %v7882_v35 = vld [vmem:[#allocation8 + $0xce0] sm:$0xf] }
 0x308   : > { %6029 = vmatpush.bf16.msrb.mxu3 %v8063_v63  ;;  %v10262_v38 = vadd.f32 %v5839_v19, %v5827_v23 }
 0x309   : > { %6054 = vmatpush.bf16.msra.mxu1 %v8403_v41  ;;  %v9031_v41 = vld [vmem:[#allocation8 + $0xca0] sm:$0xf0] }
 0x30a   : > { %v7843_v53 = vor.u32 %v9031_v41, %v7842_v60 }
 0x30b   : > { %5965 = vmatpush.bf16.msra.mxu2 %v8039_v5  ;;  %v8622_v5 = vld [vmem:[#allocation8 + $0x12a8] sm:$0xf] }
 0x30c   : > { %6030 = vmatpush.bf16.msrb.mxu3 %v8043_v56 }
 0x30d   : > { %6055 = vmatpush.bf16.msra.mxu1 %v8383_v6  ;;  %v8582_v6 = vld [vmem:[#allocation8 + $0x1258] sm:$0xf] }
 0x30f   : > { %5966 = vmatpush.bf16.msra.mxu2 %v8019_v47  ;;  %v5841_v21 = vpop.f32.mrf.mxu0  ;;  %v8583_v47 = vor.u32 %v9216_v58, %v8582_v6 }
 0x310   : > { %6031 = vmatpush.bf16.msrb.mxu3 %v8023_v13  ;;  %v8563_v13 = vor.u32 %v9211_v59, %v8562_v24 }
 0x311   : > { %6056 = vmatpush.bf16.msra.mxu1 %v8363_v27 }
 0x313   : > { %5967 = vmatpush.bf16.msra.mxu2 %v7999_v42  ;;  %v9196_v42 = vld [vmem:[#allocation8 + $0x11c8] sm:$0xf0] }
 0x314   : > { %6032 = vmatpush.bf16.msrb.mxu3 %v8003_v44  ;;  %v8483_v44 = vor.u32 %v9191_v20, %v8482_v12 }
 0x315   : > { %6057 = vmatpush.bf16.msra.mxu1 %v8343_v45 }
 0x316   : > { %5968 = vmatmul.bf16.vlgmr.msra.gmra.mxu2 %v10178_v4 }
 0x317   : > { %6012 = vmatpush.bf16.msrb.mxu2 %v7983_v30  ;;  %6033 = vmatmul.bf16.vlgmr.msrb.gmra.mxu3 %v10178_v4  ;;  %v10267_v63 = vpop.f32.mrf.mxu0  ;;  %v7883_v4 = vor.u32 %v9041_v62, %v7882_v35 }
 0x319   : > { %6058 = vmatpush.bf16.msra.mxu1 %v8323_v37  ;;  %v5800_v15 = vpop.f32.mrf.mxu1 }
 0x31a   : > { %v5801_v51 = vadd.f32 %v5800_v15, %v10259_v61 }
 0x31b   : > { %6013 = vmatpush.bf16.msrb.mxu2 %v7963_v54 }
 0x31c   : > { %6059 = vmatmul.bf16.vlgmr.msra.gmra.mxu1 %v10217_v49  ;;  %v9226_v49 = vld [vmem:[#allocation8 + $0x12b8] sm:$0xf0] }
 0x31d   : > { %v8623_v56 = vor.u32 %v9226_v49, %v8622_v5 }
 0x31f   : > { %6014 = vmatpush.bf16.msrb.mxu2 %v7943_v50  ;;  %v5893_v32 = vpop.f32.mrf.mxu0 }
 0x321   : > { %v5802_v0 = vpop.f32.mrf.mxu1 }
 0x323   : > { %6015 = vmatpush.bf16.msrb.mxu2 %v7923_v40 }
 0x327   : > { %6016 = vmatpush.bf16.msrb.mxu2 %v7903_v31  ;;  %v4689_v31 = vperm.slane %v10251_v36, 2 }
 0x329   : > { %v5852_v43 = vpop.f32.mrf.mxu1  ;;  %v5892_v62 = vadd.f32 %v10267_v63, %v4689_v31 }
 0x32b   : > { %6017 = vmatpush.bf16.msrb.mxu2 %v7883_v4 }
 0x32f   : > { %6018 = vmatpush.bf16.msrb.mxu2 %v7863_v33 }
 0x331   : > { %v5854_v7 = vpop.f32.mrf.mxu1 }
 0x333   : > { %6019 = vmatpush.bf16.msrb.mxu2 %v7843_v53 }
 0x336   : > { %6020 = vmatmul.bf16.vlgmr.msrb.gmra.mxu2 %v10153_v3  ;;  %v8503_v3 = vor.u32 %v9196_v42, %v8502_v26 }
 0x337   : > { %6064 = vmatpush.bf16.msra.mxu2 %v8623_v56  ;;  %v4690_v56 = vperm.slane %v10251_v36, 3 }
 0x339   : > { %v5904_v27 = vpop.f32.mrf.mxu1 }
 0x33a   : > { %v5905_v15 = vadd.f32 %v5904_v27, %v5892_v62 }
 0x33b   : > { %6065 = vmatpush.bf16.msra.mxu2 %v8603_v11 }
 0x33f   : > { %6066 = vmatpush.bf16.msra.mxu2 %v8583_v47 }
 0x341   : > { %v5906_v30 = vpop.f32.mrf.mxu1 }
 0x343   : > { %6067 = vmatpush.bf16.msra.mxu2 %v8563_v13 }
 0x347   : > { %6068 = vmatpush.bf16.msra.mxu2 %v8543_v22  ;;  %v4691_v22 = vperm.slane %v10251_v36, 4 }
 0x34b   : > { %6069 = vmatpush.bf16.msra.mxu2 %v8523_v17 }
 0x34f   : > { %6070 = vmatpush.bf16.msra.mxu2 %v8503_v3 }
 0x353   : > { %6071 = vmatpush.bf16.msra.mxu2 %v8483_v44 }
 0x354   : > { %v5943_v34 = vpop.f32.mrf.mxu0 }
 0x356   : > { %6072 = vmatmul.bf16.vlgmr.msra.gmra.mxu2 %v10240_v29  ;;  %v5853_v29 = vadd.f32 %v5852_v43, %v10262_v38 }
 0x359   : > { %v5813_v23 = vpop.f32.mrf.mxu2  ;;  %v5878_v45 = vpop.f32.mrf.mxu3 }
 0x35a   : > { %v5814_v19 = vadd.f32 %v5813_v23, %v5801_v51 }
 0x35b   : > { %v5956_v54 = vpop.f32.mrf.mxu1 }
 0x35c   : > { %v6077_v16 = vmax.f32 %v5814_v19, 0.0  ;;  %v5945_v2 = vpop.f32.mrf.mxu0  ;;  %v5957_v48 = vadd.f32 %v5956_v54, %v4690_v56 }
 0x35e   : > { %6082 = vst [vmem:[%s10274_s9] sm:$0xff] %v6077_v16 }
 0x361   : > { %v5815_v10 = vpop.f32.mrf.mxu2  ;;  %v5880_v55 = vpop.f32.mrf.mxu3 }
 0x363   : > { %v5958_v37 = vpop.f32.mrf.mxu1 }
 0x364   : > { %v5995_v50 = vpop.f32.mrf.mxu0 }
 0x369   : > { %v5865_v28 = vpop.f32.mrf.mxu2  ;;  %v5930_v8 = vpop.f32.mrf.mxu3 }
 0x36a   : > { %v5866_v61 = vadd.f32 %v5865_v28, %v5853_v29 }
 0x36c   : > { %v5879_v21 = vadd.f32 %v5878_v45, %v5866_v61  ;;  %v5997_v40 = vpop.f32.mrf.mxu0 }
 0x36e   : > { %v6078_v14 = vmax.f32 %v5879_v21, 0.0 }
 0x370   : > { %6083 = vst [vmem:[%s10274_s9 + $0x8] sm:$0xff] %v6078_v14 }
 0x371   : > { %v5867_v25 = vpop.f32.mrf.mxu2  ;;  %v5932_v35 = vpop.f32.mrf.mxu3 }
 0x378   : > { %v6047_v4 = vpop.f32.mrf.mxu0 }
 0x379   : > { %v5917_v9 = vpop.f32.mrf.mxu2  ;;  %v6008_v1 = vpop.f32.mrf.mxu1 }
 0x37a   : > { %v5918_v33 = vadd.f32 %v5917_v9, %v5905_v15  ;;  %v5982_v38 = vpop.f32.mrf.mxu3 }
 0x37c   : > { %v5931_v60 = vadd.f32 %v5930_v8, %v5918_v33 }
 0x37e   : > { %v5944_v41 = vadd.f32 %v5943_v34, %v5931_v60 }
 0x380   : > { %v6079_v0 = vmax.f32 %v5944_v41, 0.0  ;;  %v6049_v5 = vpop.f32.mrf.mxu0 }
 0x381   : > { %v5919_v49 = vpop.f32.mrf.mxu2  ;;  %v6010_v32 = vpop.f32.mrf.mxu1 }
 0x382   : > { %6084 = vst [vmem:[%s10274_s9 + $0x10] sm:$0xff] %v6079_v0  ;;  %v5984_v53 = vpop.f32.mrf.mxu3 }
 0x399   : > { %v5969_v18 = vpop.f32.mrf.mxu2  ;;  %v6060_v43 = vpop.f32.mrf.mxu1 }
 0x39a   : > { %v5970_v63 = vadd.f32 %v5969_v18, %v5957_v48  ;;  %v6034_v11 = vpop.f32.mrf.mxu3 }
 0x39c   : > { %v5983_v6 = vadd.f32 %v5982_v38, %v5970_v63 }
 0x39e   : > { %v5996_v58 = vadd.f32 %v5995_v50, %v5983_v6 }
 0x3a0   : > { %v6009_v47 = vadd.f32 %v6008_v1, %v5996_v58 }
 0x3a1   : > { %v5971_v24 = vpop.f32.mrf.mxu2  ;;  %v6062_v7 = vpop.f32.mrf.mxu1 }
 0x3a2   : > { %v6080_v59 = vmax.f32 %v6009_v47, 0.0  ;;  %v6036_v13 = vpop.f32.mrf.mxu3 }
 0x3a4   : > { %6085 = vst [vmem:[%s10274_s9 + $0x18] sm:$0xff] %v6080_v59 }
 0x3b9   : > { %v6021_v46 = vpop.f32.mrf.mxu2 }
 0x3ba   : > { %v6022_v52 = vadd.f32 %v6021_v46, %v4691_v22 }
 0x3bc   : > { %v6035_v57 = vadd.f32 %v6034_v11, %v6022_v52 }
 0x3be   : > { %v6048_v17 = vadd.f32 %v6047_v4, %v6035_v57 }
 0x3c0   : > { %v6061_v27 = vadd.f32 %v6060_v43, %v6048_v17 }
 0x3c1   : > { %v6023_v39 = vpop.f32.mrf.mxu2 }
 0x3d9   : > { %v6073_v26 = vpop.f32.mrf.mxu2 }
 0x3da   : > { %v6074_v42 = vadd.f32 %v6073_v26, %v6061_v27 }
 0x3dc   : > { %v6081_v3 = vmax.f32 %v6074_v42, 0.0 }
 0x3de   : > { %6086 = vst [vmem:[%s10274_s9 + $0x20] sm:$0xff] %v6081_v3 }
 0x3df   : > { %9463 = shalt.err (!%p9460_p9)
}
 0x3e0   : > { %9245 = dma.vmem_to_hbm [thread:$0]  (%p9625_p0), %s6102_s10, 640, %s6104_s13, %s6088_s14  }
 0x3e1   : > { %v6075_v36 = vpop.f32.mrf.mxu2 }
 0x3e2 PF: > { %s6115_s7 = sand.u32 1, %s9498_s18   ;;  %p10336_p10 = scmp.ge.s32.totalorder %s9510_s21, 2 }
 0x3e3   : > { %s6116_s28 = scalar_lea.sflag [#allocation5], %s6115_s7 }
 0x3e4   : > { %p9262_p11 = pnand %p10336_p10, %p9631_p6 }
 0x3e6   : > { %p9263_p12 = pneg %p9262_p11 }
 0x3e8   : > { %9493 = dma.done.wait (%p9263_p12), %s6116_s28, 640  }
 0x3e9   : > { %9495 = vsyncadd (%p9263_p12), %s6116_s28, 4294966656  ;;  %p20_p2 = scmp.ge.s32.totalorder %s9605_s24, 4   ;;  %s10337_s18 = smov %s9502_s19 }
 0x3ea   : > { %s10338_s19 = smov %s9506_s20  ;;  %s10339_s20 = smov %s9617_s29 }
 0x3eb   : > { %s10340_s21 = smov %s9605_s24  ;;  %22 = sbr.rel (!%p20_p2) target bundleno = 10 (0xa), region = 105 }
 0x3f0   :  { %6122 = vsyncpa [#allocation4], 1 }
 0x3f1   :  { %6124 = vsyncpa [#allocation4 + $0x1], 1 }
 0x3f2   :  { %6125 = vsyncpa [#allocation7], 1 }
 0x3f3   :  { %6126 = vsyncpa [#allocation10], 1 }
 0x3f4   :  { %6127 = vsyncpa [#allocation5], 1 }
 0x3f5   :  { %6129 = vsyncpa [#allocation5 + $0x1], 1 }

</bundles_post_ra>
